<compile_context>
chip_gen: v5e
topology: v5e:2x2
jax: 0.10.0
libtpu: 0.0.40
codegen_flags: <defaults>
</compile_context>

<pallas_src>
import math
import functools

import jax
import jax.numpy as jnp
from jax.experimental import pallas as pl
from jax.experimental.pallas import tpu as pltpu


# --------------------------------------------------------------------------- tiling utils
def _pick_tile(dim, target, align, min_blocks=1):
    """Largest multiple of `align` that divides `dim` and is <= target.

    Falls back to the full `dim` (block == array extent, always legal) when no aligned
    divisor exists.  With min_blocks > 1, prefers a smaller aligned tile that yields at
    least `min_blocks` grid blocks (keeps both v7x TensorCores busy on parallel axes)."""
    best = dim
    t = (min(target, dim) // align) * align
    while t >= align:
        if dim % t == 0:
            best = t
            break
        t -= align
    if min_blocks > 1 and dim // best < min_blocks:
        t = (dim // min_blocks // align) * align
        while t >= align:
            if dim % t == 0:
                return t
            t -= align
    return best


def _heads_per_block(heads, d_k, target_lanes=512):
    """Heads processed per attention grid step; hpb*d_k == D or a multiple of 128."""
    D = heads * d_k
    if D <= target_lanes:
        return heads
    for hpb in range(heads, 0, -1):
        if heads % hpb == 0:
            w = hpb * d_k
            if w <= target_lanes and w % 128 == 0:
                return hpb
    return heads


@functools.lru_cache(maxsize=None)
def _vmem_limit_bytes():
    """Scoped-VMEM budget: 3/4 of physical capacity, capped at 96 MiB.

    -> ~96 MiB on v5e/v6e (128 MiB physical), ~48 MiB on v7x (64 MiB physical)."""
    cap = 64 * 1024 * 1024  # conservative fallback = v7x physical VMEM
    try:
        cap = int(pltpu.get_tpu_info().vmem_capacity_bytes)
    except Exception:
        pass
    return int(min(cap * 3 // 4, 96 * 1024 * 1024))


# --------------------------------------------------------------------------- linear kernel
def _linear_kernel(x_ref, w_ref, b_ref, o_ref, acc_ref, *, relu):
    k = pl.program_id(2)

    @pl.when(k == 0)
    def _():
        acc_ref[...] = jnp.zeros_like(acc_ref)

    acc_ref[...] += jnp.dot(x_ref[...].astype(jnp.bfloat16), w_ref[...],
                            preferred_element_type=jnp.float32)

    @pl.when(k == pl.num_programs(2) - 1)
    def _():
        y = acc_ref[...] + b_ref[...]
        if relu:
            y = jnp.maximum(y, 0.0)
        o_ref[...] = y.astype(o_ref.dtype)


def linear(x, w, b, *, relu=False, out_dtype=jnp.bfloat16,
           tm_target=512, tn_target=1024, tk_target=512):
    """y = x @ W + b (optionally ReLU).  bf16 MXU operands, f32 VMEM accumulation."""
    M, K = x.shape
    N = w.shape[1]
    tm = _pick_tile(M, tm_target, 16, min_blocks=2)   # 16-row align: bf16 sublane packing
    tn = _pick_tile(N, tn_target, 128)
    tk = _pick_tile(K, tk_target, 128)
    grid = (M // tm, N // tn, K // tk)
    return pl.pallas_call(
        functools.partial(_linear_kernel, relu=relu),
        out_shape=jax.ShapeDtypeStruct((M, N), out_dtype),
        grid=grid,
        in_specs=[
            pl.BlockSpec((tm, tk), lambda i, j, k: (i, k)),
            pl.BlockSpec((tk, tn), lambda i, j, k: (k, j)),
            pl.BlockSpec((1, tn), lambda i, j, k: (0, j)),
        ],
        out_specs=pl.BlockSpec((tm, tn), lambda i, j, k: (i, j)),
        scratch_shapes=[pltpu.VMEM((tm, tn), jnp.float32)],
        compiler_params=pltpu.CompilerParams(
            dimension_semantics=("parallel", "parallel", "arbitrary"),
            vmem_limit_bytes=_vmem_limit_bytes()),
    )(x.astype(jnp.bfloat16), w.astype(jnp.bfloat16),
      b.reshape(1, N).astype(jnp.float32))


# ----------------------------------------------------- linear + residual + LayerNorm (fused)
def _linear_add_norm_kernel(x_ref, w_ref, b_ref, r_ref, g_ref, be_ref, o_ref,
                            acc_ref, *, eps):
    k = pl.program_id(1)

    @pl.when(k == 0)
    def _():
        acc_ref[...] = jnp.zeros_like(acc_ref)

    acc_ref[...] += jnp.dot(x_ref[...].astype(jnp.bfloat16), w_ref[...],
                            preferred_element_type=jnp.float32)

    @pl.when(k == pl.num_programs(1) - 1)
    def _():
        z = r_ref[...].astype(jnp.float32) + acc_ref[...] + b_ref[...]   # residual add (f32)
        mu = jnp.mean(z, axis=-1, keepdims=True)
        var = jnp.mean(jnp.square(z - mu), axis=-1, keepdims=True)        # biased variance
        z_hat = (z - mu) * jax.lax.rsqrt(var + eps)
        o_ref[...] = (g_ref[...] * z_hat + be_ref[...]).astype(o_ref.dtype)


def linear_add_norm(x, w, b, residual, gamma, beta, *, eps=1e-6,
                    out_dtype=jnp.bfloat16, tm_target=256, tk_target=512):
    """LayerNorm(residual + (x @ W + b)) — matmul epilogue fusion (N kept whole for the norm)."""
    M, K = x.shape
    N = w.shape[1]
    tm = _pick_tile(M, tm_target, 16, min_blocks=2)
    tk = _pick_tile(K, tk_target, 128)
    grid = (M // tm, K // tk)
    return pl.pallas_call(
        functools.partial(_linear_add_norm_kernel, eps=eps),
        out_shape=jax.ShapeDtypeStruct((M, N), out_dtype),
        grid=grid,
        in_specs=[
            pl.BlockSpec((tm, tk), lambda i, k: (i, k)),
            pl.BlockSpec((tk, N), lambda i, k: (k, 0)),
            pl.BlockSpec((1, N), lambda i, k: (0, 0)),
            pl.BlockSpec((tm, N), lambda i, k: (i, 0)),
            pl.BlockSpec((1, N), lambda i, k: (0, 0)),
            pl.BlockSpec((1, N), lambda i, k: (0, 0)),
        ],
        out_specs=pl.BlockSpec((tm, N), lambda i, k: (i, 0)),
        scratch_shapes=[pltpu.VMEM((tm, N), jnp.float32)],
        compiler_params=pltpu.CompilerParams(
            dimension_semantics=("parallel", "arbitrary"),
            vmem_limit_bytes=_vmem_limit_bytes()),
    )(x.astype(jnp.bfloat16), w.astype(jnp.bfloat16),
      b.reshape(1, N).astype(jnp.float32),
      residual.astype(jnp.bfloat16),
      gamma.reshape(1, N).astype(jnp.float32),
      beta.reshape(1, N).astype(jnp.float32))


# ------------------------------------------------ fused FFN + residual + LayerNorm kernel
def _ffn_add_norm_kernel(x_ref, w1_ref, b1_ref, w2_ref, b2_ref, r_ref, g_ref,
                         be_ref, o_ref, acc_ref, *, eps):
    f = pl.program_id(1)

    @pl.when(f == 0)
    def _():
        acc_ref[...] = jnp.zeros_like(acc_ref)

    h = jnp.dot(x_ref[...].astype(jnp.bfloat16), w1_ref[...],
                preferred_element_type=jnp.float32)
    h = jnp.maximum(h + b1_ref[...], 0.0)                      # bias + ReLU (f32, VMEM only)
    acc_ref[...] += jnp.dot(h.astype(jnp.bfloat16), w2_ref[...],
                            preferred_element_type=jnp.float32)

    @pl.when(f == pl.num_programs(1) - 1)
    def _():
        z = r_ref[...].astype(jnp.float32) + acc_ref[...] + b2_ref[...]
        mu = jnp.mean(z, axis=-1, keepdims=True)
        var = jnp.mean(jnp.square(z - mu), axis=-1, keepdims=True)
        z_hat = (z - mu) * jax.lax.rsqrt(var + eps)
        o_ref[...] = (g_ref[...] * z_hat + be_ref[...]).astype(o_ref.dtype)


def ffn_add_norm(x, w1, b1, w2, b2, residual, gamma, beta, *, eps=1e-6,
                 out_dtype=jnp.float32, tm_target=256, tff_target=512):
    """LayerNorm(residual + (ReLU(x @ W1 + b1) @ W2 + b2)).

    The (M, d_ff) intermediate is produced tile-by-tile over a d_ff 'arbitrary' grid axis
    and immediately consumed by the W2 accumulation — it never round-trips through HBM."""
    M, D = x.shape
    F = w1.shape[1]
    tm = _pick_tile(M, tm_target, 16, min_blocks=2)
    tf = _pick_tile(F, tff_target, 128)
    grid = (M // tm, F // tf)
    return pl.pallas_call(
        functools.partial(_ffn_add_norm_kernel, eps=eps),
        out_shape=jax.ShapeDtypeStruct((M, D), out_dtype),
        grid=grid,
        in_specs=[
            pl.BlockSpec((tm, D), lambda i, f: (i, 0)),
            pl.BlockSpec((D, tf), lambda i, f: (0, f)),
            pl.BlockSpec((1, tf), lambda i, f: (0, f)),
            pl.BlockSpec((tf, D), lambda i, f: (f, 0)),
            pl.BlockSpec((1, D), lambda i, f: (0, 0)),
            pl.BlockSpec((tm, D), lambda i, f: (i, 0)),
            pl.BlockSpec((1, D), lambda i, f: (0, 0)),
            pl.BlockSpec((1, D), lambda i, f: (0, 0)),
        ],
        out_specs=pl.BlockSpec((tm, D), lambda i, f: (i, 0)),
        scratch_shapes=[pltpu.VMEM((tm, D), jnp.float32)],
        compiler_params=pltpu.CompilerParams(
            dimension_semantics=("parallel", "arbitrary"),
            vmem_limit_bytes=_vmem_limit_bytes()),
    )(x.astype(jnp.bfloat16), w1.astype(jnp.bfloat16),
      b1.reshape(1, F).astype(jnp.float32),
      w2.astype(jnp.bfloat16), b2.reshape(1, D).astype(jnp.float32),
      residual.astype(jnp.bfloat16),
      gamma.reshape(1, D).astype(jnp.float32),
      beta.reshape(1, D).astype(jnp.float32))


# --------------------------------------------------------- flash-style attention kernel
def _mha_kernel(q_ref, k_ref, v_ref, m_ref, o_ref, m_sc, l_sc, acc_sc, *,
                hpb, d_k, scale, q_c0, k_c0, v_c0):
    ki = pl.program_id(3)

    @pl.when(ki == 0)
    def _():
        m_sc[...] = jnp.full_like(m_sc, -jnp.inf)
        l_sc[...] = jnp.zeros_like(l_sc)
        acc_sc[...] = jnp.zeros_like(acc_sc)

    q = q_ref[0]                         # (tq, q_width) bf16
    k = k_ref[0]                         # (tk, k_width) bf16
    v = v_ref[0]                         # (tk, v_width) bf16
    msk = m_ref[0]                       # (1 | tq, tk)  f32

    for h in range(hpb):                 # static unroll over heads in this block
        qh = q[:, q_c0 + h * d_k:q_c0 + (h + 1) * d_k]
        kh = k[:, k_c0 + h * d_k:k_c0 + (h + 1) * d_k]
        vh = v[:, v_c0 + h * d_k:v_c0 + (h + 1) * d_k]
        # scores (tq, tk): contract over d_k (no explicit transpose of K needed)
        s = jax.lax.dot_general(qh, kh, (((1,), (1,)), ((), ())),
                                preferred_element_type=jnp.float32) * scale
        s = jnp.where(msk == 0.0, -1e9, s)          # mask broadcasts over rows when 1-row
        # ---- online softmax update (f32 state in VMEM scratch) ----
        m_prev = m_sc[h]
        m_new = jnp.maximum(m_prev, jnp.max(s, axis=-1, keepdims=True))
        alpha = jnp.exp(m_prev - m_new)
        p = jnp.exp(s - m_new)
        l_sc[h] = alpha * l_sc[h] + jnp.sum(p, axis=-1, keepdims=True)
        acc_sc[h] = alpha * acc_sc[h] + jnp.dot(p.astype(vh.dtype), vh,
                                                preferred_element_type=jnp.float32)
        m_sc[h] = m_new

    @pl.when(ki == pl.num_programs(3) - 1)
    def _():
        if d_k % 128 == 0:
            # lane-aligned heads: direct per-head stores (no concat copy)
            for h in range(hpb):
                o_ref[0, :, h * d_k:(h + 1) * d_k] = (
                    acc_sc[h] * pl.reciprocal(l_sc[h], approx=True)).astype(o_ref.dtype)
        else:
            # small d_k: keep a single lane-dense store
            outs = [(acc_sc[h] * pl.reciprocal(l_sc[h], approx=True)).astype(o_ref.dtype)
                    for h in range(hpb)]
            o_ref[0] = jnp.concatenate(outs, axis=-1)


def multi_head_attention(q_src, k_src, v_src, mask, heads, d_k, *,
                         q_off=0, k_off=0, v_off=0, tq_target=256, tk_target=512):
    """Flash-style multi-head attention that reads Q/K/V panels directly out of (possibly
    fused) projection tensors.

    q_src: (B, Sq, *), k_src/v_src: (B, Sk, *); *_off = column of the first head inside the
    corresponding tensor (so the fused QKV / KV projections are sliced for free).
    mask: (B, 1|Sq, Sk), 0 = masked.  Returns (B, Sq, heads*d_k) bf16."""
    B, Sq, _ = q_src.shape
    Sk = k_src.shape[1]
    Sm = mask.shape[1]
    assert Sm in (1, Sq)
    D = heads * d_k
    hpb = _heads_per_block(heads, d_k)
    W = hpb * d_k
    n_hb = heads // hpb
    aligned = (W % 128 == 0)             # head-panel width can be sliced by the BlockSpec
    assert aligned or n_hb == 1

    tq = _pick_tile(Sq, tq_target, 16)
    tk = _pick_tile(Sk, tk_target, 128)  # tk is the mask's lane dim -> 128-aligned or full

    if aligned:
        q_b0, k_b0, v_b0 = q_off // W, k_off // W, v_off // W
        q_c0 = k_c0 = v_c0 = 0
        q_spec = pl.BlockSpec((1, tq, W), lambda b, h, qi, ki: (b, qi, q_b0 + h))
        k_spec = pl.BlockSpec((1, tk, W), lambda b, h, qi, ki: (b, ki, k_b0 + h))
        v_spec = pl.BlockSpec((1, tk, W), lambda b, h, qi, ki: (b, ki, v_b0 + h))
    else:
        # small-D fallback: read the full fused width (legal block) and slice heads with
        # static column offsets inside the kernel.
        q_c0, k_c0, v_c0 = q_off, k_off, v_off
        q_spec = pl.BlockSpec((1, tq, q_src.shape[-1]), lambda b, h, qi, ki: (b, qi, 0))
        k_spec = pl.BlockSpec((1, tk, k_src.shape[-1]), lambda b, h, qi, ki: (b, ki, 0))
        v_spec = pl.BlockSpec((1, tk, v_src.shape[-1]), lambda b, h, qi, ki: (b, ki, 0))

    if Sm == 1:
        m_spec = pl.BlockSpec((1, 1, tk), lambda b, h, qi, ki: (b, 0, ki))
    else:
        m_spec = pl.BlockSpec((1, tq, tk), lambda b, h, qi, ki: (b, qi, ki))

    grid = (B, n_hb, Sq // tq, Sk // tk)
    return pl.pallas_call(
        functools.partial(_mha_kernel, hpb=hpb, d_k=d_k, scale=1.0 / math.sqrt(d_k),
                          q_c0=q_c0, k_c0=k_c0, v_c0=v_c0),
        out_shape=jax.ShapeDtypeStruct((B, Sq, D), jnp.bfloat16),
        grid=grid,
        in_specs=[q_spec, k_spec, v_spec, m_spec],
        out_specs=pl.BlockSpec((1, tq, W), lambda b, h, qi, ki: (b, qi, h)),
        scratch_shapes=[pltpu.VMEM((hpb, tq, 1), jnp.float32),    # running max
                        pltpu.VMEM((hpb, tq, 1), jnp.float32),    # running denom
                        pltpu.VMEM((hpb, tq, d_k), jnp.float32)], # running numerator
        compiler_params=pltpu.CompilerParams(
            dimension_semantics=("parallel", "parallel", "parallel", "arbitrary"),
            vmem_limit_bytes=_vmem_limit_bytes()),
    )(q_src.astype(jnp.bfloat16), k_src.astype(jnp.bfloat16),
      v_src.astype(jnp.bfloat16), mask.astype(jnp.float32))


# --------------------------------------------------------------------------- decoder layer
def single_decoder_layer(params, y, enc, src_mask, trg_mask, heads):
    """Forward pass of SingleDecoderLayer (dropout = identity / eval semantics)."""
    p = params
    B, St, D = y.shape
    Ss = enc.shape[1]
    d_k = D // heads
    y2d = y.reshape(B * St, D).astype(jnp.bfloat16)       # bf16 activation streaming
    enc2d = enc.reshape(B * Ss, D).astype(jnp.bfloat16)

    # ---- masked self-attention + add & norm1 ----
    qkv = linear(y2d, p["w_qkv1"], p["b_qkv1"]).reshape(B, St, 3 * D)    # fused QKV (bf16)
    attn1 = multi_head_attention(qkv, qkv, qkv, trg_mask, heads, d_k,
                                 q_off=0, k_off=D, v_off=2 * D)          # (B, St, D) bf16
    x = linear_add_norm(attn1.reshape(B * St, D), p["w_o1"], p["b_o1"],
                        y2d, p["g1"], p["be1"])                           # (B*St, D) bf16

    # ---- cross-attention over the encoder output + add & norm2 ----
    q2 = linear(x, p["w_q2"], p["b_q2"]).reshape(B, St, D)
    kv = linear(enc2d, p["w_kv2"], p["b_kv2"]).reshape(B, Ss, 2 * D)      # fused KV (bf16)
    attn2 = multi_head_attention(q2, kv, kv, src_mask, heads, d_k,
                                 q_off=0, k_off=0, v_off=D)
    x2 = linear_add_norm(attn2.reshape(B * St, D), p["w_o2"], p["b_o2"],
                         x, p["g2"], p["be2"])                            # (B*St, D) bf16

    # ---- fused feed-forward + add & norm3 (d_ff intermediate stays in VMEM) ----
    out = ffn_add_norm(x2, p["ff_w1"], p["ff_b1"], p["ff_w2"], p["ff_b2"],
                       x2, p["g3"], p["be3"])                             # (B*St, D) f32
    return out.reshape(B, St, D)


# --------------------------------------------------------------------------- params
def init_params(key, d_model, heads, d_ff=2048):
    D = d_model
    ks = iter(jax.random.split(key, 8))

    def w(shape, fan_in):
        bound = 1.0 / math.sqrt(fan_in)
        return jax.random.uniform(next(ks), shape, jnp.float32,
                                  -bound, bound).astype(jnp.bfloat16)

    def zeros(n):
        return jnp.zeros((n,), jnp.float32)

    return {
        # self-attention: fused QKV weight + output projection
        "w_qkv1": w((D, 3 * D), D), "b_qkv1": zeros(3 * D),
        "w_o1": w((D, D), D), "b_o1": zeros(D),
        # cross-attention: Q on the decoder stream, fused KV on the encoder output
        "w_q2": w((D, D), D), "b_q2": zeros(D),
        "w_kv2": w((D, 2 * D), D), "b_kv2": zeros(2 * D),
        "w_o2": w((D, D), D), "b_o2": zeros(D),
        # feed-forward
        "ff_w1": w((D, d_ff), D), "ff_b1": zeros(d_ff),
        "ff_w2": w((d_ff, D), d_ff), "ff_b2": zeros(D),
        # layer norms (eps = 1e-6 as in the reference Norm module)
        "g1": jnp.ones((D,), jnp.float32), "be1": zeros(D),
        "g2": jnp.ones((D,), jnp.float32), "be2": zeros(D),
        "g3": jnp.ones((D,), jnp.float32), "be3": zeros(D),
    }


# --------------------------------------------------------------------------- main
if __name__ == "__main__":
    d_model, heads, d_ff = 32, 4, 2048
    B, S_trg, S_src = 2, 8, 10

    key = jax.random.PRNGKey(0)
    kp, ky, ke = jax.random.split(key, 3)

    params = init_params(kp, d_model, heads, d_ff)

    y = jax.random.normal(ky, (B, S_trg, d_model), jnp.float32)
    enc = jax.random.normal(ke, (B, S_src, d_model), jnp.float32)

    # source mask: all-ones (B, 1, S_src); target mask: causal (B, S_trg, S_trg)
    src_mask = jnp.ones((B, 1, S_src), jnp.float32)
    trg_mask = jnp.broadcast_to(
        jnp.tril(jnp.ones((S_trg, S_trg), jnp.float32))[None], (B, S_trg, S_trg))

    fwd = jax.jit(functools.partial(single_decoder_layer, heads=heads))
    out = fwd(params, y, enc, src_mask, trg_mask)
    out = jax.block_until_ready(out)

    assert out.shape == (B, S_trg, d_model)
    assert bool(jnp.all(jnp.isfinite(out)))
    print("KERNEL_OK")
</pallas_src>

<mosaic_0001>
module attributes {stable_mosaic.version = 11 : i64} {
  func.func @_linear_add_norm_kernel(%arg0: i32, %arg1: i32, %arg2: memref<16x32xbf16, #tpu.memory_space<vmem>>, %arg3: memref<32x32xbf16, #tpu.memory_space<vmem>>, %arg4: memref<1x32xf32, #tpu.memory_space<vmem>>, %arg5: memref<16x32xbf16, #tpu.memory_space<vmem>>, %arg6: memref<1x32xf32, #tpu.memory_space<vmem>>, %arg7: memref<1x32xf32, #tpu.memory_space<vmem>>, %arg8: memref<16x32xbf16, #tpu.memory_space<vmem>>, %arg9: memref<16x32xf32, #tpu.memory_space<vmem>>) attributes {dimension_semantics = [#tpu.dimension_semantics<parallel>, #tpu.dimension_semantics<arbitrary>], iteration_bounds = array<i64: 1, 1>, scalar_prefetch = 0 : i64, scratch_operands = 1 : i64, tpu.core_type = #tpu.core_type<tc>, window_params = [{transform_indices = @transform_0, window_bounds = array<i64: 16, 32>}, {transform_indices = @transform_1, window_bounds = array<i64: 32, 32>}, {pipeline_mode = #tpu.pipeline_mode<synchronous>, transform_indices = @transform_2, window_bounds = array<i64: 1, 32>}, {transform_indices = @transform_3, window_bounds = array<i64: 16, 32>}, {pipeline_mode = #tpu.pipeline_mode<synchronous>, transform_indices = @transform_4, window_bounds = array<i64: 1, 32>}, {pipeline_mode = #tpu.pipeline_mode<synchronous>, transform_indices = @transform_5, window_bounds = array<i64: 1, 32>}, {transform_indices = @transform_6, window_bounds = array<i64: 16, 32>}]} {
    %c0_i32 = arith.constant 0 : i32
    %0 = arith.cmpi eq, %arg1, %c0_i32 : i32
    %1 = arith.extui %0 : i1 to i32
    %c0_i32_0 = arith.constant 0 : i32
    %2 = arith.cmpi ne, %1, %c0_i32_0 : i32
    scf.if %2 {
      %cst_10 = arith.constant 0.000000e+00 : f32
      %12 = vector.broadcast %cst_10 : f32 to vector<16x32xf32>
      %c0_11 = arith.constant 0 : index
      %c0_12 = arith.constant 0 : index
      %13 = vector.load %arg9[%c0_11, %c0_12] : memref<16x32xf32, #tpu.memory_space<vmem>>, vector<16x32xf32>
      tpu.vector_store %arg9[%c0_11, %c0_12], %12 {strides = array<i32>} : memref<16x32xf32, #tpu.memory_space<vmem>>, vector<16x32xf32>,
    } else {
    }
    %c0 = arith.constant 0 : index
    %c0_1 = arith.constant 0 : index
    %3 = vector.load %arg9[%c0, %c0_1] : memref<16x32xf32, #tpu.memory_space<vmem>>, vector<16x32xf32>
    %c0_2 = arith.constant 0 : index
    %c0_3 = arith.constant 0 : index
    %4 = vector.load %arg2[%c0_2, %c0_3] : memref<16x32xbf16, #tpu.memory_space<vmem>>, vector<16x32xbf16>
    %c0_4 = arith.constant 0 : index
    %c0_5 = arith.constant 0 : index
    %5 = vector.load %arg3[%c0_4, %c0_5] : memref<32x32xbf16, #tpu.memory_space<vmem>>, vector<32x32xbf16>
    %cst = arith.constant dense<0.000000e+00> : vector<16x32xf32>
    %6 = tpu.matmul %4, %5, %cst {dimension_numbers = #tpu.dot_dimension_numbers<[1], [0], [0], [1], [0, 0, 1, 1], [], []>} : vector<16x32xbf16>, vector<32x32xbf16>, vector<16x32xf32> -> vector<16x32xf32>
    %7 = arith.addf %3, %6 : vector<16x32xf32>
    %c0_6 = arith.constant 0 : index
    %c0_7 = arith.constant 0 : index
    %8 = vector.load %arg9[%c0_6, %c0_7] : memref<16x32xf32, #tpu.memory_space<vmem>>, vector<16x32xf32>
    tpu.vector_store %arg9[%c0_6, %c0_7], %7 {strides = array<i32>} : memref<16x32xf32, #tpu.memory_space<vmem>>, vector<16x32xf32>,
    %c0_i32_8 = arith.constant 0 : i32
    %9 = arith.cmpi eq, %arg1, %c0_i32_8 : i32
    %10 = arith.extui %9 : i1 to i32
    %c0_i32_9 = arith.constant 0 : i32
    %11 = arith.cmpi ne, %10, %c0_i32_9 : i32
    scf.if %11 {
      %c0_10 = arith.constant 0 : index
      %c0_11 = arith.constant 0 : index
      %12 = vector.load %arg5[%c0_10, %c0_11] : memref<16x32xbf16, #tpu.memory_space<vmem>>, vector<16x32xbf16>
      %13 = arith.extf %12 : vector<16x32xbf16> to vector<16x32xf32>
      %c0_12 = arith.constant 0 : index
      %c0_13 = arith.constant 0 : index
      %14 = vector.load %arg9[%c0_12, %c0_13] : memref<16x32xf32, #tpu.memory_space<vmem>>, vector<16x32xf32>
      %15 = arith.addf %13, %14 : vector<16x32xf32>
      %c0_14 = arith.constant 0 : index
      %c0_15 = arith.constant 0 : index
      %16 = vector.load %arg4[%c0_14, %c0_15] : memref<1x32xf32, #tpu.memory_space<vmem>>, vector<1x32xf32>
      %17 = vector.broadcast %16 : vector<1x32xf32> to vector<16x32xf32>
      %18 = arith.addf %15, %17 : vector<16x32xf32>
      %cst_16 = arith.constant dense<0.000000e+00> : vector<16xf32>
      %19 = vector.multi_reduction <add>, %18, %cst_16 [1] : vector<16x32xf32> to vector<16xf32>
      %20 = vector.shape_cast %19 : vector<16xf32> to vector<16x1xf32>
      %cst_17 = arith.constant 3.200000e+01 : f32
      %21 = vector.broadcast %cst_17 : f32 to vector<16x1xf32>
      %22 = arith.divf %20, %21 : vector<16x1xf32>
      %23 = vector.broadcast %22 : vector<16x1xf32> to vector<16x32xf32>
      %24 = arith.subf %18, %23 : vector<16x32xf32>
      %25 = arith.mulf %24, %24 : vector<16x32xf32>
      %cst_18 = arith.constant dense<0.000000e+00> : vector<16xf32>
      %26 = vector.multi_reduction <add>, %25, %cst_18 [1] : vector<16x32xf32> to vector<16xf32>
      %27 = vector.shape_cast %26 : vector<16xf32> to vector<16x1xf32>
      %cst_19 = arith.constant 3.200000e+01 : f32
      %28 = vector.broadcast %cst_19 : f32 to vector<16x1xf32>
      %29 = arith.divf %27, %28 : vector<16x1xf32>
      %30 = vector.broadcast %22 : vector<16x1xf32> to vector<16x32xf32>
      %31 = arith.subf %18, %30 : vector<16x32xf32>
      %cst_20 = arith.constant 9.99999997E-7 : f32
      %32 = vector.broadcast %cst_20 : f32 to vector<16x1xf32>
      %33 = arith.addf %29, %32 : vector<16x1xf32>
      %34 = math.rsqrt %33 : vector<16x1xf32>
      %35 = vector.broadcast %34 : vector<16x1xf32> to vector<16x32xf32>
      %36 = arith.mulf %31, %35 : vector<16x32xf32>
      %c0_21 = arith.constant 0 : index
      %c0_22 = arith.constant 0 : index
      %37 = vector.load %arg6[%c0_21, %c0_22] : memref<1x32xf32, #tpu.memory_space<vmem>>, vector<1x32xf32>
      %38 = vector.broadcast %37 : vector<1x32xf32> to vector<16x32xf32>
      %39 = arith.mulf %38, %36 : vector<16x32xf32>
      %c0_23 = arith.constant 0 : index
      %c0_24 = arith.constant 0 : index
      %40 = vector.load %arg7[%c0_23, %c0_24] : memref<1x32xf32, #tpu.memory_space<vmem>>, vector<1x32xf32>
      %41 = vector.broadcast %40 : vector<1x32xf32> to vector<16x32xf32>
      %42 = arith.addf %39, %41 : vector<16x32xf32>
      %43 = arith.truncf %42 : vector<16x32xf32> to vector<16x32xbf16>
      %c0_25 = arith.constant 0 : index
      %c0_26 = arith.constant 0 : index
      %44 = vector.load %arg8[%c0_25, %c0_26] : memref<16x32xbf16, #tpu.memory_space<vmem>>, vector<16x32xbf16>
      tpu.vector_store %arg8[%c0_25, %c0_26], %43 {strides = array<i32>} : memref<16x32xbf16, #tpu.memory_space<vmem>>, vector<16x32xbf16>,
    } else {
    }
    return
  }
  func.func @transform_0(%arg0: i32, %arg1: i32) -> (i32, i32) {
    %c0_i32 = arith.constant 0 : i32
    return %arg0, %arg1 : i32, i32
  }
  func.func @transform_1(%arg0: i32, %arg1: i32) -> (i32, i32) {
    %c0_i32 = arith.constant 0 : i32
    %c0_i32_0 = arith.constant 0 : i32
    return %arg1, %c0_i32 : i32, i32
  }
  func.func @transform_2(%arg0: i32, %arg1: i32) -> (i32, i32) {
    %c0_i32 = arith.constant 0 : i32
    %c0_i32_0 = arith.constant 0 : i32
    %c0_i32_1 = arith.constant 0 : i32
    return %c0_i32, %c0_i32_0 : i32, i32
  }
  func.func @transform_3(%arg0: i32, %arg1: i32) -> (i32, i32) {
    %c0_i32 = arith.constant 0 : i32
    %c0_i32_0 = arith.constant 0 : i32
    return %arg0, %c0_i32 : i32, i32
  }
  func.func @transform_4(%arg0: i32, %arg1: i32) -> (i32, i32) {
    %c0_i32 = arith.constant 0 : i32
    %c0_i32_0 = arith.constant 0 : i32
    %c0_i32_1 = arith.constant 0 : i32
    return %c0_i32, %c0_i32_0 : i32, i32
  }
  func.func @transform_5(%arg0: i32, %arg1: i32) -> (i32, i32) {
    %c0_i32 = arith.constant 0 : i32
    %c0_i32_0 = arith.constant 0 : i32
    %c0_i32_1 = arith.constant 0 : i32
    return %c0_i32, %c0_i32_0 : i32, i32
  }
  func.func @transform_6(%arg0: i32, %arg1: i32) -> (i32, i32) {
    %c0_i32 = arith.constant 0 : i32
    %c0_i32_0 = arith.constant 0 : i32
    return %arg0, %c0_i32 : i32, i32
  }
}

module attributes {stable_mosaic.version = 11 : i64} {
  func.func @_mha_kernel(%arg0: i32, %arg1: i32, %arg2: i32, %arg3: i32, %arg4: memref<1x8x96xbf16, #tpu.memory_space<vmem>>, %arg5: memref<1x8x96xbf16, #tpu.memory_space<vmem>>, %arg6: memref<1x8x96xbf16, #tpu.memory_space<vmem>>, %arg7: memref<1x8x8xf32, #tpu.memory_space<vmem>>, %arg8: memref<1x8x32xbf16, #tpu.memory_space<vmem>>, %arg9: memref<4x8x1xf32, #tpu.memory_space<vmem>>, %arg10: memref<4x8x1xf32, #tpu.memory_space<vmem>>, %arg11: memref<4x8x8xf32, #tpu.memory_space<vmem>>) attributes {dimension_semantics = [#tpu.dimension_semantics<parallel>, #tpu.dimension_semantics<parallel>, #tpu.dimension_semantics<parallel>, #tpu.dimension_semantics<arbitrary>], iteration_bounds = array<i64: 2, 1, 1, 1>, scalar_prefetch = 0 : i64, scratch_operands = 3 : i64, tpu.core_type = #tpu.core_type<tc>, window_params = [{transform_indices = @transform_0, window_bounds = array<i64: 1, 8, 96>}, {transform_indices = @transform_1, window_bounds = array<i64: 1, 8, 96>}, {transform_indices = @transform_2, window_bounds = array<i64: 1, 8, 96>}, {transform_indices = @transform_3, window_bounds = array<i64: 1, 8, 8>}, {transform_indices = @transform_4, window_bounds = array<i64: 1, 8, 32>}]} {
    %c0_i32 = arith.constant 0 : i32
    %0 = arith.cmpi eq, %arg3, %c0_i32 : i32
    %1 = arith.extui %0 : i1 to i32
    %c0_i32_0 = arith.constant 0 : i32
    %2 = arith.cmpi ne, %1, %c0_i32_0 : i32
    scf.if %2 {
      %cst_110 = arith.constant 0xFF800000 : f32
      %182 = vector.broadcast %cst_110 : f32 to vector<4x8x1xf32>
      %c0_111 = arith.constant 0 : index
      %c0_112 = arith.constant 0 : index
      %c0_113 = arith.constant 0 : index
      %183 = vector.load %arg9[%c0_111, %c0_112, %c0_113] : memref<4x8x1xf32, #tpu.memory_space<vmem>>, vector<4x8x1xf32>
      tpu.vector_store %arg9[%c0_111, %c0_112, %c0_113], %182 {strides = array<i32>} : memref<4x8x1xf32, #tpu.memory_space<vmem>>, vector<4x8x1xf32>,
      %cst_114 = arith.constant 0.000000e+00 : f32
      %184 = vector.broadcast %cst_114 : f32 to vector<4x8x1xf32>
      %c0_115 = arith.constant 0 : index
      %c0_116 = arith.constant 0 : index
      %c0_117 = arith.constant 0 : index
      %185 = vector.load %arg10[%c0_115, %c0_116, %c0_117] : memref<4x8x1xf32, #tpu.memory_space<vmem>>, vector<4x8x1xf32>
      tpu.vector_store %arg10[%c0_115, %c0_116, %c0_117], %184 {strides = array<i32>} : memref<4x8x1xf32, #tpu.memory_space<vmem>>, vector<4x8x1xf32>,
      %cst_118 = arith.constant 0.000000e+00 : f32
      %186 = vector.broadcast %cst_118 : f32 to vector<4x8x8xf32>
      %c0_119 = arith.constant 0 : index
      %c0_120 = arith.constant 0 : index
      %c0_121 = arith.constant 0 : index
      %187 = vector.load %arg11[%c0_119, %c0_120, %c0_121] : memref<4x8x8xf32, #tpu.memory_space<vmem>>, vector<4x8x8xf32>
      tpu.vector_store %arg11[%c0_119, %c0_120, %c0_121], %186 {strides = array<i32>} : memref<4x8x8xf32, #tpu.memory_space<vmem>>, vector<4x8x8xf32>,
    } else {
    }
    %c0 = arith.constant 0 : index
    %c0_1 = arith.constant 0 : index
    %c0_2 = arith.constant 0 : index
    %3 = vector.load %arg4[%c0, %c0_1, %c0_2] : memref<1x8x96xbf16, #tpu.memory_space<vmem>>, vector<1x8x96xbf16>
    %4 = vector.shape_cast %3 : vector<1x8x96xbf16> to vector<8x96xbf16>
    %c0_3 = arith.constant 0 : index
    %c0_4 = arith.constant 0 : index
    %c0_5 = arith.constant 0 : index
    %5 = vector.load %arg5[%c0_3, %c0_4, %c0_5] : memref<1x8x96xbf16, #tpu.memory_space<vmem>>, vector<1x8x96xbf16>
    %6 = vector.shape_cast %5 : vector<1x8x96xbf16> to vector<8x96xbf16>
    %c0_6 = arith.constant 0 : index
    %c0_7 = arith.constant 0 : index
    %c0_8 = arith.constant 0 : index
    %7 = vector.load %arg6[%c0_6, %c0_7, %c0_8] : memref<1x8x96xbf16, #tpu.memory_space<vmem>>, vector<1x8x96xbf16>
    %8 = vector.shape_cast %7 : vector<1x8x96xbf16> to vector<8x96xbf16>
    %c0_9 = arith.constant 0 : index
    %c0_10 = arith.constant 0 : index
    %c0_11 = arith.constant 0 : index
    %9 = vector.load %arg7[%c0_9, %c0_10, %c0_11] : memref<1x8x8xf32, #tpu.memory_space<vmem>>, vector<1x8x8xf32>
    %10 = vector.shape_cast %9 : vector<1x8x8xf32> to vector<8x8xf32>
    %11 = vector.extract_strided_slice %4 {offsets = [0, 0], sizes = [8, 8], strides = [1, 1]} : vector<8x96xbf16> to vector<8x8xbf16>
    %12 = vector.extract_strided_slice %6 {offsets = [0, 32], sizes = [8, 8], strides = [1, 1]} : vector<8x96xbf16> to vector<8x8xbf16>
    %13 = vector.extract_strided_slice %8 {offsets = [0, 64], sizes = [8, 8], strides = [1, 1]} : vector<8x96xbf16> to vector<8x8xbf16>
    %cst = arith.constant dense<0.000000e+00> : vector<8x8xf32>
    %14 = tpu.matmul %11, %12, %cst {dimension_numbers = #tpu.dot_dimension_numbers<[1], [1], [0], [0], [0, 0, 1, 0], [], []>} : vector<8x8xbf16>, vector<8x8xbf16>, vector<8x8xf32> -> vector<8x8xf32>
    %cst_12 = arith.constant 0.353553385 : f32
    %15 = vector.broadcast %cst_12 : f32 to vector<8x8xf32>
    %16 = arith.mulf %14, %15 : vector<8x8xf32>
    %cst_13 = arith.constant 0.000000e+00 : f32
    %17 = vector.broadcast %cst_13 : f32 to vector<8x8xf32>
    %18 = arith.cmpf oeq, %10, %17 : vector<8x8xf32>
    %cst_14 = arith.constant -1.000000e+09 : f32
    %19 = vector.broadcast %cst_14 : f32 to vector<8x8xf32>
    %20 = arith.select %18, %19, %16 : vector<8x8xi1>, vector<8x8xf32>
    %c0_15 = arith.constant 0 : index
    %c0_16 = arith.constant 0 : index
    %c0_17 = arith.constant 0 : index
    %21 = vector.load %arg9[%c0_15, %c0_16, %c0_17] : memref<4x8x1xf32, #tpu.memory_space<vmem>>, vector<1x8x1xf32>
    %22 = vector.shape_cast %21 : vector<1x8x1xf32> to vector<8x1xf32>
    %cst_18 = arith.constant dense<0xFF800000> : vector<8xf32>
    %23 = vector.multi_reduction <maximumf>, %20, %cst_18 [1] : vector<8x8xf32> to vector<8xf32>
    %24 = vector.shape_cast %23 : vector<8xf32> to vector<8x1xf32>
    %25 = arith.maximumf %22, %24 : vector<8x1xf32>
    %26 = arith.subf %22, %25 : vector<8x1xf32>
    %27 = math.exp %26 : vector<8x1xf32>
    %28 = vector.broadcast %25 : vector<8x1xf32> to vector<8x8xf32>
    %29 = arith.subf %20, %28 : vector<8x8xf32>
    %30 = math.exp %29 : vector<8x8xf32>
    %c0_19 = arith.constant 0 : index
    %c0_20 = arith.constant 0 : index
    %c0_21 = arith.constant 0 : index
    %31 = vector.load %arg10[%c0_19, %c0_20, %c0_21] : memref<4x8x1xf32, #tpu.memory_space<vmem>>, vector<1x8x1xf32>
    %32 = vector.shape_cast %31 : vector<1x8x1xf32> to vector<8x1xf32>
    %33 = arith.mulf %27, %32 : vector<8x1xf32>
    %cst_22 = arith.constant dense<0.000000e+00> : vector<8xf32>
    %34 = vector.multi_reduction <add>, %30, %cst_22 [1] : vector<8x8xf32> to vector<8xf32>
    %35 = vector.shape_cast %34 : vector<8xf32> to vector<8x1xf32>
    %36 = arith.addf %33, %35 : vector<8x1xf32>
    %c0_23 = arith.constant 0 : index
    %c0_24 = arith.constant 0 : index
    %c0_25 = arith.constant 0 : index
    %37 = vector.load %arg10[%c0_23, %c0_24, %c0_25] : memref<4x8x1xf32, #tpu.memory_space<vmem>>, vector<1x8x1xf32>
    %38 = vector.shape_cast %37 : vector<1x8x1xf32> to vector<8x1xf32>
    %39 = vector.shape_cast %36 : vector<8x1xf32> to vector<1x8x1xf32>
    tpu.vector_store %arg10[%c0_23, %c0_24, %c0_25], %39 {strides = array<i32>} : memref<4x8x1xf32, #tpu.memory_space<vmem>>, vector<1x8x1xf32>,
    %c0_26 = arith.constant 0 : index
    %c0_27 = arith.constant 0 : index
    %c0_28 = arith.constant 0 : index
    %40 = vector.load %arg11[%c0_26, %c0_27, %c0_28] : memref<4x8x8xf32, #tpu.memory_space<vmem>>, vector<1x8x8xf32>
    %41 = vector.shape_cast %40 : vector<1x8x8xf32> to vector<8x8xf32>
    %42 = vector.broadcast %27 : vector<8x1xf32> to vector<8x8xf32>
    %43 = arith.mulf %42, %41 : vector<8x8xf32>
    %44 = arith.truncf %30 : vector<8x8xf32> to vector<8x8xbf16>
    %cst_29 = arith.constant dense<0.000000e+00> : vector<8x8xf32>
    %45 = tpu.matmul %44, %13, %cst_29 {dimension_numbers = #tpu.dot_dimension_numbers<[1], [0], [0], [1], [0, 0, 1, 1], [], []>} : vector<8x8xbf16>, vector<8x8xbf16>, vector<8x8xf32> -> vector<8x8xf32>
    %46 = arith.addf %43, %45 : vector<8x8xf32>
    %c0_30 = arith.constant 0 : index
    %c0_31 = arith.constant 0 : index
    %c0_32 = arith.constant 0 : index
    %47 = vector.load %arg11[%c0_30, %c0_31, %c0_32] : memref<4x8x8xf32, #tpu.memory_space<vmem>>, vector<1x8x8xf32>
    %48 = vector.shape_cast %47 : vector<1x8x8xf32> to vector<8x8xf32>
    %49 = vector.shape_cast %46 : vector<8x8xf32> to vector<1x8x8xf32>
    tpu.vector_store %arg11[%c0_30, %c0_31, %c0_32], %49 {strides = array<i32>} : memref<4x8x8xf32, #tpu.memory_space<vmem>>, vector<1x8x8xf32>,
    %c0_33 = arith.constant 0 : index
    %c0_34 = arith.constant 0 : index
    %c0_35 = arith.constant 0 : index
    %50 = vector.load %arg9[%c0_33, %c0_34, %c0_35] : memref<4x8x1xf32, #tpu.memory_space<vmem>>, vector<1x8x1xf32>
    %51 = vector.shape_cast %50 : vector<1x8x1xf32> to vector<8x1xf32>
    %52 = vector.shape_cast %25 : vector<8x1xf32> to vector<1x8x1xf32>
    tpu.vector_store %arg9[%c0_33, %c0_34, %c0_35], %52 {strides = array<i32>} : memref<4x8x1xf32, #tpu.memory_space<vmem>>, vector<1x8x1xf32>,
    %53 = vector.extract_strided_slice %4 {offsets = [0, 8], sizes = [8, 8], strides = [1, 1]} : vector<8x96xbf16> to vector<8x8xbf16>
    %54 = vector.extract_strided_slice %6 {offsets = [0, 40], sizes = [8, 8], strides = [1, 1]} : vector<8x96xbf16> to vector<8x8xbf16>
    %55 = vector.extract_strided_slice %8 {offsets = [0, 72], sizes = [8, 8], strides = [1, 1]} : vector<8x96xbf16> to vector<8x8xbf16>
    %cst_36 = arith.constant dense<0.000000e+00> : vector<8x8xf32>
    %56 = tpu.matmul %53, %54, %cst_36 {dimension_numbers = #tpu.dot_dimension_numbers<[1], [1], [0], [0], [0, 0, 1, 0], [], []>} : vector<8x8xbf16>, vector<8x8xbf16>, vector<8x8xf32> -> vector<8x8xf32>
    %cst_37 = arith.constant 0.353553385 : f32
    %57 = vector.broadcast %cst_37 : f32 to vector<8x8xf32>
    %58 = arith.mulf %56, %57 : vector<8x8xf32>
    %cst_38 = arith.constant 0.000000e+00 : f32
    %59 = vector.broadcast %cst_38 : f32 to vector<8x8xf32>
    %60 = arith.cmpf oeq, %10, %59 : vector<8x8xf32>
    %cst_39 = arith.constant -1.000000e+09 : f32
    %61 = vector.broadcast %cst_39 : f32 to vector<8x8xf32>
    %62 = arith.select %60, %61, %58 : vector<8x8xi1>, vector<8x8xf32>
    %c1 = arith.constant 1 : index
    %c0_40 = arith.constant 0 : index
    %c0_41 = arith.constant 0 : index
    %63 = vector.load %arg9[%c1, %c0_40, %c0_41] : memref<4x8x1xf32, #tpu.memory_space<vmem>>, vector<1x8x1xf32>
    %64 = vector.shape_cast %63 : vector<1x8x1xf32> to vector<8x1xf32>
    %cst_42 = arith.constant dense<0xFF800000> : vector<8xf32>
    %65 = vector.multi_reduction <maximumf>, %62, %cst_42 [1] : vector<8x8xf32> to vector<8xf32>
    %66 = vector.shape_cast %65 : vector<8xf32> to vector<8x1xf32>
    %67 = arith.maximumf %64, %66 : vector<8x1xf32>
    %68 = arith.subf %64, %67 : vector<8x1xf32>
    %69 = math.exp %68 : vector<8x1xf32>
    %70 = vector.broadcast %67 : vector<8x1xf32> to vector<8x8xf32>
    %71 = arith.subf %62, %70 : vector<8x8xf32>
    %72 = math.exp %71 : vector<8x8xf32>
    %c1_43 = arith.constant 1 : index
    %c0_44 = arith.constant 0 : index
    %c0_45 = arith.constant 0 : index
    %73 = vector.load %arg10[%c1_43, %c0_44, %c0_45] : memref<4x8x1xf32, #tpu.memory_space<vmem>>, vector<1x8x1xf32>
    %74 = vector.shape_cast %73 : vector<1x8x1xf32> to vector<8x1xf32>
    %75 = arith.mulf %69, %74 : vector<8x1xf32>
    %cst_46 = arith.constant dense<0.000000e+00> : vector<8xf32>
    %76 = vector.multi_reduction <add>, %72, %cst_46 [1] : vector<8x8xf32> to vector<8xf32>
    %77 = vector.shape_cast %76 : vector<8xf32> to vector<8x1xf32>
    %78 = arith.addf %75, %77 : vector<8x1xf32>
    %c1_47 = arith.constant 1 : index
    %c0_48 = arith.constant 0 : index
    %c0_49 = arith.constant 0 : index
    %79 = vector.load %arg10[%c1_47, %c0_48, %c0_49] : memref<4x8x1xf32, #tpu.memory_space<vmem>>, vector<1x8x1xf32>
    %80 = vector.shape_cast %79 : vector<1x8x1xf32> to vector<8x1xf32>
    %81 = vector.shape_cast %78 : vector<8x1xf32> to vector<1x8x1xf32>
    tpu.vector_store %arg10[%c1_47, %c0_48, %c0_49], %81 {strides = array<i32>} : memref<4x8x1xf32, #tpu.memory_space<vmem>>, vector<1x8x1xf32>,
    %c1_50 = arith.constant 1 : index
    %c0_51 = arith.constant 0 : index
    %c0_52 = arith.constant 0 : index
    %82 = vector.load %arg11[%c1_50, %c0_51, %c0_52] : memref<4x8x8xf32, #tpu.memory_space<vmem>>, vector<1x8x8xf32>
    %83 = vector.shape_cast %82 : vector<1x8x8xf32> to vector<8x8xf32>
    %84 = vector.broadcast %69 : vector<8x1xf32> to vector<8x8xf32>
    %85 = arith.mulf %84, %83 : vector<8x8xf32>
    %86 = arith.truncf %72 : vector<8x8xf32> to vector<8x8xbf16>
    %cst_53 = arith.constant dense<0.000000e+00> : vector<8x8xf32>
    %87 = tpu.matmul %86, %55, %cst_53 {dimension_numbers = #tpu.dot_dimension_numbers<[1], [0], [0], [1], [0, 0, 1, 1], [], []>} : vector<8x8xbf16>, vector<8x8xbf16>, vector<8x8xf32> -> vector<8x8xf32>
    %88 = arith.addf %85, %87 : vector<8x8xf32>
    %c1_54 = arith.constant 1 : index
    %c0_55 = arith.constant 0 : index
    %c0_56 = arith.constant 0 : index
    %89 = vector.load %arg11[%c1_54, %c0_55, %c0_56] : memref<4x8x8xf32, #tpu.memory_space<vmem>>, vector<1x8x8xf32>
    %90 = vector.shape_cast %89 : vector<1x8x8xf32> to vector<8x8xf32>
    %91 = vector.shape_cast %88 : vector<8x8xf32> to vector<1x8x8xf32>
    tpu.vector_store %arg11[%c1_54, %c0_55, %c0_56], %91 {strides = array<i32>} : memref<4x8x8xf32, #tpu.memory_space<vmem>>, vector<1x8x8xf32>,
    %c1_57 = arith.constant 1 : index
    %c0_58 = arith.constant 0 : index
    %c0_59 = arith.constant 0 : index
    %92 = vector.load %arg9[%c1_57, %c0_58, %c0_59] : memref<4x8x1xf32, #tpu.memory_space<vmem>>, vector<1x8x1xf32>
    %93 = vector.shape_cast %92 : vector<1x8x1xf32> to vector<8x1xf32>
    %94 = vector.shape_cast %67 : vector<8x1xf32> to vector<1x8x1xf32>
    tpu.vector_store %arg9[%c1_57, %c0_58, %c0_59], %94 {strides = array<i32>} : memref<4x8x1xf32, #tpu.memory_space<vmem>>, vector<1x8x1xf32>,
    %95 = vector.extract_strided_slice %4 {offsets = [0, 16], sizes = [8, 8], strides = [1, 1]} : vector<8x96xbf16> to vector<8x8xbf16>
    %96 = vector.extract_strided_slice %6 {offsets = [0, 48], sizes = [8, 8], strides = [1, 1]} : vector<8x96xbf16> to vector<8x8xbf16>
    %97 = vector.extract_strided_slice %8 {offsets = [0, 80], sizes = [8, 8], strides = [1, 1]} : vector<8x96xbf16> to vector<8x8xbf16>
    %cst_60 = arith.constant dense<0.000000e+00> : vector<8x8xf32>
    %98 = tpu.matmul %95, %96, %cst_60 {dimension_numbers = #tpu.dot_dimension_numbers<[1], [1], [0], [0], [0, 0, 1, 0], [], []>} : vector<8x8xbf16>, vector<8x8xbf16>, vector<8x8xf32> -> vector<8x8xf32>
    %cst_61 = arith.constant 0.353553385 : f32
    %99 = vector.broadcast %cst_61 : f32 to vector<8x8xf32>
    %100 = arith.mulf %98, %99 : vector<8x8xf32>
    %cst_62 = arith.constant 0.000000e+00 : f32
    %101 = vector.broadcast %cst_62 : f32 to vector<8x8xf32>
    %102 = arith.cmpf oeq, %10, %101 : vector<8x8xf32>
    %cst_63 = arith.constant -1.000000e+09 : f32
    %103 = vector.broadcast %cst_63 : f32 to vector<8x8xf32>
    %104 = arith.select %102, %103, %100 : vector<8x8xi1>, vector<8x8xf32>
    %c2 = arith.constant 2 : index
    %c0_64 = arith.constant 0 : index
    %c0_65 = arith.constant 0 : index
    %105 = vector.load %arg9[%c2, %c0_64, %c0_65] : memref<4x8x1xf32, #tpu.memory_space<vmem>>, vector<1x8x1xf32>
    %106 = vector.shape_cast %105 : vector<1x8x1xf32> to vector<8x1xf32>
    %cst_66 = arith.constant dense<0xFF800000> : vector<8xf32>
    %107 = vector.multi_reduction <maximumf>, %104, %cst_66 [1] : vector<8x8xf32> to vector<8xf32>
    %108 = vector.shape_cast %107 : vector<8xf32> to vector<8x1xf32>
    %109 = arith.maximumf %106, %108 : vector<8x1xf32>
    %110 = arith.subf %106, %109 : vector<8x1xf32>
    %111 = math.exp %110 : vector<8x1xf32>
    %112 = vector.broadcast %109 : vector<8x1xf32> to vector<8x8xf32>
    %113 = arith.subf %104, %112 : vector<8x8xf32>
    %114 = math.exp %113 : vector<8x8xf32>
    %c2_67 = arith.constant 2 : index
    %c0_68 = arith.constant 0 : index
    %c0_69 = arith.constant 0 : index
    %115 = vector.load %arg10[%c2_67, %c0_68, %c0_69] : memref<4x8x1xf32, #tpu.memory_space<vmem>>, vector<1x8x1xf32>
    %116 = vector.shape_cast %115 : vector<1x8x1xf32> to vector<8x1xf32>
    %117 = arith.mulf %111, %116 : vector<8x1xf32>
    %cst_70 = arith.constant dense<0.000000e+00> : vector<8xf32>
    %118 = vector.multi_reduction <add>, %114, %cst_70 [1] : vector<8x8xf32> to vector<8xf32>
    %119 = vector.shape_cast %118 : vector<8xf32> to vector<8x1xf32>
    %120 = arith.addf %117, %119 : vector<8x1xf32>
    %c2_71 = arith.constant 2 : index
    %c0_72 = arith.constant 0 : index
    %c0_73 = arith.constant 0 : index
    %121 = vector.load %arg10[%c2_71, %c0_72, %c0_73] : memref<4x8x1xf32, #tpu.memory_space<vmem>>, vector<1x8x1xf32>
    %122 = vector.shape_cast %121 : vector<1x8x1xf32> to vector<8x1xf32>
    %123 = vector.shape_cast %120 : vector<8x1xf32> to vector<1x8x1xf32>
    tpu.vector_store %arg10[%c2_71, %c0_72, %c0_73], %123 {strides = array<i32>} : memref<4x8x1xf32, #tpu.memory_space<vmem>>, vector<1x8x1xf32>,
    %c2_74 = arith.constant 2 : index
    %c0_75 = arith.constant 0 : index
    %c0_76 = arith.constant 0 : index
    %124 = vector.load %arg11[%c2_74, %c0_75, %c0_76] : memref<4x8x8xf32, #tpu.memory_space<vmem>>, vector<1x8x8xf32>
    %125 = vector.shape_cast %124 : vector<1x8x8xf32> to vector<8x8xf32>
    %126 = vector.broadcast %111 : vector<8x1xf32> to vector<8x8xf32>
    %127 = arith.mulf %126, %125 : vector<8x8xf32>
    %128 = arith.truncf %114 : vector<8x8xf32> to vector<8x8xbf16>
    %cst_77 = arith.constant dense<0.000000e+00> : vector<8x8xf32>
    %129 = tpu.matmul %128, %97, %cst_77 {dimension_numbers = #tpu.dot_dimension_numbers<[1], [0], [0], [1], [0, 0, 1, 1], [], []>} : vector<8x8xbf16>, vector<8x8xbf16>, vector<8x8xf32> -> vector<8x8xf32>
    %130 = arith.addf %127, %129 : vector<8x8xf32>
    %c2_78 = arith.constant 2 : index
    %c0_79 = arith.constant 0 : index
    %c0_80 = arith.constant 0 : index
    %131 = vector.load %arg11[%c2_78, %c0_79, %c0_80] : memref<4x8x8xf32, #tpu.memory_space<vmem>>, vector<1x8x8xf32>
    %132 = vector.shape_cast %131 : vector<1x8x8xf32> to vector<8x8xf32>
    %133 = vector.shape_cast %130 : vector<8x8xf32> to vector<1x8x8xf32>
    tpu.vector_store %arg11[%c2_78, %c0_79, %c0_80], %133 {strides = array<i32>} : memref<4x8x8xf32, #tpu.memory_space<vmem>>, vector<1x8x8xf32>,
    %c2_81 = arith.constant 2 : index
    %c0_82 = arith.constant 0 : index
    %c0_83 = arith.constant 0 : index
    %134 = vector.load %arg9[%c2_81, %c0_82, %c0_83] : memref<4x8x1xf32, #tpu.memory_space<vmem>>, vector<1x8x1xf32>
    %135 = vector.shape_cast %134 : vector<1x8x1xf32> to vector<8x1xf32>
    %136 = vector.shape_cast %109 : vector<8x1xf32> to vector<1x8x1xf32>
    tpu.vector_store %arg9[%c2_81, %c0_82, %c0_83], %136 {strides = array<i32>} : memref<4x8x1xf32, #tpu.memory_space<vmem>>, vector<1x8x1xf32>,
    %137 = vector.extract_strided_slice %4 {offsets = [0, 24], sizes = [8, 8], strides = [1, 1]} : vector<8x96xbf16> to vector<8x8xbf16>
    %138 = vector.extract_strided_slice %6 {offsets = [0, 56], sizes = [8, 8], strides = [1, 1]} : vector<8x96xbf16> to vector<8x8xbf16>
    %139 = vector.extract_strided_slice %8 {offsets = [0, 88], sizes = [8, 8], strides = [1, 1]} : vector<8x96xbf16> to vector<8x8xbf16>
    %cst_84 = arith.constant dense<0.000000e+00> : vector<8x8xf32>
    %140 = tpu.matmul %137, %138, %cst_84 {dimension_numbers = #tpu.dot_dimension_numbers<[1], [1], [0], [0], [0, 0, 1, 0], [], []>} : vector<8x8xbf16>, vector<8x8xbf16>, vector<8x8xf32> -> vector<8x8xf32>
    %cst_85 = arith.constant 0.353553385 : f32
    %141 = vector.broadcast %cst_85 : f32 to vector<8x8xf32>
    %142 = arith.mulf %140, %141 : vector<8x8xf32>
    %cst_86 = arith.constant 0.000000e+00 : f32
    %143 = vector.broadcast %cst_86 : f32 to vector<8x8xf32>
    %144 = arith.cmpf oeq, %10, %143 : vector<8x8xf32>
    %cst_87 = arith.constant -1.000000e+09 : f32
    %145 = vector.broadcast %cst_87 : f32 to vector<8x8xf32>
    %146 = arith.select %144, %145, %142 : vector<8x8xi1>, vector<8x8xf32>
    %c3 = arith.constant 3 : index
    %c0_88 = arith.constant 0 : index
    %c0_89 = arith.constant 0 : index
    %147 = vector.load %arg9[%c3, %c0_88, %c0_89] : memref<4x8x1xf32, #tpu.memory_space<vmem>>, vector<1x8x1xf32>
    %148 = vector.shape_cast %147 : vector<1x8x1xf32> to vector<8x1xf32>
    %cst_90 = arith.constant dense<0xFF800000> : vector<8xf32>
    %149 = vector.multi_reduction <maximumf>, %146, %cst_90 [1] : vector<8x8xf32> to vector<8xf32>
    %150 = vector.shape_cast %149 : vector<8xf32> to vector<8x1xf32>
    %151 = arith.maximumf %148, %150 : vector<8x1xf32>
    %152 = arith.subf %148, %151 : vector<8x1xf32>
    %153 = math.exp %152 : vector<8x1xf32>
    %154 = vector.broadcast %151 : vector<8x1xf32> to vector<8x8xf32>
    %155 = arith.subf %146, %154 : vector<8x8xf32>
    %156 = math.exp %155 : vector<8x8xf32>
    %c3_91 = arith.constant 3 : index
    %c0_92 = arith.constant 0 : index
    %c0_93 = arith.constant 0 : index
    %157 = vector.load %arg10[%c3_91, %c0_92, %c0_93] : memref<4x8x1xf32, #tpu.memory_space<vmem>>, vector<1x8x1xf32>
    %158 = vector.shape_cast %157 : vector<1x8x1xf32> to vector<8x1xf32>
    %159 = arith.mulf %153, %158 : vector<8x1xf32>
    %cst_94 = arith.constant dense<0.000000e+00> : vector<8xf32>
    %160 = vector.multi_reduction <add>, %156, %cst_94 [1] : vector<8x8xf32> to vector<8xf32>
    %161 = vector.shape_cast %160 : vector<8xf32> to vector<8x1xf32>
    %162 = arith.addf %159, %161 : vector<8x1xf32>
    %c3_95 = arith.constant 3 : index
    %c0_96 = arith.constant 0 : index
    %c0_97 = arith.constant 0 : index
    %163 = vector.load %arg10[%c3_95, %c0_96, %c0_97] : memref<4x8x1xf32, #tpu.memory_space<vmem>>, vector<1x8x1xf32>
    %164 = vector.shape_cast %163 : vector<1x8x1xf32> to vector<8x1xf32>
    %165 = vector.shape_cast %162 : vector<8x1xf32> to vector<1x8x1xf32>
    tpu.vector_store %arg10[%c3_95, %c0_96, %c0_97], %165 {strides = array<i32>} : memref<4x8x1xf32, #tpu.memory_space<vmem>>, vector<1x8x1xf32>,
    %c3_98 = arith.constant 3 : index
    %c0_99 = arith.constant 0 : index
    %c0_100 = arith.constant 0 : index
    %166 = vector.load %arg11[%c3_98, %c0_99, %c0_100] : memref<4x8x8xf32, #tpu.memory_space<vmem>>, vector<1x8x8xf32>
    %167 = vector.shape_cast %166 : vector<1x8x8xf32> to vector<8x8xf32>
    %168 = vector.broadcast %153 : vector<8x1xf32> to vector<8x8xf32>
    %169 = arith.mulf %168, %167 : vector<8x8xf32>
    %170 = arith.truncf %156 : vector<8x8xf32> to vector<8x8xbf16>
    %cst_101 = arith.constant dense<0.000000e+00> : vector<8x8xf32>
    %171 = tpu.matmul %170, %139, %cst_101 {dimension_numbers = #tpu.dot_dimension_numbers<[1], [0], [0], [1], [0, 0, 1, 1], [], []>} : vector<8x8xbf16>, vector<8x8xbf16>, vector<8x8xf32> -> vector<8x8xf32>
    %172 = arith.addf %169, %171 : vector<8x8xf32>
    %c3_102 = arith.constant 3 : index
    %c0_103 = arith.constant 0 : index
    %c0_104 = arith.constant 0 : index
    %173 = vector.load %arg11[%c3_102, %c0_103, %c0_104] : memref<4x8x8xf32, #tpu.memory_space<vmem>>, vector<1x8x8xf32>
    %174 = vector.shape_cast %173 : vector<1x8x8xf32> to vector<8x8xf32>
    %175 = vector.shape_cast %172 : vector<8x8xf32> to vector<1x8x8xf32>
    tpu.vector_store %arg11[%c3_102, %c0_103, %c0_104], %175 {strides = array<i32>} : memref<4x8x8xf32, #tpu.memory_space<vmem>>, vector<1x8x8xf32>,
    %c3_105 = arith.constant 3 : index
    %c0_106 = arith.constant 0 : index
    %c0_107 = arith.constant 0 : index
    %176 = vector.load %arg9[%c3_105, %c0_106, %c0_107] : memref<4x8x1xf32, #tpu.memory_space<vmem>>, vector<1x8x1xf32>
    %177 = vector.shape_cast %176 : vector<1x8x1xf32> to vector<8x1xf32>
    %178 = vector.shape_cast %151 : vector<8x1xf32> to vector<1x8x1xf32>
    tpu.vector_store %arg9[%c3_105, %c0_106, %c0_107], %178 {strides = array<i32>} : memref<4x8x1xf32, #tpu.memory_space<vmem>>, vector<1x8x1xf32>,
    %c0_i32_108 = arith.constant 0 : i32
    %179 = arith.cmpi eq, %arg3, %c0_i32_108 : i32
    %180 = arith.extui %179 : i1 to i32
    %c0_i32_109 = arith.constant 0 : i32
    %181 = arith.cmpi ne, %180, %c0_i32_109 : i32
    scf.if %181 {
      %c0_110 = arith.constant 0 : index
      %c0_111 = arith.constant 0 : index
      %c0_112 = arith.constant 0 : index
      %182 = vector.load %arg11[%c0_110, %c0_111, %c0_112] : memref<4x8x8xf32, #tpu.memory_space<vmem>>, vector<1x8x8xf32>
      %183 = vector.shape_cast %182 : vector<1x8x8xf32> to vector<8x8xf32>
      %c0_113 = arith.constant 0 : index
      %c0_114 = arith.constant 0 : index
      %c0_115 = arith.constant 0 : index
      %184 = vector.load %arg10[%c0_113, %c0_114, %c0_115] : memref<4x8x1xf32, #tpu.memory_space<vmem>>, vector<1x8x1xf32>
      %185 = vector.shape_cast %184 : vector<1x8x1xf32> to vector<8x1xf32>
      %186 = tpu.reciprocal %185 {approx = true} : vector<8x1xf32> -> vector<8x1xf32>
      %187 = vector.broadcast %186 : vector<8x1xf32> to vector<8x8xf32>
      %188 = arith.mulf %183, %187 : vector<8x8xf32>
      %189 = arith.truncf %188 : vector<8x8xf32> to vector<8x8xbf16>
      %c1_116 = arith.constant 1 : index
      %c0_117 = arith.constant 0 : index
      %c0_118 = arith.constant 0 : index
      %190 = vector.load %arg11[%c1_116, %c0_117, %c0_118] : memref<4x8x8xf32, #tpu.memory_space<vmem>>, vector<1x8x8xf32>
      %191 = vector.shape_cast %190 : vector<1x8x8xf32> to vector<8x8xf32>
      %c1_119 = arith.constant 1 : index
      %c0_120 = arith.constant 0 : index
      %c0_121 = arith.constant 0 : index
      %192 = vector.load %arg10[%c1_119, %c0_120, %c0_121] : memref<4x8x1xf32, #tpu.memory_space<vmem>>, vector<1x8x1xf32>
      %193 = vector.shape_cast %192 : vector<1x8x1xf32> to vector<8x1xf32>
      %194 = tpu.reciprocal %193 {approx = true} : vector<8x1xf32> -> vector<8x1xf32>
      %195 = vector.broadcast %194 : vector<8x1xf32> to vector<8x8xf32>
      %196 = arith.mulf %191, %195 : vector<8x8xf32>
      %197 = arith.truncf %196 : vector<8x8xf32> to vector<8x8xbf16>
      %c2_122 = arith.constant 2 : index
      %c0_123 = arith.constant 0 : index
      %c0_124 = arith.constant 0 : index
      %198 = vector.load %arg11[%c2_122, %c0_123, %c0_124] : memref<4x8x8xf32, #tpu.memory_space<vmem>>, vector<1x8x8xf32>
      %199 = vector.shape_cast %198 : vector<1x8x8xf32> to vector<8x8xf32>
      %c2_125 = arith.constant 2 : index
      %c0_126 = arith.constant 0 : index
      %c0_127 = arith.constant 0 : index
      %200 = vector.load %arg10[%c2_125, %c0_126, %c0_127] : memref<4x8x1xf32, #tpu.memory_space<vmem>>, vector<1x8x1xf32>
      %201 = vector.shape_cast %200 : vector<1x8x1xf32> to vector<8x1xf32>
      %202 = tpu.reciprocal %201 {approx = true} : vector<8x1xf32> -> vector<8x1xf32>
      %203 = vector.broadcast %202 : vector<8x1xf32> to vector<8x8xf32>
      %204 = arith.mulf %199, %203 : vector<8x8xf32>
      %205 = arith.truncf %204 : vector<8x8xf32> to vector<8x8xbf16>
      %c3_128 = arith.constant 3 : index
      %c0_129 = arith.constant 0 : index
      %c0_130 = arith.constant 0 : index
      %206 = vector.load %arg11[%c3_128, %c0_129, %c0_130] : memref<4x8x8xf32, #tpu.memory_space<vmem>>, vector<1x8x8xf32>
      %207 = vector.shape_cast %206 : vector<1x8x8xf32> to vector<8x8xf32>
      %c3_131 = arith.constant 3 : index
      %c0_132 = arith.constant 0 : index
      %c0_133 = arith.constant 0 : index
      %208 = vector.load %arg10[%c3_131, %c0_132, %c0_133] : memref<4x8x1xf32, #tpu.memory_space<vmem>>, vector<1x8x1xf32>
      %209 = vector.shape_cast %208 : vector<1x8x1xf32> to vector<8x1xf32>
      %210 = tpu.reciprocal %209 {approx = true} : vector<8x1xf32> -> vector<8x1xf32>
      %211 = vector.broadcast %210 : vector<8x1xf32> to vector<8x8xf32>
      %212 = arith.mulf %207, %211 : vector<8x8xf32>
      %213 = arith.truncf %212 : vector<8x8xf32> to vector<8x8xbf16>
      %214 = tpu.concatenate %189, %197, %205, %213 in 1 : vector<8x8xbf16>, vector<8x8xbf16>, vector<8x8xbf16>, vector<8x8xbf16> -> vector<8x32xbf16>
      %c0_134 = arith.constant 0 : index
      %c0_135 = arith.constant 0 : index
      %c0_136 = arith.constant 0 : index
      %215 = vector.load %arg8[%c0_134, %c0_135, %c0_136] : memref<1x8x32xbf16, #tpu.memory_space<vmem>>, vector<1x8x32xbf16>
      %216 = vector.shape_cast %215 : vector<1x8x32xbf16> to vector<8x32xbf16>
      %217 = vector.shape_cast %214 : vector<8x32xbf16> to vector<1x8x32xbf16>
      tpu.vector_store %arg8[%c0_134, %c0_135, %c0_136], %217 {strides = array<i32>} : memref<1x8x32xbf16, #tpu.memory_space<vmem>>, vector<1x8x32xbf16>,
    } else {
    }
    return
  }
  func.func @transform_0(%arg0: i32, %arg1: i32, %arg2: i32, %arg3: i32) -> (i32, i32, i32) {
    %c0_i32 = arith.constant 0 : i32
    %c0_i32_0 = arith.constant 0 : i32
    return %arg0, %arg2, %c0_i32 : i32, i32, i32
  }
  func.func @transform_1(%arg0: i32, %arg1: i32, %arg2: i32, %arg3: i32) -> (i32, i32, i32) {
    %c0_i32 = arith.constant 0 : i32
    %c0_i32_0 = arith.constant 0 : i32
    return %arg0, %arg3, %c0_i32 : i32, i32, i32
  }
  func.func @transform_2(%arg0: i32, %arg1: i32, %arg2: i32, %arg3: i32) -> (i32, i32, i32) {
    %c0_i32 = arith.constant 0 : i32
    %c0_i32_0 = arith.constant 0 : i32
    return %arg0, %arg3, %c0_i32 : i32, i32, i32
  }
  func.func @transform_3(%arg0: i32, %arg1: i32, %arg2: i32, %arg3: i32) -> (i32, i32, i32) {
    %c0_i32 = arith.constant 0 : i32
    return %arg0, %arg2, %arg3 : i32, i32, i32
  }
  func.func @transform_4(%arg0: i32, %arg1: i32, %arg2: i32, %arg3: i32) -> (i32, i32, i32) {
    %c0_i32 = arith.constant 0 : i32
    return %arg0, %arg2, %arg1 : i32, i32, i32
  }
}

module attributes {stable_mosaic.version = 11 : i64} {
  func.func @_linear_kernel(%arg0: i32, %arg1: i32, %arg2: i32, %arg3: memref<16x32xbf16, #tpu.memory_space<vmem>>, %arg4: memref<32x96xbf16, #tpu.memory_space<vmem>>, %arg5: memref<1x96xf32, #tpu.memory_space<vmem>>, %arg6: memref<16x96xbf16, #tpu.memory_space<vmem>>, %arg7: memref<16x96xf32, #tpu.memory_space<vmem>>) attributes {dimension_semantics = [#tpu.dimension_semantics<parallel>, #tpu.dimension_semantics<parallel>, #tpu.dimension_semantics<arbitrary>], iteration_bounds = array<i64: 1, 1, 1>, scalar_prefetch = 0 : i64, scratch_operands = 1 : i64, tpu.core_type = #tpu.core_type<tc>, window_params = [{transform_indices = @transform_0, window_bounds = array<i64: 16, 32>}, {transform_indices = @transform_1, window_bounds = array<i64: 32, 96>}, {transform_indices = @transform_2, window_bounds = array<i64: 1, 96>}, {transform_indices = @transform_3, window_bounds = array<i64: 16, 96>}]} {
    %c0_i32 = arith.constant 0 : i32
    %0 = arith.cmpi eq, %arg2, %c0_i32 : i32
    %1 = arith.extui %0 : i1 to i32
    %c0_i32_0 = arith.constant 0 : i32
    %2 = arith.cmpi ne, %1, %c0_i32_0 : i32
    scf.if %2 {
      %cst_10 = arith.constant 0.000000e+00 : f32
      %12 = vector.broadcast %cst_10 : f32 to vector<16x96xf32>
      %c0_11 = arith.constant 0 : index
      %c0_12 = arith.constant 0 : index
      %13 = vector.load %arg7[%c0_11, %c0_12] : memref<16x96xf32, #tpu.memory_space<vmem>>, vector<16x96xf32>
      tpu.vector_store %arg7[%c0_11, %c0_12], %12 {strides = array<i32>} : memref<16x96xf32, #tpu.memory_space<vmem>>, vector<16x96xf32>,
    } else {
    }
    %c0 = arith.constant 0 : index
    %c0_1 = arith.constant 0 : index
    %3 = vector.load %arg7[%c0, %c0_1] : memref<16x96xf32, #tpu.memory_space<vmem>>, vector<16x96xf32>
    %c0_2 = arith.constant 0 : index
    %c0_3 = arith.constant 0 : index
    %4 = vector.load %arg3[%c0_2, %c0_3] : memref<16x32xbf16, #tpu.memory_space<vmem>>, vector<16x32xbf16>
    %c0_4 = arith.constant 0 : index
    %c0_5 = arith.constant 0 : index
    %5 = vector.load %arg4[%c0_4, %c0_5] : memref<32x96xbf16, #tpu.memory_space<vmem>>, vector<32x96xbf16>
    %cst = arith.constant dense<0.000000e+00> : vector<16x96xf32>
    %6 = tpu.matmul %4, %5, %cst {dimension_numbers = #tpu.dot_dimension_numbers<[1], [0], [0], [1], [0, 0, 1, 1], [], []>} : vector<16x32xbf16>, vector<32x96xbf16>, vector<16x96xf32> -> vector<16x96xf32>
    %7 = arith.addf %3, %6 : vector<16x96xf32>
    %c0_6 = arith.constant 0 : index
    %c0_7 = arith.constant 0 : index
    %8 = vector.load %arg7[%c0_6, %c0_7] : memref<16x96xf32, #tpu.memory_space<vmem>>, vector<16x96xf32>
    tpu.vector_store %arg7[%c0_6, %c0_7], %7 {strides = array<i32>} : memref<16x96xf32, #tpu.memory_space<vmem>>, vector<16x96xf32>,
    %c0_i32_8 = arith.constant 0 : i32
    %9 = arith.cmpi eq, %arg2, %c0_i32_8 : i32
    %10 = arith.extui %9 : i1 to i32
    %c0_i32_9 = arith.constant 0 : i32
    %11 = arith.cmpi ne, %10, %c0_i32_9 : i32
    scf.if %11 {
      %c0_10 = arith.constant 0 : index
      %c0_11 = arith.constant 0 : index
      %12 = vector.load %arg7[%c0_10, %c0_11] : memref<16x96xf32, #tpu.memory_space<vmem>>, vector<16x96xf32>
      %c0_12 = arith.constant 0 : index
      %c0_13 = arith.constant 0 : index
      %13 = vector.load %arg5[%c0_12, %c0_13] : memref<1x96xf32, #tpu.memory_space<vmem>>, vector<1x96xf32>
      %14 = vector.broadcast %13 : vector<1x96xf32> to vector<16x96xf32>
      %15 = arith.addf %12, %14 : vector<16x96xf32>
      %16 = arith.truncf %15 : vector<16x96xf32> to vector<16x96xbf16>
      %c0_14 = arith.constant 0 : index
      %c0_15 = arith.constant 0 : index
      %17 = vector.load %arg6[%c0_14, %c0_15] : memref<16x96xbf16, #tpu.memory_space<vmem>>, vector<16x96xbf16>
      tpu.vector_store %arg6[%c0_14, %c0_15], %16 {strides = array<i32>} : memref<16x96xbf16, #tpu.memory_space<vmem>>, vector<16x96xbf16>,
    } else {
    }
    return
  }
  func.func @transform_0(%arg0: i32, %arg1: i32, %arg2: i32) -> (i32, i32) {
    %c0_i32 = arith.constant 0 : i32
    return %arg0, %arg2 : i32, i32
  }
  func.func @transform_1(%arg0: i32, %arg1: i32, %arg2: i32) -> (i32, i32) {
    %c0_i32 = arith.constant 0 : i32
    return %arg2, %arg1 : i32, i32
  }
  func.func @transform_2(%arg0: i32, %arg1: i32, %arg2: i32) -> (i32, i32) {
    %c0_i32 = arith.constant 0 : i32
    %c0_i32_0 = arith.constant 0 : i32
    return %c0_i32, %arg1 : i32, i32
  }
  func.func @transform_3(%arg0: i32, %arg1: i32, %arg2: i32) -> (i32, i32) {
    %c0_i32 = arith.constant 0 : i32
    return %arg0, %arg1 : i32, i32
  }
}

module attributes {stable_mosaic.version = 11 : i64} {
  func.func @_linear_kernel(%arg0: i32, %arg1: i32, %arg2: i32, %arg3: memref<16x32xbf16, #tpu.memory_space<vmem>>, %arg4: memref<32x32xbf16, #tpu.memory_space<vmem>>, %arg5: memref<1x32xf32, #tpu.memory_space<vmem>>, %arg6: memref<16x32xbf16, #tpu.memory_space<vmem>>, %arg7: memref<16x32xf32, #tpu.memory_space<vmem>>) attributes {dimension_semantics = [#tpu.dimension_semantics<parallel>, #tpu.dimension_semantics<parallel>, #tpu.dimension_semantics<arbitrary>], iteration_bounds = array<i64: 1, 1, 1>, scalar_prefetch = 0 : i64, scratch_operands = 1 : i64, tpu.core_type = #tpu.core_type<tc>, window_params = [{transform_indices = @transform_0, window_bounds = array<i64: 16, 32>}, {transform_indices = @transform_1, window_bounds = array<i64: 32, 32>}, {transform_indices = @transform_2, window_bounds = array<i64: 1, 32>}, {transform_indices = @transform_3, window_bounds = array<i64: 16, 32>}]} {
    %c0_i32 = arith.constant 0 : i32
    %0 = arith.cmpi eq, %arg2, %c0_i32 : i32
    %1 = arith.extui %0 : i1 to i32
    %c0_i32_0 = arith.constant 0 : i32
    %2 = arith.cmpi ne, %1, %c0_i32_0 : i32
    scf.if %2 {
      %cst_10 = arith.constant 0.000000e+00 : f32
      %12 = vector.broadcast %cst_10 : f32 to vector<16x32xf32>
      %c0_11 = arith.constant 0 : index
      %c0_12 = arith.constant 0 : index
      %13 = vector.load %arg7[%c0_11, %c0_12] : memref<16x32xf32, #tpu.memory_space<vmem>>, vector<16x32xf32>
      tpu.vector_store %arg7[%c0_11, %c0_12], %12 {strides = array<i32>} : memref<16x32xf32, #tpu.memory_space<vmem>>, vector<16x32xf32>,
    } else {
    }
    %c0 = arith.constant 0 : index
    %c0_1 = arith.constant 0 : index
    %3 = vector.load %arg7[%c0, %c0_1] : memref<16x32xf32, #tpu.memory_space<vmem>>, vector<16x32xf32>
    %c0_2 = arith.constant 0 : index
    %c0_3 = arith.constant 0 : index
    %4 = vector.load %arg3[%c0_2, %c0_3] : memref<16x32xbf16, #tpu.memory_space<vmem>>, vector<16x32xbf16>
    %c0_4 = arith.constant 0 : index
    %c0_5 = arith.constant 0 : index
    %5 = vector.load %arg4[%c0_4, %c0_5] : memref<32x32xbf16, #tpu.memory_space<vmem>>, vector<32x32xbf16>
    %cst = arith.constant dense<0.000000e+00> : vector<16x32xf32>
    %6 = tpu.matmul %4, %5, %cst {dimension_numbers = #tpu.dot_dimension_numbers<[1], [0], [0], [1], [0, 0, 1, 1], [], []>} : vector<16x32xbf16>, vector<32x32xbf16>, vector<16x32xf32> -> vector<16x32xf32>
    %7 = arith.addf %3, %6 : vector<16x32xf32>
    %c0_6 = arith.constant 0 : index
    %c0_7 = arith.constant 0 : index
    %8 = vector.load %arg7[%c0_6, %c0_7] : memref<16x32xf32, #tpu.memory_space<vmem>>, vector<16x32xf32>
    tpu.vector_store %arg7[%c0_6, %c0_7], %7 {strides = array<i32>} : memref<16x32xf32, #tpu.memory_space<vmem>>, vector<16x32xf32>,
    %c0_i32_8 = arith.constant 0 : i32
    %9 = arith.cmpi eq, %arg2, %c0_i32_8 : i32
    %10 = arith.extui %9 : i1 to i32
    %c0_i32_9 = arith.constant 0 : i32
    %11 = arith.cmpi ne, %10, %c0_i32_9 : i32
    scf.if %11 {
      %c0_10 = arith.constant 0 : index
      %c0_11 = arith.constant 0 : index
      %12 = vector.load %arg7[%c0_10, %c0_11] : memref<16x32xf32, #tpu.memory_space<vmem>>, vector<16x32xf32>
      %c0_12 = arith.constant 0 : index
      %c0_13 = arith.constant 0 : index
      %13 = vector.load %arg5[%c0_12, %c0_13] : memref<1x32xf32, #tpu.memory_space<vmem>>, vector<1x32xf32>
      %14 = vector.broadcast %13 : vector<1x32xf32> to vector<16x32xf32>
      %15 = arith.addf %12, %14 : vector<16x32xf32>
      %16 = arith.truncf %15 : vector<16x32xf32> to vector<16x32xbf16>
      %c0_14 = arith.constant 0 : index
      %c0_15 = arith.constant 0 : index
      %17 = vector.load %arg6[%c0_14, %c0_15] : memref<16x32xbf16, #tpu.memory_space<vmem>>, vector<16x32xbf16>
      tpu.vector_store %arg6[%c0_14, %c0_15], %16 {strides = array<i32>} : memref<16x32xbf16, #tpu.memory_space<vmem>>, vector<16x32xbf16>,
    } else {
    }
    return
  }
  func.func @transform_0(%arg0: i32, %arg1: i32, %arg2: i32) -> (i32, i32) {
    %c0_i32 = arith.constant 0 : i32
    return %arg0, %arg2 : i32, i32
  }
  func.func @transform_1(%arg0: i32, %arg1: i32, %arg2: i32) -> (i32, i32) {
    %c0_i32 = arith.constant 0 : i32
    return %arg2, %arg1 : i32, i32
  }
  func.func @transform_2(%arg0: i32, %arg1: i32, %arg2: i32) -> (i32, i32) {
    %c0_i32 = arith.constant 0 : i32
    %c0_i32_0 = arith.constant 0 : i32
    return %c0_i32, %arg1 : i32, i32
  }
  func.func @transform_3(%arg0: i32, %arg1: i32, %arg2: i32) -> (i32, i32) {
    %c0_i32 = arith.constant 0 : i32
    return %arg0, %arg1 : i32, i32
  }
}

module attributes {stable_mosaic.version = 11 : i64} {
  func.func @_linear_kernel(%arg0: i32, %arg1: i32, %arg2: i32, %arg3: memref<20x32xbf16, #tpu.memory_space<vmem>>, %arg4: memref<32x64xbf16, #tpu.memory_space<vmem>>, %arg5: memref<1x64xf32, #tpu.memory_space<vmem>>, %arg6: memref<20x64xbf16, #tpu.memory_space<vmem>>, %arg7: memref<20x64xf32, #tpu.memory_space<vmem>>) attributes {dimension_semantics = [#tpu.dimension_semantics<parallel>, #tpu.dimension_semantics<parallel>, #tpu.dimension_semantics<arbitrary>], iteration_bounds = array<i64: 1, 1, 1>, scalar_prefetch = 0 : i64, scratch_operands = 1 : i64, tpu.core_type = #tpu.core_type<tc>, window_params = [{transform_indices = @transform_0, window_bounds = array<i64: 20, 32>}, {transform_indices = @transform_1, window_bounds = array<i64: 32, 64>}, {transform_indices = @transform_2, window_bounds = array<i64: 1, 64>}, {transform_indices = @transform_3, window_bounds = array<i64: 20, 64>}]} {
    %c0_i32 = arith.constant 0 : i32
    %0 = arith.cmpi eq, %arg2, %c0_i32 : i32
    %1 = arith.extui %0 : i1 to i32
    %c0_i32_0 = arith.constant 0 : i32
    %2 = arith.cmpi ne, %1, %c0_i32_0 : i32
    scf.if %2 {
      %cst_10 = arith.constant 0.000000e+00 : f32
      %12 = vector.broadcast %cst_10 : f32 to vector<20x64xf32>
      %c0_11 = arith.constant 0 : index
      %c0_12 = arith.constant 0 : index
      %13 = vector.load %arg7[%c0_11, %c0_12] : memref<20x64xf32, #tpu.memory_space<vmem>>, vector<20x64xf32>
      tpu.vector_store %arg7[%c0_11, %c0_12], %12 {strides = array<i32>} : memref<20x64xf32, #tpu.memory_space<vmem>>, vector<20x64xf32>,
    } else {
    }
    %c0 = arith.constant 0 : index
    %c0_1 = arith.constant 0 : index
    %3 = vector.load %arg7[%c0, %c0_1] : memref<20x64xf32, #tpu.memory_space<vmem>>, vector<20x64xf32>
    %c0_2 = arith.constant 0 : index
    %c0_3 = arith.constant 0 : index
    %4 = vector.load %arg3[%c0_2, %c0_3] : memref<20x32xbf16, #tpu.memory_space<vmem>>, vector<20x32xbf16>
    %c0_4 = arith.constant 0 : index
    %c0_5 = arith.constant 0 : index
    %5 = vector.load %arg4[%c0_4, %c0_5] : memref<32x64xbf16, #tpu.memory_space<vmem>>, vector<32x64xbf16>
    %cst = arith.constant dense<0.000000e+00> : vector<20x64xf32>
    %6 = tpu.matmul %4, %5, %cst {dimension_numbers = #tpu.dot_dimension_numbers<[1], [0], [0], [1], [0, 0, 1, 1], [], []>} : vector<20x32xbf16>, vector<32x64xbf16>, vector<20x64xf32> -> vector<20x64xf32>
    %7 = arith.addf %3, %6 : vector<20x64xf32>
    %c0_6 = arith.constant 0 : index
    %c0_7 = arith.constant 0 : index
    %8 = vector.load %arg7[%c0_6, %c0_7] : memref<20x64xf32, #tpu.memory_space<vmem>>, vector<20x64xf32>
    tpu.vector_store %arg7[%c0_6, %c0_7], %7 {strides = array<i32>} : memref<20x64xf32, #tpu.memory_space<vmem>>, vector<20x64xf32>,
    %c0_i32_8 = arith.constant 0 : i32
    %9 = arith.cmpi eq, %arg2, %c0_i32_8 : i32
    %10 = arith.extui %9 : i1 to i32
    %c0_i32_9 = arith.constant 0 : i32
    %11 = arith.cmpi ne, %10, %c0_i32_9 : i32
    scf.if %11 {
      %c0_10 = arith.constant 0 : index
      %c0_11 = arith.constant 0 : index
      %12 = vector.load %arg7[%c0_10, %c0_11] : memref<20x64xf32, #tpu.memory_space<vmem>>, vector<20x64xf32>
      %c0_12 = arith.constant 0 : index
      %c0_13 = arith.constant 0 : index
      %13 = vector.load %arg5[%c0_12, %c0_13] : memref<1x64xf32, #tpu.memory_space<vmem>>, vector<1x64xf32>
      %14 = vector.broadcast %13 : vector<1x64xf32> to vector<20x64xf32>
      %15 = arith.addf %12, %14 : vector<20x64xf32>
      %16 = arith.truncf %15 : vector<20x64xf32> to vector<20x64xbf16>
      %c0_14 = arith.constant 0 : index
      %c0_15 = arith.constant 0 : index
      %17 = vector.load %arg6[%c0_14, %c0_15] : memref<20x64xbf16, #tpu.memory_space<vmem>>, vector<20x64xbf16>
      tpu.vector_store %arg6[%c0_14, %c0_15], %16 {strides = array<i32>} : memref<20x64xbf16, #tpu.memory_space<vmem>>, vector<20x64xbf16>,
    } else {
    }
    return
  }
  func.func @transform_0(%arg0: i32, %arg1: i32, %arg2: i32) -> (i32, i32) {
    %c0_i32 = arith.constant 0 : i32
    return %arg0, %arg2 : i32, i32
  }
  func.func @transform_1(%arg0: i32, %arg1: i32, %arg2: i32) -> (i32, i32) {
    %c0_i32 = arith.constant 0 : i32
    return %arg2, %arg1 : i32, i32
  }
  func.func @transform_2(%arg0: i32, %arg1: i32, %arg2: i32) -> (i32, i32) {
    %c0_i32 = arith.constant 0 : i32
    %c0_i32_0 = arith.constant 0 : i32
    return %c0_i32, %arg1 : i32, i32
  }
  func.func @transform_3(%arg0: i32, %arg1: i32, %arg2: i32) -> (i32, i32) {
    %c0_i32 = arith.constant 0 : i32
    return %arg0, %arg1 : i32, i32
  }
}

module attributes {stable_mosaic.version = 11 : i64} {
  func.func @_linear_add_norm_kernel(%arg0: i32, %arg1: i32, %arg2: memref<16x32xbf16, #tpu.memory_space<vmem>>, %arg3: memref<32x32xbf16, #tpu.memory_space<vmem>>, %arg4: memref<1x32xf32, #tpu.memory_space<vmem>>, %arg5: memref<16x32xbf16, #tpu.memory_space<vmem>>, %arg6: memref<1x32xf32, #tpu.memory_space<vmem>>, %arg7: memref<1x32xf32, #tpu.memory_space<vmem>>, %arg8: memref<16x32xbf16, #tpu.memory_space<vmem>>, %arg9: memref<16x32xf32, #tpu.memory_space<vmem>>) attributes {dimension_semantics = [#tpu.dimension_semantics<parallel>, #tpu.dimension_semantics<arbitrary>], iteration_bounds = array<i64: 1, 1>, scalar_prefetch = 0 : i64, scratch_operands = 1 : i64, tpu.core_type = #tpu.core_type<tc>, window_params = [{transform_indices = @transform_0, window_bounds = array<i64: 16, 32>}, {transform_indices = @transform_1, window_bounds = array<i64: 32, 32>}, {pipeline_mode = #tpu.pipeline_mode<synchronous>, transform_indices = @transform_2, window_bounds = array<i64: 1, 32>}, {transform_indices = @transform_3, window_bounds = array<i64: 16, 32>}, {pipeline_mode = #tpu.pipeline_mode<synchronous>, transform_indices = @transform_4, window_bounds = array<i64: 1, 32>}, {pipeline_mode = #tpu.pipeline_mode<synchronous>, transform_indices = @transform_5, window_bounds = array<i64: 1, 32>}, {transform_indices = @transform_6, window_bounds = array<i64: 16, 32>}]} {
    %c0_i32 = arith.constant 0 : i32
    %0 = arith.cmpi eq, %arg1, %c0_i32 : i32
    %1 = arith.extui %0 : i1 to i32
    %c0_i32_0 = arith.constant 0 : i32
    %2 = arith.cmpi ne, %1, %c0_i32_0 : i32
    scf.if %2 {
      %cst_10 = arith.constant 0.000000e+00 : f32
      %12 = vector.broadcast %cst_10 : f32 to vector<16x32xf32>
      %c0_11 = arith.constant 0 : index
      %c0_12 = arith.constant 0 : index
      %13 = vector.load %arg9[%c0_11, %c0_12] : memref<16x32xf32, #tpu.memory_space<vmem>>, vector<16x32xf32>
      tpu.vector_store %arg9[%c0_11, %c0_12], %12 {strides = array<i32>} : memref<16x32xf32, #tpu.memory_space<vmem>>, vector<16x32xf32>,
    } else {
    }
    %c0 = arith.constant 0 : index
    %c0_1 = arith.constant 0 : index
    %3 = vector.load %arg9[%c0, %c0_1] : memref<16x32xf32, #tpu.memory_space<vmem>>, vector<16x32xf32>
    %c0_2 = arith.constant 0 : index
    %c0_3 = arith.constant 0 : index
    %4 = vector.load %arg2[%c0_2, %c0_3] : memref<16x32xbf16, #tpu.memory_space<vmem>>, vector<16x32xbf16>
    %c0_4 = arith.constant 0 : index
    %c0_5 = arith.constant 0 : index
    %5 = vector.load %arg3[%c0_4, %c0_5] : memref<32x32xbf16, #tpu.memory_space<vmem>>, vector<32x32xbf16>
    %cst = arith.constant dense<0.000000e+00> : vector<16x32xf32>
    %6 = tpu.matmul %4, %5, %cst {dimension_numbers = #tpu.dot_dimension_numbers<[1], [0], [0], [1], [0, 0, 1, 1], [], []>} : vector<16x32xbf16>, vector<32x32xbf16>, vector<16x32xf32> -> vector<16x32xf32>
    %7 = arith.addf %3, %6 : vector<16x32xf32>
    %c0_6 = arith.constant 0 : index
    %c0_7 = arith.constant 0 : index
    %8 = vector.load %arg9[%c0_6, %c0_7] : memref<16x32xf32, #tpu.memory_space<vmem>>, vector<16x32xf32>
    tpu.vector_store %arg9[%c0_6, %c0_7], %7 {strides = array<i32>} : memref<16x32xf32, #tpu.memory_space<vmem>>, vector<16x32xf32>,
    %c0_i32_8 = arith.constant 0 : i32
    %9 = arith.cmpi eq, %arg1, %c0_i32_8 : i32
    %10 = arith.extui %9 : i1 to i32
    %c0_i32_9 = arith.constant 0 : i32
    %11 = arith.cmpi ne, %10, %c0_i32_9 : i32
    scf.if %11 {
      %c0_10 = arith.constant 0 : index
      %c0_11 = arith.constant 0 : index
      %12 = vector.load %arg5[%c0_10, %c0_11] : memref<16x32xbf16, #tpu.memory_space<vmem>>, vector<16x32xbf16>
      %13 = arith.extf %12 : vector<16x32xbf16> to vector<16x32xf32>
      %c0_12 = arith.constant 0 : index
      %c0_13 = arith.constant 0 : index
      %14 = vector.load %arg9[%c0_12, %c0_13] : memref<16x32xf32, #tpu.memory_space<vmem>>, vector<16x32xf32>
      %15 = arith.addf %13, %14 : vector<16x32xf32>
      %c0_14 = arith.constant 0 : index
      %c0_15 = arith.constant 0 : index
      %16 = vector.load %arg4[%c0_14, %c0_15] : memref<1x32xf32, #tpu.memory_space<vmem>>, vector<1x32xf32>
      %17 = vector.broadcast %16 : vector<1x32xf32> to vector<16x32xf32>
      %18 = arith.addf %15, %17 : vector<16x32xf32>
      %cst_16 = arith.constant dense<0.000000e+00> : vector<16xf32>
      %19 = vector.multi_reduction <add>, %18, %cst_16 [1] : vector<16x32xf32> to vector<16xf32>
      %20 = vector.shape_cast %19 : vector<16xf32> to vector<16x1xf32>
      %cst_17 = arith.constant 3.200000e+01 : f32
      %21 = vector.broadcast %cst_17 : f32 to vector<16x1xf32>
      %22 = arith.divf %20, %21 : vector<16x1xf32>
      %23 = vector.broadcast %22 : vector<16x1xf32> to vector<16x32xf32>
      %24 = arith.subf %18, %23 : vector<16x32xf32>
      %25 = arith.mulf %24, %24 : vector<16x32xf32>
      %cst_18 = arith.constant dense<0.000000e+00> : vector<16xf32>
      %26 = vector.multi_reduction <add>, %25, %cst_18 [1] : vector<16x32xf32> to vector<16xf32>
      %27 = vector.shape_cast %26 : vector<16xf32> to vector<16x1xf32>
      %cst_19 = arith.constant 3.200000e+01 : f32
      %28 = vector.broadcast %cst_19 : f32 to vector<16x1xf32>
      %29 = arith.divf %27, %28 : vector<16x1xf32>
      %30 = vector.broadcast %22 : vector<16x1xf32> to vector<16x32xf32>
      %31 = arith.subf %18, %30 : vector<16x32xf32>
      %cst_20 = arith.constant 9.99999997E-7 : f32
      %32 = vector.broadcast %cst_20 : f32 to vector<16x1xf32>
      %33 = arith.addf %29, %32 : vector<16x1xf32>
      %34 = math.rsqrt %33 : vector<16x1xf32>
      %35 = vector.broadcast %34 : vector<16x1xf32> to vector<16x32xf32>
      %36 = arith.mulf %31, %35 : vector<16x32xf32>
      %c0_21 = arith.constant 0 : index
      %c0_22 = arith.constant 0 : index
      %37 = vector.load %arg6[%c0_21, %c0_22] : memref<1x32xf32, #tpu.memory_space<vmem>>, vector<1x32xf32>
      %38 = vector.broadcast %37 : vector<1x32xf32> to vector<16x32xf32>
      %39 = arith.mulf %38, %36 : vector<16x32xf32>
      %c0_23 = arith.constant 0 : index
      %c0_24 = arith.constant 0 : index
      %40 = vector.load %arg7[%c0_23, %c0_24] : memref<1x32xf32, #tpu.memory_space<vmem>>, vector<1x32xf32>
      %41 = vector.broadcast %40 : vector<1x32xf32> to vector<16x32xf32>
      %42 = arith.addf %39, %41 : vector<16x32xf32>
      %43 = arith.truncf %42 : vector<16x32xf32> to vector<16x32xbf16>
      %c0_25 = arith.constant 0 : index
      %c0_26 = arith.constant 0 : index
      %44 = vector.load %arg8[%c0_25, %c0_26] : memref<16x32xbf16, #tpu.memory_space<vmem>>, vector<16x32xbf16>
      tpu.vector_store %arg8[%c0_25, %c0_26], %43 {strides = array<i32>} : memref<16x32xbf16, #tpu.memory_space<vmem>>, vector<16x32xbf16>,
    } else {
    }
    return
  }
  func.func @transform_0(%arg0: i32, %arg1: i32) -> (i32, i32) {
    %c0_i32 = arith.constant 0 : i32
    return %arg0, %arg1 : i32, i32
  }
  func.func @transform_1(%arg0: i32, %arg1: i32) -> (i32, i32) {
    %c0_i32 = arith.constant 0 : i32
    %c0_i32_0 = arith.constant 0 : i32
    return %arg1, %c0_i32 : i32, i32
  }
  func.func @transform_2(%arg0: i32, %arg1: i32) -> (i32, i32) {
    %c0_i32 = arith.constant 0 : i32
    %c0_i32_0 = arith.constant 0 : i32
    %c0_i32_1 = arith.constant 0 : i32
    return %c0_i32, %c0_i32_0 : i32, i32
  }
  func.func @transform_3(%arg0: i32, %arg1: i32) -> (i32, i32) {
    %c0_i32 = arith.constant 0 : i32
    %c0_i32_0 = arith.constant 0 : i32
    return %arg0, %c0_i32 : i32, i32
  }
  func.func @transform_4(%arg0: i32, %arg1: i32) -> (i32, i32) {
    %c0_i32 = arith.constant 0 : i32
    %c0_i32_0 = arith.constant 0 : i32
    %c0_i32_1 = arith.constant 0 : i32
    return %c0_i32, %c0_i32_0 : i32, i32
  }
  func.func @transform_5(%arg0: i32, %arg1: i32) -> (i32, i32) {
    %c0_i32 = arith.constant 0 : i32
    %c0_i32_0 = arith.constant 0 : i32
    %c0_i32_1 = arith.constant 0 : i32
    return %c0_i32, %c0_i32_0 : i32, i32
  }
  func.func @transform_6(%arg0: i32, %arg1: i32) -> (i32, i32) {
    %c0_i32 = arith.constant 0 : i32
    %c0_i32_0 = arith.constant 0 : i32
    return %arg0, %c0_i32 : i32, i32
  }
}

module attributes {stable_mosaic.version = 11 : i64} {
  func.func @_mha_kernel(%arg0: i32, %arg1: i32, %arg2: i32, %arg3: i32, %arg4: memref<1x8x32xbf16, #tpu.memory_space<vmem>>, %arg5: memref<1x10x64xbf16, #tpu.memory_space<vmem>>, %arg6: memref<1x10x64xbf16, #tpu.memory_space<vmem>>, %arg7: memref<1x1x10xf32, #tpu.memory_space<vmem>>, %arg8: memref<1x8x32xbf16, #tpu.memory_space<vmem>>, %arg9: memref<4x8x1xf32, #tpu.memory_space<vmem>>, %arg10: memref<4x8x1xf32, #tpu.memory_space<vmem>>, %arg11: memref<4x8x8xf32, #tpu.memory_space<vmem>>) attributes {dimension_semantics = [#tpu.dimension_semantics<parallel>, #tpu.dimension_semantics<parallel>, #tpu.dimension_semantics<parallel>, #tpu.dimension_semantics<arbitrary>], iteration_bounds = array<i64: 2, 1, 1, 1>, scalar_prefetch = 0 : i64, scratch_operands = 3 : i64, tpu.core_type = #tpu.core_type<tc>, window_params = [{transform_indices = @transform_0, window_bounds = array<i64: 1, 8, 32>}, {transform_indices = @transform_1, window_bounds = array<i64: 1, 10, 64>}, {transform_indices = @transform_2, window_bounds = array<i64: 1, 10, 64>}, {transform_indices = @transform_3, window_bounds = array<i64: 1, 1, 10>}, {transform_indices = @transform_4, window_bounds = array<i64: 1, 8, 32>}]} {
    %c0_i32 = arith.constant 0 : i32
    %0 = arith.cmpi eq, %arg3, %c0_i32 : i32
    %1 = arith.extui %0 : i1 to i32
    %c0_i32_0 = arith.constant 0 : i32
    %2 = arith.cmpi ne, %1, %c0_i32_0 : i32
    scf.if %2 {
      %cst_110 = arith.constant 0xFF800000 : f32
      %190 = vector.broadcast %cst_110 : f32 to vector<4x8x1xf32>
      %c0_111 = arith.constant 0 : index
      %c0_112 = arith.constant 0 : index
      %c0_113 = arith.constant 0 : index
      %191 = vector.load %arg9[%c0_111, %c0_112, %c0_113] : memref<4x8x1xf32, #tpu.memory_space<vmem>>, vector<4x8x1xf32>
      tpu.vector_store %arg9[%c0_111, %c0_112, %c0_113], %190 {strides = array<i32>} : memref<4x8x1xf32, #tpu.memory_space<vmem>>, vector<4x8x1xf32>,
      %cst_114 = arith.constant 0.000000e+00 : f32
      %192 = vector.broadcast %cst_114 : f32 to vector<4x8x1xf32>
      %c0_115 = arith.constant 0 : index
      %c0_116 = arith.constant 0 : index
      %c0_117 = arith.constant 0 : index
      %193 = vector.load %arg10[%c0_115, %c0_116, %c0_117] : memref<4x8x1xf32, #tpu.memory_space<vmem>>, vector<4x8x1xf32>
      tpu.vector_store %arg10[%c0_115, %c0_116, %c0_117], %192 {strides = array<i32>} : memref<4x8x1xf32, #tpu.memory_space<vmem>>, vector<4x8x1xf32>,
      %cst_118 = arith.constant 0.000000e+00 : f32
      %194 = vector.broadcast %cst_118 : f32 to vector<4x8x8xf32>
      %c0_119 = arith.constant 0 : index
      %c0_120 = arith.constant 0 : index
      %c0_121 = arith.constant 0 : index
      %195 = vector.load %arg11[%c0_119, %c0_120, %c0_121] : memref<4x8x8xf32, #tpu.memory_space<vmem>>, vector<4x8x8xf32>
      tpu.vector_store %arg11[%c0_119, %c0_120, %c0_121], %194 {strides = array<i32>} : memref<4x8x8xf32, #tpu.memory_space<vmem>>, vector<4x8x8xf32>,
    } else {
    }
    %c0 = arith.constant 0 : index
    %c0_1 = arith.constant 0 : index
    %c0_2 = arith.constant 0 : index
    %3 = vector.load %arg4[%c0, %c0_1, %c0_2] : memref<1x8x32xbf16, #tpu.memory_space<vmem>>, vector<1x8x32xbf16>
    %4 = vector.shape_cast %3 : vector<1x8x32xbf16> to vector<8x32xbf16>
    %c0_3 = arith.constant 0 : index
    %c0_4 = arith.constant 0 : index
    %c0_5 = arith.constant 0 : index
    %5 = vector.load %arg5[%c0_3, %c0_4, %c0_5] : memref<1x10x64xbf16, #tpu.memory_space<vmem>>, vector<1x10x64xbf16>
    %6 = vector.shape_cast %5 : vector<1x10x64xbf16> to vector<10x64xbf16>
    %c0_6 = arith.constant 0 : index
    %c0_7 = arith.constant 0 : index
    %c0_8 = arith.constant 0 : index
    %7 = vector.load %arg6[%c0_6, %c0_7, %c0_8] : memref<1x10x64xbf16, #tpu.memory_space<vmem>>, vector<1x10x64xbf16>
    %8 = vector.shape_cast %7 : vector<1x10x64xbf16> to vector<10x64xbf16>
    %c0_9 = arith.constant 0 : index
    %c0_10 = arith.constant 0 : index
    %c0_11 = arith.constant 0 : index
    %9 = vector.load %arg7[%c0_9, %c0_10, %c0_11] : memref<1x1x10xf32, #tpu.memory_space<vmem>>, vector<1x1x10xf32>
    %10 = vector.shape_cast %9 : vector<1x1x10xf32> to vector<1x10xf32>
    %11 = vector.extract_strided_slice %4 {offsets = [0, 0], sizes = [8, 8], strides = [1, 1]} : vector<8x32xbf16> to vector<8x8xbf16>
    %12 = vector.extract_strided_slice %6 {offsets = [0, 0], sizes = [10, 8], strides = [1, 1]} : vector<10x64xbf16> to vector<10x8xbf16>
    %13 = vector.extract_strided_slice %8 {offsets = [0, 32], sizes = [10, 8], strides = [1, 1]} : vector<10x64xbf16> to vector<10x8xbf16>
    %cst = arith.constant dense<0.000000e+00> : vector<8x10xf32>
    %14 = tpu.matmul %11, %12, %cst {dimension_numbers = #tpu.dot_dimension_numbers<[1], [1], [0], [0], [0, 0, 1, 0], [], []>} : vector<8x8xbf16>, vector<10x8xbf16>, vector<8x10xf32> -> vector<8x10xf32>
    %cst_12 = arith.constant 0.353553385 : f32
    %15 = vector.broadcast %cst_12 : f32 to vector<8x10xf32>
    %16 = arith.mulf %14, %15 : vector<8x10xf32>
    %cst_13 = arith.constant 0.000000e+00 : f32
    %17 = vector.broadcast %cst_13 : f32 to vector<1x10xf32>
    %18 = arith.cmpf oeq, %10, %17 : vector<1x10xf32>
    %cst_14 = arith.constant -1.000000e+09 : f32
    %19 = vector.shape_cast %18 : vector<1x10xi1> to vector<1x10xi1>
    %20 = vector.broadcast %19 : vector<1x10xi1> to vector<8x10xi1>
    %21 = vector.broadcast %cst_14 : f32 to vector<8x10xf32>
    %22 = arith.select %20, %21, %16 : vector<8x10xi1>, vector<8x10xf32>
    %c0_15 = arith.constant 0 : index
    %c0_16 = arith.constant 0 : index
    %c0_17 = arith.constant 0 : index
    %23 = vector.load %arg9[%c0_15, %c0_16, %c0_17] : memref<4x8x1xf32, #tpu.memory_space<vmem>>, vector<1x8x1xf32>
    %24 = vector.shape_cast %23 : vector<1x8x1xf32> to vector<8x1xf32>
    %cst_18 = arith.constant dense<0xFF800000> : vector<8xf32>
    %25 = vector.multi_reduction <maximumf>, %22, %cst_18 [1] : vector<8x10xf32> to vector<8xf32>
    %26 = vector.shape_cast %25 : vector<8xf32> to vector<8x1xf32>
    %27 = arith.maximumf %24, %26 : vector<8x1xf32>
    %28 = arith.subf %24, %27 : vector<8x1xf32>
    %29 = math.exp %28 : vector<8x1xf32>
    %30 = vector.broadcast %27 : vector<8x1xf32> to vector<8x10xf32>
    %31 = arith.subf %22, %30 : vector<8x10xf32>
    %32 = math.exp %31 : vector<8x10xf32>
    %c0_19 = arith.constant 0 : index
    %c0_20 = arith.constant 0 : index
    %c0_21 = arith.constant 0 : index
    %33 = vector.load %arg10[%c0_19, %c0_20, %c0_21] : memref<4x8x1xf32, #tpu.memory_space<vmem>>, vector<1x8x1xf32>
    %34 = vector.shape_cast %33 : vector<1x8x1xf32> to vector<8x1xf32>
    %35 = arith.mulf %29, %34 : vector<8x1xf32>
    %cst_22 = arith.constant dense<0.000000e+00> : vector<8xf32>
    %36 = vector.multi_reduction <add>, %32, %cst_22 [1] : vector<8x10xf32> to vector<8xf32>
    %37 = vector.shape_cast %36 : vector<8xf32> to vector<8x1xf32>
    %38 = arith.addf %35, %37 : vector<8x1xf32>
    %c0_23 = arith.constant 0 : index
    %c0_24 = arith.constant 0 : index
    %c0_25 = arith.constant 0 : index
    %39 = vector.load %arg10[%c0_23, %c0_24, %c0_25] : memref<4x8x1xf32, #tpu.memory_space<vmem>>, vector<1x8x1xf32>
    %40 = vector.shape_cast %39 : vector<1x8x1xf32> to vector<8x1xf32>
    %41 = vector.shape_cast %38 : vector<8x1xf32> to vector<1x8x1xf32>
    tpu.vector_store %arg10[%c0_23, %c0_24, %c0_25], %41 {strides = array<i32>} : memref<4x8x1xf32, #tpu.memory_space<vmem>>, vector<1x8x1xf32>,
    %c0_26 = arith.constant 0 : index
    %c0_27 = arith.constant 0 : index
    %c0_28 = arith.constant 0 : index
    %42 = vector.load %arg11[%c0_26, %c0_27, %c0_28] : memref<4x8x8xf32, #tpu.memory_space<vmem>>, vector<1x8x8xf32>
    %43 = vector.shape_cast %42 : vector<1x8x8xf32> to vector<8x8xf32>
    %44 = vector.broadcast %29 : vector<8x1xf32> to vector<8x8xf32>
    %45 = arith.mulf %44, %43 : vector<8x8xf32>
    %46 = arith.truncf %32 : vector<8x10xf32> to vector<8x10xbf16>
    %cst_29 = arith.constant dense<0.000000e+00> : vector<8x8xf32>
    %47 = tpu.matmul %46, %13, %cst_29 {dimension_numbers = #tpu.dot_dimension_numbers<[1], [0], [0], [1], [0, 0, 1, 1], [], []>} : vector<8x10xbf16>, vector<10x8xbf16>, vector<8x8xf32> -> vector<8x8xf32>
    %48 = arith.addf %45, %47 : vector<8x8xf32>
    %c0_30 = arith.constant 0 : index
    %c0_31 = arith.constant 0 : index
    %c0_32 = arith.constant 0 : index
    %49 = vector.load %arg11[%c0_30, %c0_31, %c0_32] : memref<4x8x8xf32, #tpu.memory_space<vmem>>, vector<1x8x8xf32>
    %50 = vector.shape_cast %49 : vector<1x8x8xf32> to vector<8x8xf32>
    %51 = vector.shape_cast %48 : vector<8x8xf32> to vector<1x8x8xf32>
    tpu.vector_store %arg11[%c0_30, %c0_31, %c0_32], %51 {strides = array<i32>} : memref<4x8x8xf32, #tpu.memory_space<vmem>>, vector<1x8x8xf32>,
    %c0_33 = arith.constant 0 : index
    %c0_34 = arith.constant 0 : index
    %c0_35 = arith.constant 0 : index
    %52 = vector.load %arg9[%c0_33, %c0_34, %c0_35] : memref<4x8x1xf32, #tpu.memory_space<vmem>>, vector<1x8x1xf32>
    %53 = vector.shape_cast %52 : vector<1x8x1xf32> to vector<8x1xf32>
    %54 = vector.shape_cast %27 : vector<8x1xf32> to vector<1x8x1xf32>
    tpu.vector_store %arg9[%c0_33, %c0_34, %c0_35], %54 {strides = array<i32>} : memref<4x8x1xf32, #tpu.memory_space<vmem>>, vector<1x8x1xf32>,
    %55 = vector.extract_strided_slice %4 {offsets = [0, 8], sizes = [8, 8], strides = [1, 1]} : vector<8x32xbf16> to vector<8x8xbf16>
    %56 = vector.extract_strided_slice %6 {offsets = [0, 8], sizes = [10, 8], strides = [1, 1]} : vector<10x64xbf16> to vector<10x8xbf16>
    %57 = vector.extract_strided_slice %8 {offsets = [0, 40], sizes = [10, 8], strides = [1, 1]} : vector<10x64xbf16> to vector<10x8xbf16>
    %cst_36 = arith.constant dense<0.000000e+00> : vector<8x10xf32>
    %58 = tpu.matmul %55, %56, %cst_36 {dimension_numbers = #tpu.dot_dimension_numbers<[1], [1], [0], [0], [0, 0, 1, 0], [], []>} : vector<8x8xbf16>, vector<10x8xbf16>, vector<8x10xf32> -> vector<8x10xf32>
    %cst_37 = arith.constant 0.353553385 : f32
    %59 = vector.broadcast %cst_37 : f32 to vector<8x10xf32>
    %60 = arith.mulf %58, %59 : vector<8x10xf32>
    %cst_38 = arith.constant 0.000000e+00 : f32
    %61 = vector.broadcast %cst_38 : f32 to vector<1x10xf32>
    %62 = arith.cmpf oeq, %10, %61 : vector<1x10xf32>
    %cst_39 = arith.constant -1.000000e+09 : f32
    %63 = vector.shape_cast %62 : vector<1x10xi1> to vector<1x10xi1>
    %64 = vector.broadcast %63 : vector<1x10xi1> to vector<8x10xi1>
    %65 = vector.broadcast %cst_39 : f32 to vector<8x10xf32>
    %66 = arith.select %64, %65, %60 : vector<8x10xi1>, vector<8x10xf32>
    %c1 = arith.constant 1 : index
    %c0_40 = arith.constant 0 : index
    %c0_41 = arith.constant 0 : index
    %67 = vector.load %arg9[%c1, %c0_40, %c0_41] : memref<4x8x1xf32, #tpu.memory_space<vmem>>, vector<1x8x1xf32>
    %68 = vector.shape_cast %67 : vector<1x8x1xf32> to vector<8x1xf32>
    %cst_42 = arith.constant dense<0xFF800000> : vector<8xf32>
    %69 = vector.multi_reduction <maximumf>, %66, %cst_42 [1] : vector<8x10xf32> to vector<8xf32>
    %70 = vector.shape_cast %69 : vector<8xf32> to vector<8x1xf32>
    %71 = arith.maximumf %68, %70 : vector<8x1xf32>
    %72 = arith.subf %68, %71 : vector<8x1xf32>
    %73 = math.exp %72 : vector<8x1xf32>
    %74 = vector.broadcast %71 : vector<8x1xf32> to vector<8x10xf32>
    %75 = arith.subf %66, %74 : vector<8x10xf32>
    %76 = math.exp %75 : vector<8x10xf32>
    %c1_43 = arith.constant 1 : index
    %c0_44 = arith.constant 0 : index
    %c0_45 = arith.constant 0 : index
    %77 = vector.load %arg10[%c1_43, %c0_44, %c0_45] : memref<4x8x1xf32, #tpu.memory_space<vmem>>, vector<1x8x1xf32>
    %78 = vector.shape_cast %77 : vector<1x8x1xf32> to vector<8x1xf32>
    %79 = arith.mulf %73, %78 : vector<8x1xf32>
    %cst_46 = arith.constant dense<0.000000e+00> : vector<8xf32>
    %80 = vector.multi_reduction <add>, %76, %cst_46 [1] : vector<8x10xf32> to vector<8xf32>
    %81 = vector.shape_cast %80 : vector<8xf32> to vector<8x1xf32>
    %82 = arith.addf %79, %81 : vector<8x1xf32>
    %c1_47 = arith.constant 1 : index
    %c0_48 = arith.constant 0 : index
    %c0_49 = arith.constant 0 : index
    %83 = vector.load %arg10[%c1_47, %c0_48, %c0_49] : memref<4x8x1xf32, #tpu.memory_space<vmem>>, vector<1x8x1xf32>
    %84 = vector.shape_cast %83 : vector<1x8x1xf32> to vector<8x1xf32>
    %85 = vector.shape_cast %82 : vector<8x1xf32> to vector<1x8x1xf32>
    tpu.vector_store %arg10[%c1_47, %c0_48, %c0_49], %85 {strides = array<i32>} : memref<4x8x1xf32, #tpu.memory_space<vmem>>, vector<1x8x1xf32>,
    %c1_50 = arith.constant 1 : index
    %c0_51 = arith.constant 0 : index
    %c0_52 = arith.constant 0 : index
    %86 = vector.load %arg11[%c1_50, %c0_51, %c0_52] : memref<4x8x8xf32, #tpu.memory_space<vmem>>, vector<1x8x8xf32>
    %87 = vector.shape_cast %86 : vector<1x8x8xf32> to vector<8x8xf32>
    %88 = vector.broadcast %73 : vector<8x1xf32> to vector<8x8xf32>
    %89 = arith.mulf %88, %87 : vector<8x8xf32>
    %90 = arith.truncf %76 : vector<8x10xf32> to vector<8x10xbf16>
    %cst_53 = arith.constant dense<0.000000e+00> : vector<8x8xf32>
    %91 = tpu.matmul %90, %57, %cst_53 {dimension_numbers = #tpu.dot_dimension_numbers<[1], [0], [0], [1], [0, 0, 1, 1], [], []>} : vector<8x10xbf16>, vector<10x8xbf16>, vector<8x8xf32> -> vector<8x8xf32>
    %92 = arith.addf %89, %91 : vector<8x8xf32>
    %c1_54 = arith.constant 1 : index
    %c0_55 = arith.constant 0 : index
    %c0_56 = arith.constant 0 : index
    %93 = vector.load %arg11[%c1_54, %c0_55, %c0_56] : memref<4x8x8xf32, #tpu.memory_space<vmem>>, vector<1x8x8xf32>
    %94 = vector.shape_cast %93 : vector<1x8x8xf32> to vector<8x8xf32>
    %95 = vector.shape_cast %92 : vector<8x8xf32> to vector<1x8x8xf32>
    tpu.vector_store %arg11[%c1_54, %c0_55, %c0_56], %95 {strides = array<i32>} : memref<4x8x8xf32, #tpu.memory_space<vmem>>, vector<1x8x8xf32>,
    %c1_57 = arith.constant 1 : index
    %c0_58 = arith.constant 0 : index
    %c0_59 = arith.constant 0 : index
    %96 = vector.load %arg9[%c1_57, %c0_58, %c0_59] : memref<4x8x1xf32, #tpu.memory_space<vmem>>, vector<1x8x1xf32>
    %97 = vector.shape_cast %96 : vector<1x8x1xf32> to vector<8x1xf32>
    %98 = vector.shape_cast %71 : vector<8x1xf32> to vector<1x8x1xf32>
    tpu.vector_store %arg9[%c1_57, %c0_58, %c0_59], %98 {strides = array<i32>} : memref<4x8x1xf32, #tpu.memory_space<vmem>>, vector<1x8x1xf32>,
    %99 = vector.extract_strided_slice %4 {offsets = [0, 16], sizes = [8, 8], strides = [1, 1]} : vector<8x32xbf16> to vector<8x8xbf16>
    %100 = vector.extract_strided_slice %6 {offsets = [0, 16], sizes = [10, 8], strides = [1, 1]} : vector<10x64xbf16> to vector<10x8xbf16>
    %101 = vector.extract_strided_slice %8 {offsets = [0, 48], sizes = [10, 8], strides = [1, 1]} : vector<10x64xbf16> to vector<10x8xbf16>
    %cst_60 = arith.constant dense<0.000000e+00> : vector<8x10xf32>
    %102 = tpu.matmul %99, %100, %cst_60 {dimension_numbers = #tpu.dot_dimension_numbers<[1], [1], [0], [0], [0, 0, 1, 0], [], []>} : vector<8x8xbf16>, vector<10x8xbf16>, vector<8x10xf32> -> vector<8x10xf32>
    %cst_61 = arith.constant 0.353553385 : f32
    %103 = vector.broadcast %cst_61 : f32 to vector<8x10xf32>
    %104 = arith.mulf %102, %103 : vector<8x10xf32>
    %cst_62 = arith.constant 0.000000e+00 : f32
    %105 = vector.broadcast %cst_62 : f32 to vector<1x10xf32>
    %106 = arith.cmpf oeq, %10, %105 : vector<1x10xf32>
    %cst_63 = arith.constant -1.000000e+09 : f32
    %107 = vector.shape_cast %106 : vector<1x10xi1> to vector<1x10xi1>
    %108 = vector.broadcast %107 : vector<1x10xi1> to vector<8x10xi1>
    %109 = vector.broadcast %cst_63 : f32 to vector<8x10xf32>
    %110 = arith.select %108, %109, %104 : vector<8x10xi1>, vector<8x10xf32>
    %c2 = arith.constant 2 : index
    %c0_64 = arith.constant 0 : index
    %c0_65 = arith.constant 0 : index
    %111 = vector.load %arg9[%c2, %c0_64, %c0_65] : memref<4x8x1xf32, #tpu.memory_space<vmem>>, vector<1x8x1xf32>
    %112 = vector.shape_cast %111 : vector<1x8x1xf32> to vector<8x1xf32>
    %cst_66 = arith.constant dense<0xFF800000> : vector<8xf32>
    %113 = vector.multi_reduction <maximumf>, %110, %cst_66 [1] : vector<8x10xf32> to vector<8xf32>
    %114 = vector.shape_cast %113 : vector<8xf32> to vector<8x1xf32>
    %115 = arith.maximumf %112, %114 : vector<8x1xf32>
    %116 = arith.subf %112, %115 : vector<8x1xf32>
    %117 = math.exp %116 : vector<8x1xf32>
    %118 = vector.broadcast %115 : vector<8x1xf32> to vector<8x10xf32>
    %119 = arith.subf %110, %118 : vector<8x10xf32>
    %120 = math.exp %119 : vector<8x10xf32>
    %c2_67 = arith.constant 2 : index
    %c0_68 = arith.constant 0 : index
    %c0_69 = arith.constant 0 : index
    %121 = vector.load %arg10[%c2_67, %c0_68, %c0_69] : memref<4x8x1xf32, #tpu.memory_space<vmem>>, vector<1x8x1xf32>
    %122 = vector.shape_cast %121 : vector<1x8x1xf32> to vector<8x1xf32>
    %123 = arith.mulf %117, %122 : vector<8x1xf32>
    %cst_70 = arith.constant dense<0.000000e+00> : vector<8xf32>
    %124 = vector.multi_reduction <add>, %120, %cst_70 [1] : vector<8x10xf32> to vector<8xf32>
    %125 = vector.shape_cast %124 : vector<8xf32> to vector<8x1xf32>
    %126 = arith.addf %123, %125 : vector<8x1xf32>
    %c2_71 = arith.constant 2 : index
    %c0_72 = arith.constant 0 : index
    %c0_73 = arith.constant 0 : index
    %127 = vector.load %arg10[%c2_71, %c0_72, %c0_73] : memref<4x8x1xf32, #tpu.memory_space<vmem>>, vector<1x8x1xf32>
    %128 = vector.shape_cast %127 : vector<1x8x1xf32> to vector<8x1xf32>
    %129 = vector.shape_cast %126 : vector<8x1xf32> to vector<1x8x1xf32>
    tpu.vector_store %arg10[%c2_71, %c0_72, %c0_73], %129 {strides = array<i32>} : memref<4x8x1xf32, #tpu.memory_space<vmem>>, vector<1x8x1xf32>,
    %c2_74 = arith.constant 2 : index
    %c0_75 = arith.constant 0 : index
    %c0_76 = arith.constant 0 : index
    %130 = vector.load %arg11[%c2_74, %c0_75, %c0_76] : memref<4x8x8xf32, #tpu.memory_space<vmem>>, vector<1x8x8xf32>
    %131 = vector.shape_cast %130 : vector<1x8x8xf32> to vector<8x8xf32>
    %132 = vector.broadcast %117 : vector<8x1xf32> to vector<8x8xf32>
    %133 = arith.mulf %132, %131 : vector<8x8xf32>
    %134 = arith.truncf %120 : vector<8x10xf32> to vector<8x10xbf16>
    %cst_77 = arith.constant dense<0.000000e+00> : vector<8x8xf32>
    %135 = tpu.matmul %134, %101, %cst_77 {dimension_numbers = #tpu.dot_dimension_numbers<[1], [0], [0], [1], [0, 0, 1, 1], [], []>} : vector<8x10xbf16>, vector<10x8xbf16>, vector<8x8xf32> -> vector<8x8xf32>
    %136 = arith.addf %133, %135 : vector<8x8xf32>
    %c2_78 = arith.constant 2 : index
    %c0_79 = arith.constant 0 : index
    %c0_80 = arith.constant 0 : index
    %137 = vector.load %arg11[%c2_78, %c0_79, %c0_80] : memref<4x8x8xf32, #tpu.memory_space<vmem>>, vector<1x8x8xf32>
    %138 = vector.shape_cast %137 : vector<1x8x8xf32> to vector<8x8xf32>
    %139 = vector.shape_cast %136 : vector<8x8xf32> to vector<1x8x8xf32>
    tpu.vector_store %arg11[%c2_78, %c0_79, %c0_80], %139 {strides = array<i32>} : memref<4x8x8xf32, #tpu.memory_space<vmem>>, vector<1x8x8xf32>,
    %c2_81 = arith.constant 2 : index
    %c0_82 = arith.constant 0 : index
    %c0_83 = arith.constant 0 : index
    %140 = vector.load %arg9[%c2_81, %c0_82, %c0_83] : memref<4x8x1xf32, #tpu.memory_space<vmem>>, vector<1x8x1xf32>
    %141 = vector.shape_cast %140 : vector<1x8x1xf32> to vector<8x1xf32>
    %142 = vector.shape_cast %115 : vector<8x1xf32> to vector<1x8x1xf32>
    tpu.vector_store %arg9[%c2_81, %c0_82, %c0_83], %142 {strides = array<i32>} : memref<4x8x1xf32, #tpu.memory_space<vmem>>, vector<1x8x1xf32>,
    %143 = vector.extract_strided_slice %4 {offsets = [0, 24], sizes = [8, 8], strides = [1, 1]} : vector<8x32xbf16> to vector<8x8xbf16>
    %144 = vector.extract_strided_slice %6 {offsets = [0, 24], sizes = [10, 8], strides = [1, 1]} : vector<10x64xbf16> to vector<10x8xbf16>
    %145 = vector.extract_strided_slice %8 {offsets = [0, 56], sizes = [10, 8], strides = [1, 1]} : vector<10x64xbf16> to vector<10x8xbf16>
    %cst_84 = arith.constant dense<0.000000e+00> : vector<8x10xf32>
    %146 = tpu.matmul %143, %144, %cst_84 {dimension_numbers = #tpu.dot_dimension_numbers<[1], [1], [0], [0], [0, 0, 1, 0], [], []>} : vector<8x8xbf16>, vector<10x8xbf16>, vector<8x10xf32> -> vector<8x10xf32>
    %cst_85 = arith.constant 0.353553385 : f32
    %147 = vector.broadcast %cst_85 : f32 to vector<8x10xf32>
    %148 = arith.mulf %146, %147 : vector<8x10xf32>
    %cst_86 = arith.constant 0.000000e+00 : f32
    %149 = vector.broadcast %cst_86 : f32 to vector<1x10xf32>
    %150 = arith.cmpf oeq, %10, %149 : vector<1x10xf32>
    %cst_87 = arith.constant -1.000000e+09 : f32
    %151 = vector.shape_cast %150 : vector<1x10xi1> to vector<1x10xi1>
    %152 = vector.broadcast %151 : vector<1x10xi1> to vector<8x10xi1>
    %153 = vector.broadcast %cst_87 : f32 to vector<8x10xf32>
    %154 = arith.select %152, %153, %148 : vector<8x10xi1>, vector<8x10xf32>
    %c3 = arith.constant 3 : index
    %c0_88 = arith.constant 0 : index
    %c0_89 = arith.constant 0 : index
    %155 = vector.load %arg9[%c3, %c0_88, %c0_89] : memref<4x8x1xf32, #tpu.memory_space<vmem>>, vector<1x8x1xf32>
    %156 = vector.shape_cast %155 : vector<1x8x1xf32> to vector<8x1xf32>
    %cst_90 = arith.constant dense<0xFF800000> : vector<8xf32>
    %157 = vector.multi_reduction <maximumf>, %154, %cst_90 [1] : vector<8x10xf32> to vector<8xf32>
    %158 = vector.shape_cast %157 : vector<8xf32> to vector<8x1xf32>
    %159 = arith.maximumf %156, %158 : vector<8x1xf32>
    %160 = arith.subf %156, %159 : vector<8x1xf32>
    %161 = math.exp %160 : vector<8x1xf32>
    %162 = vector.broadcast %159 : vector<8x1xf32> to vector<8x10xf32>
    %163 = arith.subf %154, %162 : vector<8x10xf32>
    %164 = math.exp %163 : vector<8x10xf32>
    %c3_91 = arith.constant 3 : index
    %c0_92 = arith.constant 0 : index
    %c0_93 = arith.constant 0 : index
    %165 = vector.load %arg10[%c3_91, %c0_92, %c0_93] : memref<4x8x1xf32, #tpu.memory_space<vmem>>, vector<1x8x1xf32>
    %166 = vector.shape_cast %165 : vector<1x8x1xf32> to vector<8x1xf32>
    %167 = arith.mulf %161, %166 : vector<8x1xf32>
    %cst_94 = arith.constant dense<0.000000e+00> : vector<8xf32>
    %168 = vector.multi_reduction <add>, %164, %cst_94 [1] : vector<8x10xf32> to vector<8xf32>
    %169 = vector.shape_cast %168 : vector<8xf32> to vector<8x1xf32>
    %170 = arith.addf %167, %169 : vector<8x1xf32>
    %c3_95 = arith.constant 3 : index
    %c0_96 = arith.constant 0 : index
    %c0_97 = arith.constant 0 : index
    %171 = vector.load %arg10[%c3_95, %c0_96, %c0_97] : memref<4x8x1xf32, #tpu.memory_space<vmem>>, vector<1x8x1xf32>
    %172 = vector.shape_cast %171 : vector<1x8x1xf32> to vector<8x1xf32>
    %173 = vector.shape_cast %170 : vector<8x1xf32> to vector<1x8x1xf32>
    tpu.vector_store %arg10[%c3_95, %c0_96, %c0_97], %173 {strides = array<i32>} : memref<4x8x1xf32, #tpu.memory_space<vmem>>, vector<1x8x1xf32>,
    %c3_98 = arith.constant 3 : index
    %c0_99 = arith.constant 0 : index
    %c0_100 = arith.constant 0 : index
    %174 = vector.load %arg11[%c3_98, %c0_99, %c0_100] : memref<4x8x8xf32, #tpu.memory_space<vmem>>, vector<1x8x8xf32>
    %175 = vector.shape_cast %174 : vector<1x8x8xf32> to vector<8x8xf32>
    %176 = vector.broadcast %161 : vector<8x1xf32> to vector<8x8xf32>
    %177 = arith.mulf %176, %175 : vector<8x8xf32>
    %178 = arith.truncf %164 : vector<8x10xf32> to vector<8x10xbf16>
    %cst_101 = arith.constant dense<0.000000e+00> : vector<8x8xf32>
    %179 = tpu.matmul %178, %145, %cst_101 {dimension_numbers = #tpu.dot_dimension_numbers<[1], [0], [0], [1], [0, 0, 1, 1], [], []>} : vector<8x10xbf16>, vector<10x8xbf16>, vector<8x8xf32> -> vector<8x8xf32>
    %180 = arith.addf %177, %179 : vector<8x8xf32>
    %c3_102 = arith.constant 3 : index
    %c0_103 = arith.constant 0 : index
    %c0_104 = arith.constant 0 : index
    %181 = vector.load %arg11[%c3_102, %c0_103, %c0_104] : memref<4x8x8xf32, #tpu.memory_space<vmem>>, vector<1x8x8xf32>
    %182 = vector.shape_cast %181 : vector<1x8x8xf32> to vector<8x8xf32>
    %183 = vector.shape_cast %180 : vector<8x8xf32> to vector<1x8x8xf32>
    tpu.vector_store %arg11[%c3_102, %c0_103, %c0_104], %183 {strides = array<i32>} : memref<4x8x8xf32, #tpu.memory_space<vmem>>, vector<1x8x8xf32>,
    %c3_105 = arith.constant 3 : index
    %c0_106 = arith.constant 0 : index
    %c0_107 = arith.constant 0 : index
    %184 = vector.load %arg9[%c3_105, %c0_106, %c0_107] : memref<4x8x1xf32, #tpu.memory_space<vmem>>, vector<1x8x1xf32>
    %185 = vector.shape_cast %184 : vector<1x8x1xf32> to vector<8x1xf32>
    %186 = vector.shape_cast %159 : vector<8x1xf32> to vector<1x8x1xf32>
    tpu.vector_store %arg9[%c3_105, %c0_106, %c0_107], %186 {strides = array<i32>} : memref<4x8x1xf32, #tpu.memory_space<vmem>>, vector<1x8x1xf32>,
    %c0_i32_108 = arith.constant 0 : i32
    %187 = arith.cmpi eq, %arg3, %c0_i32_108 : i32
    %188 = arith.extui %187 : i1 to i32
    %c0_i32_109 = arith.constant 0 : i32
    %189 = arith.cmpi ne, %188, %c0_i32_109 : i32
    scf.if %189 {
      %c0_110 = arith.constant 0 : index
      %c0_111 = arith.constant 0 : index
      %c0_112 = arith.constant 0 : index
      %190 = vector.load %arg11[%c0_110, %c0_111, %c0_112] : memref<4x8x8xf32, #tpu.memory_space<vmem>>, vector<1x8x8xf32>
      %191 = vector.shape_cast %190 : vector<1x8x8xf32> to vector<8x8xf32>
      %c0_113 = arith.constant 0 : index
      %c0_114 = arith.constant 0 : index
      %c0_115 = arith.constant 0 : index
      %192 = vector.load %arg10[%c0_113, %c0_114, %c0_115] : memref<4x8x1xf32, #tpu.memory_space<vmem>>, vector<1x8x1xf32>
      %193 = vector.shape_cast %192 : vector<1x8x1xf32> to vector<8x1xf32>
      %194 = tpu.reciprocal %193 {approx = true} : vector<8x1xf32> -> vector<8x1xf32>
      %195 = vector.broadcast %194 : vector<8x1xf32> to vector<8x8xf32>
      %196 = arith.mulf %191, %195 : vector<8x8xf32>
      %197 = arith.truncf %196 : vector<8x8xf32> to vector<8x8xbf16>
      %c1_116 = arith.constant 1 : index
      %c0_117 = arith.constant 0 : index
      %c0_118 = arith.constant 0 : index
      %198 = vector.load %arg11[%c1_116, %c0_117, %c0_118] : memref<4x8x8xf32, #tpu.memory_space<vmem>>, vector<1x8x8xf32>
      %199 = vector.shape_cast %198 : vector<1x8x8xf32> to vector<8x8xf32>
      %c1_119 = arith.constant 1 : index
      %c0_120 = arith.constant 0 : index
      %c0_121 = arith.constant 0 : index
      %200 = vector.load %arg10[%c1_119, %c0_120, %c0_121] : memref<4x8x1xf32, #tpu.memory_space<vmem>>, vector<1x8x1xf32>
      %201 = vector.shape_cast %200 : vector<1x8x1xf32> to vector<8x1xf32>
      %202 = tpu.reciprocal %201 {approx = true} : vector<8x1xf32> -> vector<8x1xf32>
      %203 = vector.broadcast %202 : vector<8x1xf32> to vector<8x8xf32>
      %204 = arith.mulf %199, %203 : vector<8x8xf32>
      %205 = arith.truncf %204 : vector<8x8xf32> to vector<8x8xbf16>
      %c2_122 = arith.constant 2 : index
      %c0_123 = arith.constant 0 : index
      %c0_124 = arith.constant 0 : index
      %206 = vector.load %arg11[%c2_122, %c0_123, %c0_124] : memref<4x8x8xf32, #tpu.memory_space<vmem>>, vector<1x8x8xf32>
      %207 = vector.shape_cast %206 : vector<1x8x8xf32> to vector<8x8xf32>
      %c2_125 = arith.constant 2 : index
      %c0_126 = arith.constant 0 : index
      %c0_127 = arith.constant 0 : index
      %208 = vector.load %arg10[%c2_125, %c0_126, %c0_127] : memref<4x8x1xf32, #tpu.memory_space<vmem>>, vector<1x8x1xf32>
      %209 = vector.shape_cast %208 : vector<1x8x1xf32> to vector<8x1xf32>
      %210 = tpu.reciprocal %209 {approx = true} : vector<8x1xf32> -> vector<8x1xf32>
      %211 = vector.broadcast %210 : vector<8x1xf32> to vector<8x8xf32>
      %212 = arith.mulf %207, %211 : vector<8x8xf32>
      %213 = arith.truncf %212 : vector<8x8xf32> to vector<8x8xbf16>
      %c3_128 = arith.constant 3 : index
      %c0_129 = arith.constant 0 : index
      %c0_130 = arith.constant 0 : index
      %214 = vector.load %arg11[%c3_128, %c0_129, %c0_130] : memref<4x8x8xf32, #tpu.memory_space<vmem>>, vector<1x8x8xf32>
      %215 = vector.shape_cast %214 : vector<1x8x8xf32> to vector<8x8xf32>
      %c3_131 = arith.constant 3 : index
      %c0_132 = arith.constant 0 : index
      %c0_133 = arith.constant 0 : index
      %216 = vector.load %arg10[%c3_131, %c0_132, %c0_133] : memref<4x8x1xf32, #tpu.memory_space<vmem>>, vector<1x8x1xf32>
      %217 = vector.shape_cast %216 : vector<1x8x1xf32> to vector<8x1xf32>
      %218 = tpu.reciprocal %217 {approx = true} : vector<8x1xf32> -> vector<8x1xf32>
      %219 = vector.broadcast %218 : vector<8x1xf32> to vector<8x8xf32>
      %220 = arith.mulf %215, %219 : vector<8x8xf32>
      %221 = arith.truncf %220 : vector<8x8xf32> to vector<8x8xbf16>
      %222 = tpu.concatenate %197, %205, %213, %221 in 1 : vector<8x8xbf16>, vector<8x8xbf16>, vector<8x8xbf16>, vector<8x8xbf16> -> vector<8x32xbf16>
      %c0_134 = arith.constant 0 : index
      %c0_135 = arith.constant 0 : index
      %c0_136 = arith.constant 0 : index
      %223 = vector.load %arg8[%c0_134, %c0_135, %c0_136] : memref<1x8x32xbf16, #tpu.memory_space<vmem>>, vector<1x8x32xbf16>
      %224 = vector.shape_cast %223 : vector<1x8x32xbf16> to vector<8x32xbf16>
      %225 = vector.shape_cast %222 : vector<8x32xbf16> to vector<1x8x32xbf16>
      tpu.vector_store %arg8[%c0_134, %c0_135, %c0_136], %225 {strides = array<i32>} : memref<1x8x32xbf16, #tpu.memory_space<vmem>>, vector<1x8x32xbf16>,
    } else {
    }
    return
  }
  func.func @transform_0(%arg0: i32, %arg1: i32, %arg2: i32, %arg3: i32) -> (i32, i32, i32) {
    %c0_i32 = arith.constant 0 : i32
    %c0_i32_0 = arith.constant 0 : i32
    return %arg0, %arg2, %c0_i32 : i32, i32, i32
  }
  func.func @transform_1(%arg0: i32, %arg1: i32, %arg2: i32, %arg3: i32) -> (i32, i32, i32) {
    %c0_i32 = arith.constant 0 : i32
    %c0_i32_0 = arith.constant 0 : i32
    return %arg0, %arg3, %c0_i32 : i32, i32, i32
  }
  func.func @transform_2(%arg0: i32, %arg1: i32, %arg2: i32, %arg3: i32) -> (i32, i32, i32) {
    %c0_i32 = arith.constant 0 : i32
    %c0_i32_0 = arith.constant 0 : i32
    return %arg0, %arg3, %c0_i32 : i32, i32, i32
  }
  func.func @transform_3(%arg0: i32, %arg1: i32, %arg2: i32, %arg3: i32) -> (i32, i32, i32) {
    %c0_i32 = arith.constant 0 : i32
    %c0_i32_0 = arith.constant 0 : i32
    return %arg0, %c0_i32, %arg3 : i32, i32, i32
  }
  func.func @transform_4(%arg0: i32, %arg1: i32, %arg2: i32, %arg3: i32) -> (i32, i32, i32) {
    %c0_i32 = arith.constant 0 : i32
    return %arg0, %arg2, %arg1 : i32, i32, i32
  }
}

module attributes {stable_mosaic.version = 11 : i64} {
  func.func @_ffn_add_norm_kernel(%arg0: i32, %arg1: i32, %arg2: memref<16x32xbf16, #tpu.memory_space<vmem>>, %arg3: memref<32x512xbf16, #tpu.memory_space<vmem>>, %arg4: memref<1x512xf32, #tpu.memory_space<vmem>>, %arg5: memref<512x32xbf16, #tpu.memory_space<vmem>>, %arg6: memref<1x32xf32, #tpu.memory_space<vmem>>, %arg7: memref<16x32xbf16, #tpu.memory_space<vmem>>, %arg8: memref<1x32xf32, #tpu.memory_space<vmem>>, %arg9: memref<1x32xf32, #tpu.memory_space<vmem>>, %arg10: memref<16x32xf32, #tpu.memory_space<vmem>>, %arg11: memref<16x32xf32, #tpu.memory_space<vmem>>) attributes {dimension_semantics = [#tpu.dimension_semantics<parallel>, #tpu.dimension_semantics<arbitrary>], iteration_bounds = array<i64: 1, 4>, scalar_prefetch = 0 : i64, scratch_operands = 1 : i64, tpu.core_type = #tpu.core_type<tc>, window_params = [{transform_indices = @transform_0, window_bounds = array<i64: 16, 32>}, {transform_indices = @transform_1, window_bounds = array<i64: 32, 512>}, {transform_indices = @transform_2, window_bounds = array<i64: 1, 512>}, {transform_indices = @transform_3, window_bounds = array<i64: 512, 32>}, {pipeline_mode = #tpu.pipeline_mode<synchronous>, transform_indices = @transform_4, window_bounds = array<i64: 1, 32>}, {transform_indices = @transform_5, window_bounds = array<i64: 16, 32>}, {pipeline_mode = #tpu.pipeline_mode<synchronous>, transform_indices = @transform_6, window_bounds = array<i64: 1, 32>}, {pipeline_mode = #tpu.pipeline_mode<synchronous>, transform_indices = @transform_7, window_bounds = array<i64: 1, 32>}, {transform_indices = @transform_8, window_bounds = array<i64: 16, 32>}]} {
    %c0_i32 = arith.constant 0 : i32
    %0 = arith.cmpi eq, %arg1, %c0_i32 : i32
    %1 = arith.extui %0 : i1 to i32
    %c0_i32_0 = arith.constant 0 : i32
    %2 = arith.cmpi ne, %1, %c0_i32_0 : i32
    scf.if %2 {
      %cst_15 = arith.constant 0.000000e+00 : f32
      %20 = vector.broadcast %cst_15 : f32 to vector<16x32xf32>
      %c0_16 = arith.constant 0 : index
      %c0_17 = arith.constant 0 : index
      %21 = vector.load %arg11[%c0_16, %c0_17] : memref<16x32xf32, #tpu.memory_space<vmem>>, vector<16x32xf32>
      tpu.vector_store %arg11[%c0_16, %c0_17], %20 {strides = array<i32>} : memref<16x32xf32, #tpu.memory_space<vmem>>, vector<16x32xf32>,
    } else {
    }
    %c0 = arith.constant 0 : index
    %c0_1 = arith.constant 0 : index
    %3 = vector.load %arg2[%c0, %c0_1] : memref<16x32xbf16, #tpu.memory_space<vmem>>, vector<16x32xbf16>
    %c0_2 = arith.constant 0 : index
    %c0_3 = arith.constant 0 : index
    %4 = vector.load %arg3[%c0_2, %c0_3] : memref<32x512xbf16, #tpu.memory_space<vmem>>, vector<32x512xbf16>
    %cst = arith.constant dense<0.000000e+00> : vector<16x512xf32>
    %5 = tpu.matmul %3, %4, %cst {dimension_numbers = #tpu.dot_dimension_numbers<[1], [0], [0], [1], [0, 0, 1, 1], [], []>} : vector<16x32xbf16>, vector<32x512xbf16>, vector<16x512xf32> -> vector<16x512xf32>
    %c0_4 = arith.constant 0 : index
    %c0_5 = arith.constant 0 : index
    %6 = vector.load %arg4[%c0_4, %c0_5] : memref<1x512xf32, #tpu.memory_space<vmem>>, vector<1x512xf32>
    %7 = vector.broadcast %6 : vector<1x512xf32> to vector<16x512xf32>
    %8 = arith.addf %5, %7 : vector<16x512xf32>
    %cst_6 = arith.constant 0.000000e+00 : f32
    %9 = vector.broadcast %cst_6 : f32 to vector<16x512xf32>
    %10 = arith.maximumf %8, %9 : vector<16x512xf32>
    %c0_7 = arith.constant 0 : index
    %c0_8 = arith.constant 0 : index
    %11 = vector.load %arg11[%c0_7, %c0_8] : memref<16x32xf32, #tpu.memory_space<vmem>>, vector<16x32xf32>
    %12 = arith.truncf %10 : vector<16x512xf32> to vector<16x512xbf16>
    %c0_9 = arith.constant 0 : index
    %c0_10 = arith.constant 0 : index
    %13 = vector.load %arg5[%c0_9, %c0_10] : memref<512x32xbf16, #tpu.memory_space<vmem>>, vector<512x32xbf16>
    %cst_11 = arith.constant dense<0.000000e+00> : vector<16x32xf32>
    %14 = tpu.matmul %12, %13, %cst_11 {dimension_numbers = #tpu.dot_dimension_numbers<[1], [0], [0], [1], [0, 0, 1, 1], [], []>} : vector<16x512xbf16>, vector<512x32xbf16>, vector<16x32xf32> -> vector<16x32xf32>
    %15 = arith.addf %11, %14 : vector<16x32xf32>
    %c0_12 = arith.constant 0 : index
    %c0_13 = arith.constant 0 : index
    %16 = vector.load %arg11[%c0_12, %c0_13] : memref<16x32xf32, #tpu.memory_space<vmem>>, vector<16x32xf32>
    tpu.vector_store %arg11[%c0_12, %c0_13], %15 {strides = array<i32>} : memref<16x32xf32, #tpu.memory_space<vmem>>, vector<16x32xf32>,
    %c3_i32 = arith.constant 3 : i32
    %17 = arith.cmpi eq, %arg1, %c3_i32 : i32
    %18 = arith.extui %17 : i1 to i32
    %c0_i32_14 = arith.constant 0 : i32
    %19 = arith.cmpi ne, %18, %c0_i32_14 : i32
    scf.if %19 {
      %c0_15 = arith.constant 0 : index
      %c0_16 = arith.constant 0 : index
      %20 = vector.load %arg7[%c0_15, %c0_16] : memref<16x32xbf16, #tpu.memory_space<vmem>>, vector<16x32xbf16>
      %21 = arith.extf %20 : vector<16x32xbf16> to vector<16x32xf32>
      %c0_17 = arith.constant 0 : index
      %c0_18 = arith.constant 0 : index
      %22 = vector.load %arg11[%c0_17, %c0_18] : memref<16x32xf32, #tpu.memory_space<vmem>>, vector<16x32xf32>
      %23 = arith.addf %21, %22 : vector<16x32xf32>
      %c0_19 = arith.constant 0 : index
      %c0_20 = arith.constant 0 : index
      %24 = vector.load %arg6[%c0_19, %c0_20] : memref<1x32xf32, #tpu.memory_space<vmem>>, vector<1x32xf32>
      %25 = vector.broadcast %24 : vector<1x32xf32> to vector<16x32xf32>
      %26 = arith.addf %23, %25 : vector<16x32xf32>
      %cst_21 = arith.constant dense<0.000000e+00> : vector<16xf32>
      %27 = vector.multi_reduction <add>, %26, %cst_21 [1] : vector<16x32xf32> to vector<16xf32>
      %28 = vector.shape_cast %27 : vector<16xf32> to vector<16x1xf32>
      %cst_22 = arith.constant 3.200000e+01 : f32
      %29 = vector.broadcast %cst_22 : f32 to vector<16x1xf32>
      %30 = arith.divf %28, %29 : vector<16x1xf32>
      %31 = vector.broadcast %30 : vector<16x1xf32> to vector<16x32xf32>
      %32 = arith.subf %26, %31 : vector<16x32xf32>
      %33 = arith.mulf %32, %32 : vector<16x32xf32>
      %cst_23 = arith.constant dense<0.000000e+00> : vector<16xf32>
      %34 = vector.multi_reduction <add>, %33, %cst_23 [1] : vector<16x32xf32> to vector<16xf32>
      %35 = vector.shape_cast %34 : vector<16xf32> to vector<16x1xf32>
      %cst_24 = arith.constant 3.200000e+01 : f32
      %36 = vector.broadcast %cst_24 : f32 to vector<16x1xf32>
      %37 = arith.divf %35, %36 : vector<16x1xf32>
      %38 = vector.broadcast %30 : vector<16x1xf32> to vector<16x32xf32>
      %39 = arith.subf %26, %38 : vector<16x32xf32>
      %cst_25 = arith.constant 9.99999997E-7 : f32
      %40 = vector.broadcast %cst_25 : f32 to vector<16x1xf32>
      %41 = arith.addf %37, %40 : vector<16x1xf32>
      %42 = math.rsqrt %41 : vector<16x1xf32>
      %43 = vector.broadcast %42 : vector<16x1xf32> to vector<16x32xf32>
      %44 = arith.mulf %39, %43 : vector<16x32xf32>
      %c0_26 = arith.constant 0 : index
      %c0_27 = arith.constant 0 : index
      %45 = vector.load %arg8[%c0_26, %c0_27] : memref<1x32xf32, #tpu.memory_space<vmem>>, vector<1x32xf32>
      %46 = vector.broadcast %45 : vector<1x32xf32> to vector<16x32xf32>
      %47 = arith.mulf %46, %44 : vector<16x32xf32>
      %c0_28 = arith.constant 0 : index
      %c0_29 = arith.constant 0 : index
      %48 = vector.load %arg9[%c0_28, %c0_29] : memref<1x32xf32, #tpu.memory_space<vmem>>, vector<1x32xf32>
      %49 = vector.broadcast %48 : vector<1x32xf32> to vector<16x32xf32>
      %50 = arith.addf %47, %49 : vector<16x32xf32>
      %c0_30 = arith.constant 0 : index
      %c0_31 = arith.constant 0 : index
      %51 = vector.load %arg10[%c0_30, %c0_31] : memref<16x32xf32, #tpu.memory_space<vmem>>, vector<16x32xf32>
      tpu.vector_store %arg10[%c0_30, %c0_31], %50 {strides = array<i32>} : memref<16x32xf32, #tpu.memory_space<vmem>>, vector<16x32xf32>,
    } else {
    }
    return
  }
  func.func @transform_0(%arg0: i32, %arg1: i32) -> (i32, i32) {
    %c0_i32 = arith.constant 0 : i32
    %c0_i32_0 = arith.constant 0 : i32
    return %arg0, %c0_i32 : i32, i32
  }
  func.func @transform_1(%arg0: i32, %arg1: i32) -> (i32, i32) {
    %c0_i32 = arith.constant 0 : i32
    %c0_i32_0 = arith.constant 0 : i32
    return %c0_i32, %arg1 : i32, i32
  }
  func.func @transform_2(%arg0: i32, %arg1: i32) -> (i32, i32) {
    %c0_i32 = arith.constant 0 : i32
    %c0_i32_0 = arith.constant 0 : i32
    return %c0_i32, %arg1 : i32, i32
  }
  func.func @transform_3(%arg0: i32, %arg1: i32) -> (i32, i32) {
    %c0_i32 = arith.constant 0 : i32
    %c0_i32_0 = arith.constant 0 : i32
    return %arg1, %c0_i32 : i32, i32
  }
  func.func @transform_4(%arg0: i32, %arg1: i32) -> (i32, i32) {
    %c0_i32 = arith.constant 0 : i32
    %c0_i32_0 = arith.constant 0 : i32
    %c0_i32_1 = arith.constant 0 : i32
    return %c0_i32, %c0_i32_0 : i32, i32
  }
  func.func @transform_5(%arg0: i32, %arg1: i32) -> (i32, i32) {
    %c0_i32 = arith.constant 0 : i32
    %c0_i32_0 = arith.constant 0 : i32
    return %arg0, %c0_i32 : i32, i32
  }
  func.func @transform_6(%arg0: i32, %arg1: i32) -> (i32, i32) {
    %c0_i32 = arith.constant 0 : i32
    %c0_i32_0 = arith.constant 0 : i32
    %c0_i32_1 = arith.constant 0 : i32
    return %c0_i32, %c0_i32_0 : i32, i32
  }
  func.func @transform_7(%arg0: i32, %arg1: i32) -> (i32, i32) {
    %c0_i32 = arith.constant 0 : i32
    %c0_i32_0 = arith.constant 0 : i32
    %c0_i32_1 = arith.constant 0 : i32
    return %c0_i32, %c0_i32_0 : i32, i32
  }
  func.func @transform_8(%arg0: i32, %arg1: i32) -> (i32, i32) {
    %c0_i32 = arith.constant 0 : i32
    %c0_i32_0 = arith.constant 0 : i32
    return %arg0, %c0_i32 : i32, i32
  }
}

</mosaic_0001>

<bundles_post_ra>
// kernel: single_decoder_layer.10
= control target key start
LH: loop header
LB: loop body
LE: loop exit
PB: predicated region body
PF: predicated region fallthrough
CT: control target
= control target key end

     0   :  { %11 = vsyncpa [#allocation4], 0  ;;  %s244_s24 = smov [#allocation3]   ;;  %s245_s26 = smov 64   ;;  %s317_s0 = inlined_call_operand.vmem [shape: bf16[16,32], index: 0, kind: input, shape index: {}]   ;;  %s318_s1 = inlined_call_operand.hbm [shape: bf16[32,32], index: 1, kind: input, shape index: {}]   ;;  %s319_s2 = inlined_call_operand.vmem [shape: f32[1,32], index: 2, kind: input, shape index: {}]   ;;  %s320_s3 = inlined_call_operand.vmem [shape: bf16[16,32], index: 3, kind: input, shape index: {}]   ;;  %s321_s4 = inlined_call_operand.vmem [shape: f32[1,32], index: 4, kind: input, shape index: {}]   ;;  %s322_s5 = inlined_call_operand.vmem [shape: f32[1,32], index: 5, kind: input, shape index: {}]   ;;  %s323_s6 = inlined_call_operand.vmem [shape: bf16[16,32], index: 6, kind: output, shape index: {}]  }
   0x1   :  { %s18_s23 = sshll.u32 %s318_s1, 4  ;;  %s20_s25 = sshll.u32 %s244_s24, 4  ;;  %s19_s23 = int_to_ptr.hbm [resolvable:$true] %s18_s23  ;;  %s21_s25 = int_to_ptr.vmem [resolvable:$true] %s20_s25 }
   0x2   :  { %s246_s27 = smov 4  }
   0x3   :  { %26 = dma.hbm_to_vmem [thread:$0]  %s19_s23, 256, %s21_s25, [#allocation4], %s245_s26, %s245_s26, %s246_s27  }
   0x4   :  { %242 = dma.done.wait [#allocation4], 256  }
   0x5   :  { %243 = vsyncadd [#allocation4], 4294967040  ;;  %vm44_vm0 = vcmask 261120   ;;  %v247_v0 = vmov 0.0   ;;  %v199_v1 = vld [vmem:[#allocation3 + $0x8] sm:$0xff]  ;;  %v198_v2 = vld [vmem:[#allocation3] sm:$0xff] }
   0x6   :  { %45 = vst.msk [vmem:[#allocation2] sm:$0xff] %vm44_vm0, %v247_v0  ;;  %82 = vmatpush.bf16.msra.mxu0 %v199_v1  ;;  %v197_v3 = vld [vmem:[%s317_s0] sm:$0xff]  ;;  %v248_v22 = vmov 32.0   ;;  %vm176_vm6 = vcmask 257024  }
   0x7   :  { %46 = vst.msk [vmem:[#allocation2 + $0x8] sm:$0xff] %vm44_vm0, %v247_v0  ;;  %v201_v7 = vld [vmem:[%s320_s3] sm:$0xff]   ;;  %212 = vrcp.f32 %v248_v22 }
   0x8   :  { %v202_v9 = vunpack.c.l.bf16 %v201_v7  ;;  %v209_v12 = vld [vmem:[%s319_s2] ss:$0 sm:$0xff]  ;;  %v203_v17 = vunpack.c.h.bf16 %v201_v7 }
   0x9   :  { %v210_v53 = vld [vmem:[%s321_s4] ss:$0 sm:$0xff] }
   0xa   :  { %83 = vmatpush.bf16.msra.mxu0 %v198_v2  ;;  %v211_v56 = vld [vmem:[%s322_s5] ss:$0 sm:$0xff] }
   0xd   :  { %196 = vmatmul.msk.bf16.vlgmr.msra.gmra.mxu0 %vm44_vm0, %v197_v3  ;;  %v47_v4 = vld [vmem:[#allocation2] sm:$0xff]  ;;  %v213_v23 = vpop.eup %212 }
   0xe   :  { %v48_v8 = vld [vmem:[#allocation2 + $0x8] sm:$0xff]  ;;  %v118_v24 = vmul.f32 32.0, %v213_v23  ;;  %vm122_vm1 = vweird.f32 %v213_v23 }
  0x10   :  { %v119_v25 = vsub.f32 1.0, %v118_v24 }
  0x12   :  { %v120_v26 = vmul.f32 %v213_v23, %v119_v25 }
  0x14   :  { %v121_v27 = vadd.f32 %v213_v23, %v120_v26 }
  0x16   :  { %v123_v28 = vsel %vm122_vm1, %v213_v23, %v121_v27 }
  0x8a   :  { %v85_v5 = vpop.f32.mrf.mxu0 }
  0x8b   :  { %v90_v6 = vadd.f32 %v85_v5, %v47_v4 }
  0x8d   :  { %92 = vst.msk [vmem:[#allocation2] sm:$0xff] %vm44_vm0, %v90_v6 }
  0x92   :  { %v87_v10 = vpop.f32.mrf.mxu0 }
  0x93   :  { %v91_v11 = vadd.f32 %v87_v10, %v48_v8 }
  0x94   :  { %v101_v13 = vld [vmem:[#allocation2] sm:$0xff] }
  0x95   :  { %93 = vst.msk [vmem:[#allocation2 + $0x8] sm:$0xff] %vm44_vm0, %v91_v11  ;;  %v103_v14 = vadd.f32 %v202_v9, %v101_v13 }
  0x97   :  { %v109_v15 = vadd.f32 %v209_v12, %v103_v14 }
  0x99   :  { %v111_v16 = vsel %vm44_vm0, %v109_v15, 0.0 }
  0x9a   :  { %112 = vadd.xlane.f32.xlu0 %v111_v16 }
  0x9c   :  { %v102_v18 = vld [vmem:[#allocation2 + $0x8] sm:$0xff] }
  0x9d   :  { %v104_v19 = vadd.f32 %v203_v17, %v102_v18 }
  0x9f   :  { %v110_v20 = vadd.f32 %v209_v12, %v104_v19 }
  0xa1   :  { %v114_v21 = vsel %vm44_vm0, %v110_v20, 0.0 }
  0xa2   :  { %115 = vadd.xlane.f32.xlu0 %v114_v21 }
 0x10d   :  { %v113_v29 = vpop.xlane.xlu0 %112 }
 0x10e   :  { %v124_v30 = vmul.f32 %v123_v28, %v113_v29 }
 0x110   :  { %v126_v31 = vsub.f32 %v109_v15, %v124_v30 }
 0x112   :  { %v128_v32 = vmul.f32 %v126_v31, %v126_v31 }
 0x114   :  { %v130_v33 = vsel %vm44_vm0, %v128_v32, 0.0 }
 0x115   :  { %131 = vadd.xlane.f32.xlu1 %v130_v33  ;;  %v116_v34 = vpop.xlane.xlu0 %115 }
 0x116   :  { %v125_v35 = vmul.f32 %v123_v28, %v116_v34 }
 0x118   :  { %v127_v36 = vsub.f32 %v110_v20, %v125_v35 }
 0x11a   :  { %v129_v37 = vmul.f32 %v127_v36, %v127_v36 }
 0x11c   :  { %v133_v38 = vsel %vm44_vm0, %v129_v37, 0.0 }
 0x11d   :  { %134 = vadd.xlane.f32.xlu1 %v133_v38 }
 0x188   :  { %v132_v39 = vpop.xlane.xlu1 %131 }
 0x189   :  { %v136_v40 = vmul.f32 %v132_v39, %v123_v28 }
 0x18b   :  { %v138_v41 = vadd.f32 1e-06, %v136_v40 }
 0x18d   :  { %214 = vrsqrt.f32 %v138_v41  ;;  %vm146_vm3 = vweird.f32 %v138_v41 }
 0x190   :  { %v135_v42 = vpop.xlane.xlu1 %134 }
 0x191   :  { %v137_v43 = vmul.f32 %v135_v42, %v123_v28 }
 0x193   :  { %v215_v44 = vpop.eup %214  ;;  %v139_v45 = vadd.f32 1e-06, %v137_v43 }
 0x194   :  { %v141_v46 = vmul.f32 %v215_v44, %v138_v41  ;;  %vm147_vm2 = vweird.f32 %v215_v44 }
 0x195   :  { %216 = vrsqrt.f32 %v139_v45  ;;  %vm148_vm4 = vmor %vm146_vm3, %vm147_vm2  ;;  %vm156_vm7 = vweird.f32 %v139_v45 }
 0x196   :  { %v142_v47 = vmul.f32 %v215_v44, %v141_v46 }
 0x198   :  { %v143_v48 = vmul.f32 0.5, %v142_v47 }
 0x19a   :  { %v144_v49 = vsub.f32 1.5, %v143_v48 }
 0x19b   :  { %v217_v50 = vpop.eup %216 }
 0x19c   :  { %v145_v51 = vmul.f32 %v215_v44, %v144_v49  ;;  %v151_v52 = vmul.f32 %v217_v50, %v139_v45  ;;  %vm157_vm5 = vweird.f32 %v217_v50 }
 0x19d   :  { %vm158_vm8 = vmor %vm156_vm7, %vm157_vm5 }
 0x19e   :  { %v149_v54 = vsel %vm148_vm4, %v215_v44, %v145_v51  ;;  %v152_v55 = vmul.f32 %v217_v50, %v151_v52 }
 0x19f   :  { %v160_v57 = vmul.f32 %v149_v54, %v126_v31 }
 0x1a0   :  { %v153_v58 = vmul.f32 0.5, %v152_v55 }
 0x1a1   :  { %v166_v59 = vmul.f32 %v210_v53, %v160_v57 }
 0x1a2   :  { %v154_v60 = vsub.f32 1.5, %v153_v58 }
 0x1a3   :  { %v172_v61 = vadd.f32 %v211_v56, %v166_v59 }
 0x1a4   :  { %v155_v62 = vmul.f32 %v217_v50, %v154_v60 }
 0x1a5   :  { %v174_v63 = vpack.c.bf16 %v172_v61, %v172_v61 }
 0x1a6   :  { %v159_v0 = vsel %vm158_vm8, %v217_v50, %v155_v62 }
 0x1a7   :  { %177 = vst.msk [vmem:[%s323_s6] sm:$0xf] %vm176_vm6, %v174_v63  ;;  %v161_v1 = vmul.f32 %v159_v0, %v127_v36 }
 0x1a9   :  { %v167_v2 = vmul.f32 %v210_v53, %v161_v1 }
 0x1ab   :  { %v173_v3 = vadd.f32 %v211_v56, %v167_v2 }
 0x1ad   :  { %v175_v4 = vpack.c.bf16 %v173_v3, %v173_v3 }
 0x1af   :  { %178 = vst.msk [vmem:[%s323_s6 + $0x4] sm:$0xf] %vm176_vm6, %v175_v4 }
 0x1b0   :  { %183 = vsyncpa [#allocation4], 1 }

// kernel: single_decoder_layer.11
= control target key start
LH: loop header
LB: loop body
LE: loop exit
PB: predicated region body
PF: predicated region fallthrough
CT: control target
= control target key end

     0   :  { %8 = vsyncpa [#allocation4], 0  ;;  %s153_s15 = smov [#allocation3]   ;;  %s154_s17 = smov 64   ;;  %s197_s0 = inlined_call_operand.vmem [shape: bf16[16,32], index: 0, kind: input, shape index: {}]   ;;  %s198_s1 = inlined_call_operand.hbm [shape: bf16[32,32], index: 1, kind: input, shape index: {}]   ;;  %s199_s2 = inlined_call_operand.vmem [shape: f32[1,32], index: 2, kind: input, shape index: {}]   ;;  %s200_s3 = inlined_call_operand.vmem [shape: bf16[16,32], index: 3, kind: output, shape index: {}]  }
   0x1   :  { %s15_s14 = sshll.u32 %s198_s1, 4  ;;  %s17_s16 = sshll.u32 %s153_s15, 4  ;;  %s16_s14 = int_to_ptr.hbm [resolvable:$true] %s15_s14  ;;  %s18_s16 = int_to_ptr.vmem [resolvable:$true] %s17_s16 }
   0x2   :  { %s155_s18 = smov 4  }
   0x3   :  { %23 = dma.hbm_to_vmem [thread:$0]  %s16_s14, 256, %s18_s16, [#allocation4], %s154_s17, %s154_s17, %s155_s18  }
   0x4   :  { %151 = dma.done.wait [#allocation4], 256  }
   0x5   :  { %152 = vsyncadd [#allocation4], 4294967040  ;;  %vm35_vm0 = vcmask 261120   ;;  %v156_v0 = vmov 0.0   ;;  %v121_v1 = vld [vmem:[#allocation3 + $0x8] sm:$0xff]  ;;  %v120_v2 = vld [vmem:[#allocation3] sm:$0xff] }
   0x6   :  { %36 = vst.msk [vmem:[#allocation2] sm:$0xff] %vm35_vm0, %v156_v0  ;;  %73 = vmatpush.bf16.msra.mxu0 %v121_v1  ;;  %v119_v3 = vld [vmem:[%s197_s0] sm:$0xff]  ;;  %vm98_vm1 = vcmask 257024  }
   0x7   :  { %37 = vst.msk [vmem:[#allocation2 + $0x8] sm:$0xff] %vm35_vm0, %v156_v0  ;;  %v126_v8 = vld [vmem:[%s199_s2] ss:$0 sm:$0xff] }
   0xa   :  { %74 = vmatpush.bf16.msra.mxu0 %v120_v2 }
   0xd   :  { %118 = vmatmul.msk.bf16.vlgmr.msra.gmra.mxu0 %vm35_vm0, %v119_v3  ;;  %v38_v4 = vld [vmem:[#allocation2] sm:$0xff] }
   0xe   :  { %v39_v7 = vld [vmem:[#allocation2 + $0x8] sm:$0xff] }
  0x8a   :  { %v76_v5 = vpop.f32.mrf.mxu0 }
  0x8b   :  { %v81_v6 = vadd.f32 %v76_v5, %v38_v4 }
  0x8d   :  { %83 = vst.msk [vmem:[#allocation2] sm:$0xff] %vm35_vm0, %v81_v6 }
  0x92   :  { %v78_v9 = vpop.f32.mrf.mxu0 }
  0x93   :  { %v82_v10 = vadd.f32 %v78_v9, %v39_v7 }
  0x94   :  { %v88_v11 = vld [vmem:[#allocation2] sm:$0xff] }
  0x95   :  { %v94_v12 = vadd.f32 %v126_v8, %v88_v11  ;;  %84 = vst.msk [vmem:[#allocation2 + $0x8] sm:$0xff] %vm35_vm0, %v82_v10 }
  0x97   :  { %v96_v13 = vpack.c.bf16 %v94_v12, %v94_v12 }
  0x99   :  { %99 = vst.msk [vmem:[%s200_s3] sm:$0xf] %vm98_vm1, %v96_v13 }
  0x9c   :  { %v89_v14 = vld [vmem:[#allocation2 + $0x8] sm:$0xff] }
  0x9d   :  { %v95_v15 = vadd.f32 %v126_v8, %v89_v14 }
  0x9f   :  { %v97_v16 = vpack.c.bf16 %v95_v15, %v95_v15 }
  0xa1   :  { %100 = vst.msk [vmem:[%s200_s3 + $0x4] sm:$0xf] %vm98_vm1, %v97_v16 }
  0xa2   :  { %105 = vsyncpa [#allocation4], 1 }

// kernel: single_decoder_layer.8
= control target key start
LH: loop header
LB: loop body
LE: loop exit
PB: predicated region body
PF: predicated region fallthrough
CT: control target
= control target key end

     0   :  { %vm19_vm0 = vcmask 785408   ;;  %v108_v1 = vmov 0.0   ;;  %vm47_vm1 = vcmask 261120   ;;  %vm83_vm2 = vcmask 781312   ;;  %s151_s1 = inlined_call_operand.vmem [shape: bf16[32,96], index: 1, kind: input, shape index: {}]   ;;  %s152_s2 = inlined_call_operand.vmem [shape: f32[1,96], index: 2, kind: input, shape index: {}]   ;;  %s153_s0 = inlined_call_operand.vmem [shape: bf16[16,32], index: 0, kind: input, shape index: {}]   ;;  %s154_s3 = inlined_call_operand.vmem [shape: bf16[16,96], index: 3, kind: output, shape index: {}]  }
   0x1   :  { %v105_v0 = vld [vmem:[%s151_s1 + $0x8] sm:$0xff]  ;;  %20 = vst.msk [vmem:[#allocation2] sm:$0xff] %vm19_vm0, %v108_v1  ;;  %v104_v2 = vld [vmem:[%s151_s1] sm:$0xff] }
   0x2   :  { %21 = vst.msk [vmem:[#allocation2 + $0x8] sm:$0xff] %vm19_vm0, %v108_v1  ;;  %57 = vmatpush.bf16.msra.mxu0 %v105_v0  ;;  %v103_v3 = vld [vmem:[%s153_s0] sm:$0xff] }
   0x3   :  { %v107_v8 = vld [vmem:[%s152_s2] ss:$0 sm:$0xff] }
   0x6   :  { %58 = vmatpush.bf16.msra.mxu0 %v104_v2 }
   0x8   :  { %v22_v4 = vld [vmem:[#allocation2] sm:$0xff] }
   0x9   :  { %102 = vmatmul.msk.bf16.vlgmr.msra.gmra.mxu0 %vm47_vm1, %v103_v3  ;;  %v23_v7 = vld [vmem:[#allocation2 + $0x8] sm:$0xff] }
  0x86   :  { %v60_v5 = vpop.f32.mrf.mxu0 }
  0x87   :  { %v65_v6 = vadd.f32 %v60_v5, %v22_v4 }
  0x89   :  { %68 = vst.msk [vmem:[#allocation2] sm:$0xff] %vm19_vm0, %v65_v6 }
  0x8e   :  { %v62_v9 = vpop.f32.mrf.mxu0 }
  0x8f   :  { %v66_v10 = vadd.f32 %v62_v9, %v23_v7 }
  0x90   :  { %v73_v11 = vld [vmem:[#allocation2] sm:$0xff] }
  0x91   :  { %v79_v12 = vadd.f32 %v107_v8, %v73_v11  ;;  %69 = vst.msk [vmem:[#allocation2 + $0x8] sm:$0xff] %vm19_vm0, %v66_v10 }
  0x93   :  { %v81_v13 = vpack.c.bf16 %v79_v12, %v79_v12 }
  0x95   :  { %84 = vst.msk [vmem:[%s154_s3] sm:$0xf] %vm83_vm2, %v81_v13 }
  0x98   :  { %v74_v14 = vld [vmem:[#allocation2 + $0x8] sm:$0xff] }
  0x99   :  { %v80_v15 = vadd.f32 %v107_v8, %v74_v14 }
  0x9b   :  { %v82_v16 = vpack.c.bf16 %v80_v15, %v80_v15 }
  0x9d   :  { %85 = vst.msk [vmem:[%s154_s3 + $0x4] sm:$0xf] %vm83_vm2, %v82_v16 }

// kernel: single_decoder_layer.9
= control target key start
LH: loop header
LB: loop body
LE: loop exit
PB: predicated region body
PF: predicated region fallthrough
CT: control target
= control target key end

     0   :  { %9 = vsyncpa [#allocation6], 0  ;;  %s1391_s0 = inlined_call_operand.vmem [shape: bf16[2,8,96], index: 0, kind: input, shape index: {}, may-alias: {0,1,2}]   ;;  %s1392_s1 = inlined_call_operand.vmem [shape: bf16[2,8,96], index: 1, kind: input, shape index: {}, may-alias: {0,1,2}]   ;;  %s1393_s2 = inlined_call_operand.vmem [shape: bf16[2,8,96], index: 2, kind: input, shape index: {}, may-alias: {0,1,2}]   ;;  %s1394_s3 = inlined_call_operand.hbm [shape: f32[2,8,8], index: 3, kind: input, shape index: {}]   ;;  %s1395_s4 = inlined_call_operand.vmem [shape: bf16[2,8,32], index: 4, kind: output, shape index: {}]  }
   0x1   :  { %11 = vsyncpa [#allocation6 + $0x1], 0  ;;  %s1171_s15 = smov 0   ;;  %s1173_s16 = smov 0  }
   0x2   :  { %s1175_s17 = smov 0   ;;  %s1177_s18 = smov 0  }
   0x3   :  { %s1179_s19 = smov 0   ;;  %s1181_s20 = smov 0  }
   0x4 LB: > { %s926_s21 = sadd.s32 4294967295, %s1127_s20   ;;  %s43_s22 = sadd.s32 1, %s1123_s19  ;;  %s1127_s20 = sphi %s1181_s20, %s17_s20   ;;  %s1123_s19 = sphi %s1179_s19, %s1402_s19   ;;  %s1119_s18 = sphi %s1177_s18, %s1401_s18   ;;  %s1115_s17 = sphi %s1175_s17, %s1400_s17   ;;  %s1111_s16 = sphi %s1173_s16, %s1399_s16   ;;  %s1107_s15 = sphi %s1171_s15, %s1398_s15  }
   0x5   : > { %p45_p0 = scmp.ge.s32.totalorder %s43_s22, 2  ;;  %s138_s23 = sadd.s32 1, %s1115_s17 }
   0x6   : > { %p145_p1 = scmp.ne.s32.totalorder %s1115_s17, %s1111_s16  ;;  %p146_p2 = scmp.eq.s32.totalorder %s1127_s20, 0 }
   0x7   : > { %s1404_s22 = smov (%p45_p0, %s43_s22), 0  ;;  %p151_p4 = scmp.ne.s32.totalorder %s1111_s16, %s1107_s15 }
   0x8   : > { %p1207_p3 = por %p146_p2, %p145_p1  ;;  %s131_s25 = ssub.s32 %s1123_s19, %s1404_s22 }
   0x9   : > { %p152_p5 = scmp.eq.s32.totalorder %s926_s21, 0  ;;  %p136_p6 = scmp.eq.s32.totalorder %s131_s25, 0 }
   0xa   : > { %p954_p8 = scmp.lt.s32.totalorder %s1127_s20, 2  ;;  %s235_s28 = sand.u32 1, %s1115_s17  }
   0xb   : > { %p1214_p7 = por %p152_p5, %p151_p4  ;;  %s931_s29 = sshll.u32 %s1123_s19, 3 }
   0xc   : > { %s1220_s27 = scalar_select %p136_p6, %s1115_s17, %s138_s23  }
   0xd   : > { %s930_s30 = sshll.u32 %s235_s28, 3  ;;  %s245_s7 = scalar_lea.hbm %s1394_s3, %s931_s29 }
   0xe   : > { %s247_s8 = sshll.u32 %s245_s7, 4  ;;  %s239_s9 = scalar_lea.vmem [#allocation5], %s930_s30  ;;  %s248_s8 = int_to_ptr.hbm [resolvable:$true] %s247_s8 }
   0xf   : > { %s249_s10 = sshll.u32 %s239_s9, 4  ;;  %p951_p9 = pnand %p954_p8, %p1207_p3  ;;  %s250_s10 = int_to_ptr.vmem [resolvable:$true] %s249_s10 }
  0x10   : > { %p932_p10 = scmp.ge.s32.totalorder %s1127_s20, 1  ;;  %p254_p11 = scmp.lt.s32.totalorder %s1127_s20, 3 }
  0x11   : > { %s236_s11 = scalar_lea.sflag [#allocation6], %s235_s28 }
  0x12   : > { %953 = dma.hbm_to_vmem [thread:$0]  (!%p951_p9), %s248_s8, 128, %s250_s10, %s236_s11  }
  0x13   : > { %p255_p12 = pnand %p932_p10, %p254_p11 }
  0x14   : > { %s260_s12 = sand.u32 (!%p255_p12), 1, %s1111_s16  }
  0x15   : > { %258 = sbr.rel (%p255_p12) target bundleno = 1253 (0x4e5), region = 36  ;;  %s1232_s13 = sshll.u32 (!%p255_p12), %s260_s12, 3 }
  0x16   : > { %s261_s14 = scalar_lea.sflag (!%p255_p12), [#allocation6], %s260_s12  ;;  %s264_s15 = scalar_lea.vmem (!%p255_p12), [#allocation5], %s1232_s13 }
  0x1a   : > { %1102 = dma.done.wait (%p1214_p7), %s261_s14, 128  }
  0x1b   : > { %1104 = vsyncadd (%p1214_p7), %s261_s14, 4294967168  ;;  %p316_p13 = scmp.lt.s32.totalorder %s1119_s18, 1  ;;  %s1129_s28 = smov 96   ;;  %vm361_vm0 = vcmask 64512   ;;  %vm352_vm1 = vcmask 7168   ;;  %v1132_v12 = vmov -inf  }
  0x1c   : > { %s1130_s26 = smov 88   ;;  %s1131_s5 = smov 120   ;;  %353 = vst.msk [vmem:[#allocation2] sm:$0xff] %vm352_vm1, %v1132_v12  ;;  %v1276_v15 = vld [vmem:[%s264_s15] sm:$0xff]  ;;  %v1136_v21 = vmov 0   ;;  %v1137_v22 = vmov 0.0  }
  0x1d   : > { %s1406_s18 = smov (!%p316_p13, %s1119_s18), 1  ;;  %354 = vst.msk [vmem:[#allocation2 + $0x8] sm:$0xff] %vm352_vm1, %v1132_v12  ;;  %s1133_s9 = smov 64   ;;  %vm396_vm2 = vcmp.eq.f32.partialorder %v1276_v15, 0.0  ;;  %1020 = vset.pattern.permute.xlu1 %v1136_v21  ;;  %1021 = vset.pattern.permute.xlu0 %v1136_v21  ;;  %vm438_vm3 = vcmask 1043456   ;;  %vm771_vm4 = vcmask 130048  }
  0x1e   : > { %s1241_s21 = sshll.u32 %s1406_s18, 2  ;;  %355 = vst.msk [vmem:[#allocation2 + $0x10] sm:$0xff] %vm352_vm1, %v1132_v12  ;;  %s1134_s10 = smov 72   ;;  %1022 = vset.pattern.permute.xlu2 %v1136_v21  ;;  %vm774_vm5 = vcmask 195584   ;;  %vm778_vm6 = vcmask 257024  }
  0x1f   : > { %s329_s25 = scalar_lea.vmem %s1392_s1, %s1241_s21  ;;  %s322_s30 = scalar_lea.vmem %s1391_s0, %s1241_s21  ;;  %356 = vst.msk [vmem:[#allocation2 + $0x18] sm:$0xff] %vm352_vm1, %v1132_v12 }
  0x20   : > { %v367_v0 = vld [vmem:[%s329_s25] sm:$0xf]  ;;  %s336_s8 = scalar_lea.vmem %s1393_s2, %s1241_s21  ;;  %s1135_s11 = smov 104   ;;  %357 = vst.msk [vmem:[#allocation3] sm:$0xff] %vm352_vm1, %v1137_v22 }
  0x21   : > { %v371_v1 = vunpack.c.l.b16 %v367_v0  ;;  %v366_v3 = vld [vmem:[%s322_s30] sm:$0xf]  ;;  %358 = vst.msk [vmem:[#allocation3 + $0x8] sm:$0xff] %vm352_vm1, %v1137_v22  ;;  %s1138_s12 = smov 80   ;;  %s1139_s13 = smov 112  }
  0x22   : > { %v459_v4 = vunpack.c.l.b16 %v366_v3  ;;  %v368_v9 = vld [vmem:[%s336_s8] sm:$0xf]  ;;  %359 = vst.msk [vmem:[#allocation3 + $0x10] sm:$0xff] %vm352_vm1, %v1137_v22  ;;  %s1140_s14 = smov 48   ;;  %s1141_s15 = smov 56  }
  0x23   : > { %v1247_v2 = vpack.c.b16 %v371_v1, %v371_v1  ;;  %v431_v11 = vunpack.c.l.b16 %v368_v9  ;;  %360 = vst.msk [vmem:[#allocation3 + $0x18] sm:$0xff] %vm352_vm1, %v1137_v22  ;;  %v1293_v28 = vld [vmem:[#allocation2] sm:$0xff]  ;;  %s1142_s23 = smov 40   ;;  %s1143_s24 = smov 24  }
  0x24   : > { %v1255_v5 = vpack.c.b16 %v459_v4, %v459_v4  ;;  %362 = vst.msk [vmem:[#allocation4] sm:$0xff] %vm361_vm0, %v1137_v22  ;;  %v487_v50 = vld [vmem:[#allocation2 + $0x8] sm:$0xff]  ;;  %s1144_s25 = smov 8   ;;  %s346_s18 = scalar_lea.vmem %s1395_s4, %s1241_s21 }
  0x25   : > { %373 = vrot.lane.b32.xlu0 %v1247_v2, %s1129_s28  ;;  %463 = vrot.lane.b32.xlu1 %v1247_v2, %s1130_s26  ;;  %v1267_v13 = vpack.c.b16 %v431_v11, %v431_v11  ;;  %363 = vst.msk [vmem:[#allocation4 + $0x8] sm:$0xff] %vm361_vm0, %v1137_v22  ;;  %s1145_s28 = smov 16  }
  0x26   : > { %461 = vrot.lane.b32.xlu2 %v1255_v5, %s1131_s5  ;;  %364 = vst.msk [vmem:[#allocation4 + $0x10] sm:$0xff] %vm361_vm0, %v1137_v22  ;;  %v1316_v55 = vld [vmem:[#allocation2 + $0x18] sm:$0xff] }
  0x27   : > { %365 = vst.msk [vmem:[#allocation4 + $0x18] sm:$0xff] %vm361_vm0, %v1137_v22 }
  0x2e   : > { %433 = vrot.lane.b32.xlu2 %v1267_v13, %s1133_s9 }
  0x36   : > { %629 = vrot.lane.b32.xlu2 %v1247_v2, %s1134_s10 }
  0x3e   : > { %627 = vrot.lane.b32.xlu2 %v1255_v5, %s1135_s11 }
  0x80   : > { %v462_v14 = vpop.permute.xlu2 %461 }
  0x88   : > { %v434_v23 = vpop.permute.xlu2 %433 }
  0x89   : > { %v440_v33 = vsel %vm438_vm3, %v434_v23, 0 }
  0x8a   : > { %449 = vmatpush.bf16.msra.mxu1 %v440_v33 }
  0x90   : > { %v630_v24 = vpop.permute.xlu2 %629 }
  0x91   : > { %v635_v25 = vsel %vm361_vm0, %v630_v24, 0  ;;  %v414_v24 = vld [vmem:[#allocation3] sm:$0xff] }
  0x97   : > { %v374_v6 = vpop.permute.xlu0 %373  ;;  %v464_v8 = vpop.permute.xlu1 %463 }
  0x98   : > { %v380_v7 = vsel %vm361_vm0, %v374_v6, 0  ;;  %v469_v10 = vsel %vm361_vm0, %v464_v8, 0  ;;  %v628_v26 = vpop.permute.xlu2 %627 }
  0x99   : > { %389 = vmatpush.bf16.xpose.msra.mxu0 %v380_v7  ;;  %478 = vmatpush.bf16.xpose.msra.mxu2 %v469_v10 }
  0xa0   : > { %938 = vmatmul.msk.bf16.vlgmr.msra.gmra.mxu0 %vm361_vm0, %v366_v3  ;;  %940 = vmatmul.msk.bf16.vlgmr.msra.gmra.mxu2 %vm361_vm0, %v462_v14 }
  0xa1   : > { %644 = vmatpush.bf16.xpose.msrb.mxu0 %v635_v25 }
  0xb0   : > { %944 = vmatmul.msk.bf16.vlgmr.msrb.gmra.mxu0 %vm361_vm0, %v628_v26 }
 0x11d   : > { %v391_v16 = vpop.f32.mrf.mxu0 }
 0x11e   : > { %v395_v17 = vmul.f32 0.35355338, %v391_v16 }
 0x120   : > { %v397_v18 = vsel %vm396_vm2, -1e+09, %v395_v17 }
 0x121   : > { %v399_v19 = vsel %vm361_vm0, %v397_v18, -inf }
 0x122   : > { %400 = vmax.xlane.f32.xlu0 %v399_v19 }
 0x123   : > { %v480_v27 = vpop.f32.mrf.mxu2 }
 0x124   : > { %v484_v34 = vmul.f32 0.35355338, %v480_v27 }
 0x125   : > { %v393_v20 = vpop.f32.mrf.mxu0 }
 0x126   : > { %v485_v35 = vsel %vm396_vm2, -1e+09, %v484_v34 }
 0x127   : > { %v488_v36 = vsel %vm361_vm0, %v485_v35, -inf }
 0x12b   : > { %v482_v32 = vpop.f32.mrf.mxu2 }
 0x12d   : > { %v646_v40 = vpop.f32.mrf.mxu0 }
 0x12e   : > { %v650_v41 = vmul.f32 0.35355338, %v646_v40 }
 0x130   : > { %v651_v42 = vsel %vm396_vm2, -1e+09, %v650_v41 }
 0x131   : > { %v654_v44 = vsel %vm361_vm0, %v651_v42, -inf }
 0x132   : > { %655 = vmax.xlane.f32.xlu0 %v654_v44  ;;  %v670_v44 = vld [vmem:[#allocation3 + $0x18] sm:$0xff] }
 0x135   : > { %v648_v48 = vpop.f32.mrf.mxu0 }
 0x195   : > { %v401_v29 = vpop.xlane.xlu0 %400 }
 0x196   : > { %v1296_v30 = vmax.f32 %v1293_v28, %v401_v29 }
 0x198   : > { %v403_v31 = vsub.f32 %v1293_v28, %v1296_v30  ;;  %457 = vst.msk [vmem:[#allocation2] sm:$0xff] %vm352_vm1, %v1296_v30  ;;  %408 = vperm.xlu1 %1020, %v1296_v30  }
 0x1a0   : > { %546 = vrot.lane.b32.xlu1 %v1247_v2, %s1138_s12 }
 0x1a5   : > { %v656_v54 = vpop.xlane.xlu0 %655 }
 0x1a6   : > { %v1319_v56 = vmax.f32 %v1316_v55, %v656_v54 }
 0x1a8   : > { %544 = vrot.lane.b32.xlu1 %v1255_v5, %s1139_s13  ;;  %v658_v57 = vsub.f32 %v1316_v55, %v1319_v56  ;;  %709 = vst.msk [vmem:[#allocation2 + $0x18] sm:$0xff] %vm352_vm1, %v1319_v56  ;;  %v570_v5 = vld [vmem:[#allocation2 + $0x10] sm:$0xff] }
 0x1d2   : > { %489 = vmax.xlane.f32.xlu1 %v488_v36 }
 0x20a   : > { %v409_v37 = vpop.permute.xlu1 %408 }
 0x20b   : > { %v411_v38 = vsub.f32 %v397_v18, %v409_v37 }
 0x20d   : > { %v412_v39 = vmul.f32 1.442695, %v411_v38 }
 0x20f   : > { %1023 = vpow2.f32 %v412_v39 }
 0x212   : > { %v547_v43 = vpop.permute.xlu1 %546 }
 0x213   : > { %v552_v45 = vsel %vm361_vm0, %v547_v43, 0 }
 0x214   : > { %561 = vmatpush.bf16.xpose.msrb.mxu1 %v552_v45 }
 0x215   : > { %v1024_v46 = vpop.eup %1023 }
 0x216   : > { %v429_v47 = vpack.c.bf16 %v1024_v46, %v1024_v46  ;;  %v416_v1 = vsel %vm361_vm0, %v1024_v46, 0.0 }
 0x218   : > { %939 = vmatmul.msk.bf16.vlgmr.msra.gmra.mxu1 %vm361_vm0, %v429_v47 }
 0x21a   : > { %v545_v49 = vpop.permute.xlu1 %544 }
 0x228   : > { %942 = vmatmul.msk.bf16.vlgmr.msrb.gmra.mxu1 %vm361_vm0, %v545_v49 }
 0x245   : > { %v490_v51 = vpop.xlane.xlu1 %489 }
 0x246   : > { %v491_v52 = vmax.f32 %v487_v50, %v490_v51 }
 0x248   : > { %v492_v53 = vsub.f32 %v487_v50, %v491_v52  ;;  %543 = vst.msk [vmem:[#allocation2 + $0x8] sm:$0xff] %vm352_vm1, %v491_v52  ;;  %497 = vperm.xlu0 %1021, %v491_v52   ;;  %v504_v52 = vld [vmem:[#allocation3 + $0x8] sm:$0xff] }
 0x24a   : > { %v493_v22 = vmul.f32 1.442695, %v492_v53 }
 0x250   : > { %603 = vrot.lane.b32.xlu0 %v1267_v13, %s1140_s14 }
 0x295   : > { %v1325_v58 = vpop.f32.mrf.mxu1 }
 0x29d   : > { %v453_v59 = vpop.f32.mrf.mxu1 }
 0x29e   : > { %v512_v59 = vld [vmem:[#allocation4 + $0x8] sm:$0xff] }
 0x2a5   : > { %v563_v60 = vpop.f32.mrf.mxu1 }
 0x2a6   : > { %v567_v61 = vmul.f32 0.35355338, %v563_v60 }
 0x2a8   : > { %v1329_v62 = vsel %vm396_vm2, -1e+09, %v567_v61 }
 0x2a9   : > { %v571_v63 = vsel %vm361_vm0, %v1329_v62, -inf }
 0x2aa   : > { %572 = vmax.xlane.f32.xlu2 %v571_v63  ;;  %v587_v63 = vld [vmem:[#allocation3 + $0x10] sm:$0xff] }
 0x2ad   : > { %v565_v0 = vpop.f32.mrf.mxu1 }
 0x2ba   : > { %v498_v2 = vpop.permute.xlu0 %497 }
 0x2bb   : > { %v500_v3 = vsub.f32 %v485_v35, %v498_v2 }
 0x2bd   : > { %v501_v4 = vmul.f32 1.442695, %v500_v3 }
 0x2bf   : > { %1025 = vpow2.f32 %v501_v4  ;;  %v595_v4 = vld [vmem:[#allocation4 + $0x10] sm:$0xff] }
 0x2c2   : > { %520 = vrot.lane.b32.xlu2 %v1267_v13, %s1141_s15  ;;  %v604_v34 = vpop.permute.xlu0 %603 }
 0x2c3   : > { %v609_v28 = vsel %vm438_vm3, %v604_v34, 0 }
 0x2c5   : > { %v1026_v8 = vpop.eup %1025 }
 0x2c6   : > { %v519_v11 = vpack.c.bf16 %v1026_v8, %v1026_v8  ;;  %v506_v21 = vsel %vm361_vm0, %v1026_v8, 0.0 }
 0x2ca   : > { %663 = vperm.xlu2 %1022, %v1319_v56  }
 0x2f3   : > { %417 = vadd.xlane.f32.xlu2 %v416_v1 }
 0x31d   : > { %v573_v6 = vpop.xlane.xlu2 %572 }
 0x31e   : > { %v574_v7 = vmax.f32 %v570_v5, %v573_v6 }
 0x320   : > { %626 = vst.msk [vmem:[#allocation2 + $0x10] sm:$0xff] %vm352_vm1, %v574_v7  ;;  %580 = vperm.xlu1 %1020, %v574_v7   ;;  %v575_v18 = vsub.f32 %v570_v5, %v574_v7 }
 0x322   : > { %v576_v19 = vmul.f32 1.442695, %v575_v18  ;;  %v678_v18 = vld [vmem:[#allocation4 + $0x18] sm:$0xff] }
 0x325   : > { %v521_v9 = vpop.permute.xlu2 %520 }
 0x326   : > { %v526_v10 = vsel %vm438_vm3, %v521_v9, 0 }
 0x327   : > { %535 = vmatpush.bf16.msra.mxu3 %v526_v10  ;;  %v422_v10 = vld [vmem:[#allocation4] sm:$0xff] }
 0x328   : > { %686 = vrot.lane.b32.xlu1 %v1267_v13, %s1142_s23  ;;  %v404_v13 = vmul.f32 1.442695, %v403_v31 }
 0x32a   : > { %941 = vmatmul.msk.bf16.vlgmr.msra.gmra.mxu3 %vm361_vm0, %v519_v11 }
 0x32b   : > { %618 = vmatpush.bf16.msrb.mxu3 %v609_v28 }
 0x32d   : > { %v664_v12 = vpop.permute.xlu2 %663 }
 0x32e   : > { %v666_v14 = vsub.f32 %v651_v42, %v664_v12  ;;  %v659_v42 = vmul.f32 1.442695, %v658_v57 }
 0x330   : > { %v667_v15 = vmul.f32 1.442695, %v666_v14 }
 0x332   : > { %1027 = vpow2.f32 %v667_v15 }
 0x333   : > { %1029 = vpow2.f32 %v576_v19 }
 0x334   : > { %1031 = vpow2.f32 %v404_v13 }
 0x335   : > { %1033 = vpow2.f32 %v493_v22 }
 0x338   : > { %v1028_v16 = vpop.eup %1027 }
 0x339   : > { %v672_v17 = vsel %vm361_vm0, %v1028_v16, 0.0  ;;  %v1342_v20 = vpop.eup %1029  ;;  %v685_v39 = vpack.c.bf16 %v1028_v16, %v1028_v16 }
 0x33a   : > { %673 = vadd.xlane.f32.xlu2 %v672_v17  ;;  %v1032_v23 = vpop.eup %1031  ;;  %v588_v0 = vmul.f32 %v1342_v20, %v587_v63 }
 0x33b   : > { %v415_v25 = vmul.f32 %v1032_v23, %v414_v24  ;;  %v1034_v29 = vpop.eup %1033 }
 0x33c   : > { %v505_v53 = vmul.f32 %v1034_v29, %v504_v52 }
 0x352   : > { %598 = vperm.xlu2 %1022, %v1342_v20   ;;  %507 = vadd.xlane.f32.xlu1 %v506_v21 }
 0x366   : > { %v418_v26 = vpop.xlane.xlu2 %417 }
 0x367   : > { %v419_v27 = vadd.f32 %v418_v26, %v415_v25 }
 0x369   : > { %421 = vst.msk [vmem:[#allocation3] sm:$0xff] %vm352_vm1, %v419_v27 }
 0x36b   : > { %515 = vperm.xlu1 %1020, %v1034_v29  }
 0x370   : > { %v714_v32 = vld [vmem:[#allocation3] sm:$0xff] }
 0x371   : > { %1035 = vrcp.f32 %v714_v32 }
 0x377   : > { %v1036_v33 = vpop.eup %1035 }
 0x378   : > { %718 = vperm.xlu1 %1020, %v1036_v33  }
 0x392   : > { %v581_v30 = vpop.permute.xlu1 %580 }
 0x393   : > { %v583_v31 = vsub.f32 %v1329_v62, %v581_v30 }
 0x395   : > { %v584_v35 = vmul.f32 1.442695, %v583_v31 }
 0x397   : > { %1037 = vpow2.f32 %v584_v35 }
 0x398   : > { %1039 = vpow2.f32 %v659_v42 }
 0x39a   : > { %v687_v36 = vpop.permute.xlu1 %686 }
 0x39b   : > { %v692_v37 = vsel %vm438_vm3, %v687_v36, 0 }
 0x39c   : > { %701 = vmatpush.bf16.msrb.mxu2 %v692_v37 }
 0x39d   : > { %v1038_v38 = vpop.eup %1037 }
 0x39e   : > { %v589_v40 = vsel %vm361_vm0, %v1038_v38, 0.0  ;;  %v602_v41 = vpack.c.bf16 %v1038_v38, %v1038_v38  ;;  %v1040_v43 = vpop.eup %1039 }
 0x39f   : > { %590 = vadd.xlane.f32.xlu0 %v589_v40  ;;  %945 = vmatmul.msk.bf16.vlgmr.msrb.gmra.mxu2 %vm361_vm0, %v685_v39  ;;  %v671_v45 = vmul.f32 %v1040_v43, %v670_v44 }
 0x3a0   : > { %943 = vmatmul.msk.bf16.vlgmr.msrb.gmra.mxu3 %vm361_vm0, %v602_v41 }
 0x3ad   : > { %v674_v46 = vpop.xlane.xlu2 %673  ;;  %v537_v47 = vpop.f32.mrf.mxu3 }
 0x3ae   : > { %v675_v48 = vadd.f32 %v674_v46, %v671_v45 }
 0x3b0   : > { %676 = vst.msk [vmem:[#allocation3 + $0x18] sm:$0xff] %vm352_vm1, %v675_v48 }
 0x3b3   : > { %425 = vperm.xlu0 %1021, %v1032_v23  }
 0x3b5   : > { %v539_v49 = vpop.f32.mrf.mxu3  ;;  %v599_v5 = vpop.permute.xlu2 %598 }
 0x3b6   : > { %v601_v6 = vmul.f32 %v599_v5, %v595_v4 }
 0x3b7   : > { %v744_v50 = vld [vmem:[#allocation3 + $0x18] sm:$0xff] }
 0x3b8   : > { %1041 = vrcp.f32 %v744_v50 }
 0x3bb   : > { %681 = vperm.xlu0 %1021, %v1040_v43  }
 0x3be   : > { %v1042_v51 = vpop.eup %1041 }
 0x3bf   : > { %748 = vperm.xlu1 %1020, %v1042_v51  }
 0x3c5   : > { %v508_v54 = vpop.xlane.xlu1 %507 }
 0x3c6   : > { %v509_v55 = vadd.f32 %v508_v54, %v505_v53 }
 0x3c8   : > { %510 = vst.msk [vmem:[#allocation3 + $0x8] sm:$0xff] %vm352_vm1, %v509_v55 }
 0x3cf   : > { %v724_v56 = vld [vmem:[#allocation3 + $0x8] sm:$0xff] }
 0x3d0   : > { %1043 = vrcp.f32 %v724_v56 }
 0x3d6   : > { %v1044_v57 = vpop.eup %1043 }
 0x3d7   : > { %728 = vperm.xlu0 %1021, %v1044_v57  }
 0x3dd   : > { %v516_v60 = vpop.permute.xlu1 %515 }
 0x3de   : > { %v518_v61 = vmul.f32 %v516_v60, %v512_v59 }
 0x3e0   : > { %v541_v62 = vadd.f32 %v537_v47, %v518_v61 }
 0x3e2   : > { %542 = vst.msk [vmem:[#allocation4 + $0x8] sm:$0xff] %vm361_vm0, %v541_v62 }
 0x3ea   : > { %v719_v13 = vpop.permute.xlu1 %718 }
 0x412   : > { %v591_v1 = vpop.xlane.xlu0 %590 }
 0x413   : > { %v592_v2 = vadd.f32 %v591_v1, %v588_v0 }
 0x415   : > { %593 = vst.msk [vmem:[#allocation3 + $0x10] sm:$0xff] %vm352_vm1, %v592_v2 }
 0x41c   : > { %v734_v3 = vld [vmem:[#allocation3 + $0x10] sm:$0xff] }
 0x41d   : > { %1045 = vrcp.f32 %v734_v3 }
 0x422   : > { %v703_v7 = vpop.f32.mrf.mxu2 }
 0x423   : > { %v1046_v8 = vpop.eup %1045  ;;  %v620_v9 = vpop.f32.mrf.mxu3 }
 0x424   : > { %v624_v11 = vadd.f32 %v620_v9, %v601_v6  ;;  %738 = vperm.xlu2 %1022, %v1046_v8  }
 0x425   : > { %v426_v12 = vpop.permute.xlu0 %425 }
 0x426   : > { %625 = vst.msk [vmem:[#allocation4 + $0x10] sm:$0xff] %vm361_vm0, %v624_v11  ;;  %v428_v14 = vmul.f32 %v426_v12, %v422_v10 }
 0x428   : > { %v455_v15 = vadd.f32 %v1325_v58, %v428_v14  ;;  %v723_v58 = vld [vmem:[#allocation4 + $0x8] sm:$0xff] }
 0x42a   : > { %456 = vst.msk [vmem:[#allocation4] sm:$0xff] %vm361_vm0, %v455_v15  ;;  %v705_v16 = vpop.f32.mrf.mxu2 }
 0x42b   : > { %v622_v17 = vpop.f32.mrf.mxu3 }
 0x42d   : > { %v682_v19 = vpop.permute.xlu0 %681  ;;  %v733_v30 = vld [vmem:[#allocation4 + $0x10] sm:$0xff] }
 0x42e   : > { %v684_v20 = vmul.f32 %v682_v19, %v678_v18 }
 0x430   : > { %v707_v21 = vadd.f32 %v703_v7, %v684_v20 }
 0x431   : > { %v749_v23 = vpop.permute.xlu1 %748  ;;  %v713_v39 = vld [vmem:[#allocation4] sm:$0xff] }
 0x432   : > { %708 = vst.msk [vmem:[#allocation4 + $0x18] sm:$0xff] %vm361_vm0, %v707_v21  ;;  %v721_v40 = vmul.f32 %v719_v13, %v713_v39 }
 0x434   : > { %v722_v42 = vpack.c.bf16 %v721_v40, %v721_v40 }
 0x439   : > { %v743_v22 = vld [vmem:[#allocation4 + $0x18] sm:$0xff] }
 0x43a   : > { %v751_v24 = vmul.f32 %v749_v23, %v743_v22 }
 0x43c   : > { %v752_v25 = vpack.c.bf16 %v751_v24, %v751_v24 }
 0x43e   : > { %v764_v26 = vunpack.c.l.b16 %v752_v25 }
 0x440   : > { %v765_v27 = vpack.c.b16 %v764_v26, %v764_v26 }
 0x442   : > { %766 = vrot.lane.b32.xlu1 %v765_v27, %s1143_s24 }
 0x449   : > { %v729_v29 = vpop.permute.xlu0 %728 }
 0x44a   : > { %v731_v32 = vmul.f32 %v729_v29, %v723_v58 }
 0x44c   : > { %v732_v33 = vpack.c.bf16 %v731_v32, %v731_v32 }
 0x44e   : > { %v754_v34 = vunpack.c.l.b16 %v732_v33 }
 0x450   : > { %v755_v28 = vpack.c.b16 %v754_v34, %v754_v34 }
 0x452   : > { %756 = vrot.lane.b32.xlu0 %v755_v28, %s1144_s25 }
 0x47e   : > { %v739_v31 = vpop.permute.xlu2 %738 }
 0x47f   : > { %v741_v35 = vmul.f32 %v739_v31, %v733_v30 }
 0x481   : > { %v742_v36 = vpack.c.bf16 %v741_v35, %v741_v35 }
 0x483   : > { %v759_v37 = vunpack.c.l.b16 %v742_v36 }
 0x485   : > { %v760_v38 = vpack.c.b16 %v759_v37, %v759_v37 }
 0x487   : > { %761 = vrot.lane.b32.xlu2 %v760_v38, %s1145_s28 }
 0x4b4   : > { %v767_v45 = vpop.permute.xlu1 %766 }
 0x4c4   : > { %v757_v41 = vpop.permute.xlu0 %756 }
 0x4c5   : > { %v770_v43 = vsel %vm361_vm0, %v722_v42, %v757_v41 }
 0x4e1   : > { %v762_v44 = vpop.permute.xlu2 %761 }
 0x4e2   : > { %v773_v46 = vsel %vm771_vm4, %v770_v43, %v762_v44 }
 0x4e3   : > { %v776_v47 = vsel %vm774_vm5, %v773_v46, %v767_v45 }
 0x4e4   : > { %779 = vst.msk [vmem:[%s346_s18] sm:$0xf] %vm778_vm6, %v776_v47 }
 0x4e5 PF: > { %s17_s20 = sadd.s32 1, %s1127_s20   ;;  %s1398_s15 = smov %s1111_s16 }
 0x4e6   : > { %p14_p0 = scmp.ge.s32.totalorder %s17_s20, 4   ;;  %s1399_s16 = smov %s1115_s17 }
 0x4e7   : > { %s1400_s17 = smov %s1220_s27  ;;  %s1401_s18 = smov %s1123_s19 }
 0x4e8   : > { %s1402_s19 = smov %s1404_s22  ;;  %16 = sbr.rel (!%p14_p0) target bundleno = 4 (0x4), region = 102 }
 0x4ed   :  { %811 = vsyncpa [#allocation6], 1 }
 0x4ee   :  { %813 = vsyncpa [#allocation6 + $0x1], 1 }

// kernel: single_decoder_layer.12
= control target key start
LH: loop header
LB: loop body
LE: loop exit
PB: predicated region body
PF: predicated region fallthrough
CT: control target
= control target key end

     0   :  { %vm19_vm0 = vcmask 523264   ;;  %v132_v1 = vmov 0.0   ;;  %vm54_vm1 = vcmask 261120   ;;  %vm22_vm2 = vcmask 519168   ;;  %s185_s1 = inlined_call_operand.vmem [shape: bf16[32,64], index: 1, kind: input, shape index: {}]   ;;  %s186_s0 = inlined_call_operand.vmem [shape: bf16[20,32], index: 0, kind: input, shape index: {}]   ;;  %s187_s2 = inlined_call_operand.vmem [shape: f32[1,64], index: 2, kind: input, shape index: {}]   ;;  %s188_s3 = inlined_call_operand.vmem [shape: bf16[20,64], index: 3, kind: output, shape index: {}]  }
   0x1   :  { %v127_v0 = vld [vmem:[%s185_s1 + $0x8] sm:$0xff]  ;;  %20 = vst.msk [vmem:[#allocation2] sm:$0xff] %vm19_vm0, %v132_v1  ;;  %v126_v3 = vld [vmem:[%s185_s1] sm:$0xff]  ;;  %vm105_vm3 = vcmask 517120  }
   0x2   :  { %v29_v2 = vld [vmem:[%s186_s0 + $0x8] sm:$0x3]  ;;  %21 = vst.msk [vmem:[#allocation2 + $0x8] sm:$0xff] %vm19_vm0, %v132_v1  ;;  %67 = vmatpush.bf16.msra.mxu0 %v127_v0  ;;  %128 = vmatpush.bf16.msra.mxu1 %v127_v0  ;;  %v125_v5 = vld [vmem:[%s186_s0] sm:$0xff] }
   0x3   :  { %v39_v4 = vunpack.c.l.b16 %v29_v2  ;;  %23 = vst.msk [vmem:[#allocation2 + $0x10] sm:$0xf] %vm22_vm2, %v132_v1  ;;  %v131_v14 = vld [vmem:[%s187_s2] ss:$0 sm:$0xff] }
   0x5   :  { %v41_v6 = vpack.c.b16 %v39_v4, %v39_v4 }
   0x6   :  { %68 = vmatpush.bf16.msra.mxu0 %v126_v3  ;;  %129 = vmatpush.bf16.msra.mxu1 %v126_v3 }
   0x8   :  { %v24_v7 = vld [vmem:[#allocation2] sm:$0xff] }
   0x9   :  { %123 = vmatmul.msk.bf16.vlgmr.msra.gmra.mxu0 %vm54_vm1, %v125_v5  ;;  %124 = vmatmul.msk.bf16.vlgmr.msra.gmra.mxu1 %vm54_vm1, %v41_v6  ;;  %v25_v13 = vld [vmem:[#allocation2 + $0x8] sm:$0xff] }
   0xa   :  { %v26_v8 = vld [vmem:[#allocation2 + $0x10] sm:$0xf] }
  0x86   :  { %v70_v9 = vpop.f32.mrf.mxu0  ;;  %v75_v10 = vpop.f32.mrf.mxu1 }
  0x87   :  { %v79_v11 = vadd.f32 %v70_v9, %v24_v7  ;;  %v81_v12 = vadd.f32 %v75_v10, %v26_v8 }
  0x89   :  { %83 = vst.msk [vmem:[#allocation2] sm:$0xff] %vm19_vm0, %v79_v11 }
  0x8a   :  { %86 = vst.msk [vmem:[#allocation2 + $0x10] sm:$0xf] %vm22_vm2, %v81_v12 }
  0x8e   :  { %v72_v15 = vpop.f32.mrf.mxu0  ;;  %v77_v16 = vpop.f32.mrf.mxu1 }
  0x8f   :  { %v80_v17 = vadd.f32 %v72_v15, %v25_v13 }
  0x90   :  { %v90_v18 = vld [vmem:[#allocation2] sm:$0xff] }
  0x91   :  { %v92_v19 = vld [vmem:[#allocation2 + $0x10] sm:$0xf]  ;;  %v97_v20 = vadd.f32 %v131_v14, %v90_v18  ;;  %84 = vst.msk [vmem:[#allocation2 + $0x8] sm:$0xff] %vm19_vm0, %v80_v17 }
  0x92   :  { %v99_v21 = vadd.f32 %v131_v14, %v92_v19 }
  0x93   :  { %v100_v22 = vpack.c.bf16 %v97_v20, %v97_v20 }
  0x94   :  { %v102_v23 = vpack.c.bf16 %v99_v21, %v99_v21 }
  0x95   :  { %103 = vst.msk [vmem:[%s188_s3] sm:$0xf] %vm22_vm2, %v100_v22 }
  0x96   :  { %106 = vst.msk [vmem:[%s188_s3 + $0x8] sm:$0x3] %vm105_vm3, %v102_v23 }
  0x98   :  { %v91_v24 = vld [vmem:[#allocation2 + $0x8] sm:$0xff] }
  0x99   :  { %v98_v25 = vadd.f32 %v131_v14, %v91_v24 }
  0x9b   :  { %v101_v26 = vpack.c.bf16 %v98_v25, %v98_v25 }
  0x9d   :  { %104 = vst.msk [vmem:[%s188_s3 + $0x4] sm:$0xf] %vm22_vm2, %v101_v26 }

// kernel: single_decoder_layer.14
= control target key start
LH: loop header
LB: loop body
LE: loop exit
PB: predicated region body
PF: predicated region fallthrough
CT: control target
= control target key end

     0   :  { %vm28_vm0 = vcmask 261120   ;;  %v198_v1 = vmov 0.0   ;;  %v199_v22 = vmov 32.0   ;;  %vm160_vm6 = vcmask 257024   ;;  %s271_s1 = inlined_call_operand.vmem [shape: bf16[32,32], index: 1, kind: input, shape index: {}]   ;;  %s272_s0 = inlined_call_operand.vmem [shape: bf16[16,32], index: 0, kind: input, shape index: {}]   ;;  %s273_s2 = inlined_call_operand.vmem [shape: f32[1,32], index: 2, kind: input, shape index: {}]   ;;  %s274_s3 = inlined_call_operand.vmem [shape: bf16[16,32], index: 3, kind: input, shape index: {}]   ;;  %s275_s4 = inlined_call_operand.vmem [shape: f32[1,32], index: 4, kind: input, shape index: {}]   ;;  %s276_s5 = inlined_call_operand.vmem [shape: f32[1,32], index: 5, kind: input, shape index: {}]   ;;  %s277_s6 = inlined_call_operand.vmem [shape: bf16[16,32], index: 6, kind: output, shape index: {}]  }
   0x1   :  { %v182_v0 = vld [vmem:[%s271_s1 + $0x8] sm:$0xff]  ;;  %29 = vst.msk [vmem:[#allocation2] sm:$0xff] %vm28_vm0, %v198_v1  ;;  %v181_v2 = vld [vmem:[%s271_s1] sm:$0xff]  ;;  %192 = vrcp.f32 %v199_v22 }
   0x2   :  { %30 = vst.msk [vmem:[#allocation2 + $0x8] sm:$0xff] %vm28_vm0, %v198_v1  ;;  %66 = vmatpush.bf16.msra.mxu0 %v182_v0  ;;  %v180_v3 = vld [vmem:[%s272_s0] sm:$0xff] }
   0x3   :  { %v184_v7 = vld [vmem:[%s274_s3] sm:$0xff]  }
   0x4   :  { %v185_v9 = vunpack.c.l.bf16 %v184_v7  ;;  %v189_v12 = vld [vmem:[%s273_s2] ss:$0 sm:$0xff]  ;;  %v186_v17 = vunpack.c.h.bf16 %v184_v7 }
   0x5   :  { %v190_v53 = vld [vmem:[%s275_s4] ss:$0 sm:$0xff] }
   0x6   :  { %67 = vmatpush.bf16.msra.mxu0 %v181_v2  ;;  %v191_v56 = vld [vmem:[%s276_s5] ss:$0 sm:$0xff] }
   0x7   :  { %v193_v23 = vpop.eup %192 }
   0x8   :  { %v31_v4 = vld [vmem:[#allocation2] sm:$0xff]  ;;  %v102_v24 = vmul.f32 32.0, %v193_v23  ;;  %vm106_vm1 = vweird.f32 %v193_v23 }
   0x9   :  { %179 = vmatmul.msk.bf16.vlgmr.msra.gmra.mxu0 %vm28_vm0, %v180_v3  ;;  %v32_v8 = vld [vmem:[#allocation2 + $0x8] sm:$0xff] }
   0xa   :  { %v103_v25 = vsub.f32 1.0, %v102_v24 }
   0xc   :  { %v104_v26 = vmul.f32 %v193_v23, %v103_v25 }
   0xe   :  { %v105_v27 = vadd.f32 %v193_v23, %v104_v26 }
  0x10   :  { %v107_v28 = vsel %vm106_vm1, %v193_v23, %v105_v27 }
  0x86   :  { %v69_v5 = vpop.f32.mrf.mxu0 }
  0x87   :  { %v74_v6 = vadd.f32 %v69_v5, %v31_v4 }
  0x89   :  { %76 = vst.msk [vmem:[#allocation2] sm:$0xff] %vm28_vm0, %v74_v6 }
  0x8e   :  { %v71_v10 = vpop.f32.mrf.mxu0 }
  0x8f   :  { %v75_v11 = vadd.f32 %v71_v10, %v32_v8 }
  0x90   :  { %v85_v13 = vld [vmem:[#allocation2] sm:$0xff] }
  0x91   :  { %77 = vst.msk [vmem:[#allocation2 + $0x8] sm:$0xff] %vm28_vm0, %v75_v11  ;;  %v87_v14 = vadd.f32 %v185_v9, %v85_v13 }
  0x93   :  { %v93_v15 = vadd.f32 %v189_v12, %v87_v14 }
  0x95   :  { %v95_v16 = vsel %vm28_vm0, %v93_v15, 0.0 }
  0x96   :  { %96 = vadd.xlane.f32.xlu0 %v95_v16 }
  0x98   :  { %v86_v18 = vld [vmem:[#allocation2 + $0x8] sm:$0xff] }
  0x99   :  { %v88_v19 = vadd.f32 %v186_v17, %v86_v18 }
  0x9b   :  { %v94_v20 = vadd.f32 %v189_v12, %v88_v19 }
  0x9d   :  { %v98_v21 = vsel %vm28_vm0, %v94_v20, 0.0 }
  0x9e   :  { %99 = vadd.xlane.f32.xlu0 %v98_v21 }
 0x109   :  { %v97_v29 = vpop.xlane.xlu0 %96 }
 0x10a   :  { %v108_v30 = vmul.f32 %v107_v28, %v97_v29 }
 0x10c   :  { %v110_v31 = vsub.f32 %v93_v15, %v108_v30 }
 0x10e   :  { %v112_v32 = vmul.f32 %v110_v31, %v110_v31 }
 0x110   :  { %v114_v33 = vsel %vm28_vm0, %v112_v32, 0.0 }
 0x111   :  { %115 = vadd.xlane.f32.xlu1 %v114_v33  ;;  %v100_v34 = vpop.xlane.xlu0 %99 }
 0x112   :  { %v109_v35 = vmul.f32 %v107_v28, %v100_v34 }
 0x114   :  { %v111_v36 = vsub.f32 %v94_v20, %v109_v35 }
 0x116   :  { %v113_v37 = vmul.f32 %v111_v36, %v111_v36 }
 0x118   :  { %v117_v38 = vsel %vm28_vm0, %v113_v37, 0.0 }
 0x119   :  { %118 = vadd.xlane.f32.xlu1 %v117_v38 }
 0x184   :  { %v116_v39 = vpop.xlane.xlu1 %115 }
 0x185   :  { %v120_v40 = vmul.f32 %v116_v39, %v107_v28 }
 0x187   :  { %v122_v41 = vadd.f32 1e-06, %v120_v40 }
 0x189   :  { %194 = vrsqrt.f32 %v122_v41  ;;  %vm130_vm3 = vweird.f32 %v122_v41 }
 0x18c   :  { %v119_v42 = vpop.xlane.xlu1 %118 }
 0x18d   :  { %v121_v43 = vmul.f32 %v119_v42, %v107_v28 }
 0x18f   :  { %v195_v44 = vpop.eup %194  ;;  %v123_v45 = vadd.f32 1e-06, %v121_v43 }
 0x190   :  { %v125_v46 = vmul.f32 %v195_v44, %v122_v41  ;;  %vm131_vm2 = vweird.f32 %v195_v44 }
 0x191   :  { %196 = vrsqrt.f32 %v123_v45  ;;  %vm132_vm4 = vmor %vm130_vm3, %vm131_vm2  ;;  %vm140_vm7 = vweird.f32 %v123_v45 }
 0x192   :  { %v126_v47 = vmul.f32 %v195_v44, %v125_v46 }
 0x194   :  { %v127_v48 = vmul.f32 0.5, %v126_v47 }
 0x196   :  { %v128_v49 = vsub.f32 1.5, %v127_v48 }
 0x197   :  { %v197_v50 = vpop.eup %196 }
 0x198   :  { %v129_v51 = vmul.f32 %v195_v44, %v128_v49  ;;  %v135_v52 = vmul.f32 %v197_v50, %v123_v45  ;;  %vm141_vm5 = vweird.f32 %v197_v50 }
 0x199   :  { %vm142_vm8 = vmor %vm140_vm7, %vm141_vm5 }
 0x19a   :  { %v133_v54 = vsel %vm132_vm4, %v195_v44, %v129_v51  ;;  %v136_v55 = vmul.f32 %v197_v50, %v135_v52 }
 0x19b   :  { %v144_v57 = vmul.f32 %v133_v54, %v110_v31 }
 0x19c   :  { %v137_v58 = vmul.f32 0.5, %v136_v55 }
 0x19d   :  { %v150_v59 = vmul.f32 %v190_v53, %v144_v57 }
 0x19e   :  { %v138_v60 = vsub.f32 1.5, %v137_v58 }
 0x19f   :  { %v156_v61 = vadd.f32 %v191_v56, %v150_v59 }
 0x1a0   :  { %v139_v62 = vmul.f32 %v197_v50, %v138_v60 }
 0x1a1   :  { %v158_v63 = vpack.c.bf16 %v156_v61, %v156_v61 }
 0x1a2   :  { %v143_v0 = vsel %vm142_vm8, %v197_v50, %v139_v62 }
 0x1a3   :  { %161 = vst.msk [vmem:[%s277_s6] sm:$0xf] %vm160_vm6, %v158_v63  ;;  %v145_v1 = vmul.f32 %v143_v0, %v111_v36 }
 0x1a5   :  { %v151_v2 = vmul.f32 %v190_v53, %v145_v1 }
 0x1a7   :  { %v157_v3 = vadd.f32 %v191_v56, %v151_v2 }
 0x1a9   :  { %v159_v4 = vpack.c.bf16 %v157_v3, %v157_v3 }
 0x1ab   :  { %162 = vst.msk [vmem:[%s277_s6 + $0x4] sm:$0xf] %vm160_vm6, %v159_v4 }

// kernel: single_decoder_layer.13
= control target key start
LH: loop header
LB: loop body
LE: loop exit
PB: predicated region body
PF: predicated region fallthrough
CT: control target
= control target key end

     0   :  { %s1081_s15 = smov 0   ;;  %s1083_s16 = smov 0   ;;  %s1234_s0 = inlined_call_operand.vmem [shape: bf16[2,8,32], index: 0, kind: input, shape index: {}]   ;;  %s1235_s1 = inlined_call_operand.vmem [shape: bf16[2,10,64], index: 1, kind: input, shape index: {}, may-alias: {1,2}]   ;;  %s1236_s2 = inlined_call_operand.vmem [shape: bf16[2,10,64], index: 2, kind: input, shape index: {}, may-alias: {1,2}]   ;;  %s1237_s3 = inlined_call_operand.vmem [shape: f32[2,1,10], index: 3, kind: input, shape index: {}]   ;;  %s1238_s4 = inlined_call_operand.vmem [shape: bf16[2,8,32], index: 4, kind: output, shape index: {}]  }
   0x1   :  { %s1085_s17 = smov 0  }
   0x2 LB: > { %s40_s18 = sadd.s32 1, %s1037_s16  ;;  %p926_p0 = scmp.ge.s32.totalorder %s1041_s17, 1  ;;  %s1041_s17 = sphi %s1085_s17, %s14_s17   ;;  %s1037_s16 = sphi %s1083_s16, %s1242_s16   ;;  %s1033_s15 = sphi %s1081_s15, %s1241_s15  }
   0x3   : > { %p42_p1 = scmp.ge.s32.totalorder %s40_s18, 2  ;;  %p243_p2 = scmp.lt.s32.totalorder %s1041_s17, 3 }
   0x5   : > { %s1244_s18 = smov (%p42_p1, %s40_s18), 0  ;;  %p244_p3 = pnand %p926_p0, %p243_p2 }
   0x6   : > { %p300_p4 = scmp.lt.s32.totalorder (!%p244_p3), %s1033_s15, 1  ;;  %s1045_s30 = smov (!%p244_p3), 120  }
   0x7   : > { %247 = sbr.rel (%p244_p3) target bundleno = 1143 (0x477), region = 36  ;;  %s1047_s8 = smov (!%p244_p3), 96  }
   0x8   : > { %s1048_s9 = smov (!%p244_p3), 112   ;;  %s1049_s10 = smov (!%p244_p3), 104  }
   0x9   : > { %s1050_s11 = smov (!%p244_p3), 88   ;;  %s1051_s12 = smov (!%p244_p3), 80  }
   0xa   : > { %s1052_s13 = smov (!%p244_p3), 72   ;;  %s1053_s14 = smov (!%p244_p3), 8  }
   0xb   : > { %s1055_s20 = smov (!%p244_p3), 16  }
   0xc   : > { %s1246_s15 = smov (!%p300_p4, %s1033_s15), 1  ;;  %vm357_vm0 = vcmask 64512   ;;  %v1043_v5 = vmov 0   ;;  %vm348_vm1 = vcmask 7168   ;;  %v1044_v6 = vmov -inf  }
   0xd   : > { %s951_s19 = sshll.u32 %s1246_s15, 3  ;;  %s927_s23 = sshll.u32 %s1246_s15, 2  ;;  %992 = vset.pattern.permute.xlu1 %v1043_v5  ;;  %993 = vset.pattern.permute.xlu2 %v1043_v5  ;;  %349 = vst.msk [vmem:[#allocation2] sm:$0xff] %vm348_vm1, %v1044_v6  ;;  %vm400_vm4 = vcmask 80896   ;;  %v1046_v16 = vmov 0.0   ;;  %vm442_vm5 = vcmask 1044480  }
   0xe   : > { %s315_s22 = scalar_lea.vmem %s1235_s1, %s951_s19  ;;  %s306_s26 = scalar_lea.vmem %s1234_s0, %s927_s23  ;;  %994 = vset.pattern.permute.xlu0 %v1043_v5  ;;  %350 = vst.msk [vmem:[#allocation2 + $0x8] sm:$0xff] %vm348_vm1, %v1044_v6  ;;  %vm775_vm6 = vcmask 130048   ;;  %vm778_vm7 = vcmask 195584   ;;  %vm782_vm8 = vcmask 257024  }
   0xf   : > { %v935_v0 = vld [vmem:[%s315_s22] sm:$0xf]  ;;  %v953_v1 = vld [vmem:[%s315_s22] sm:$0x10]  ;;  %351 = vst.msk [vmem:[#allocation2 + $0x10] sm:$0xff] %vm348_vm1, %v1044_v6  ;;  %s332_s29 = scalar_lea.vmem %s1237_s3, %s1246_s15  ;;  %s325_s7 = scalar_lea.vmem %s1236_s2, %s951_s19 }
  0x10   : > { %v936_v2 = vor.u32 %v953_v1, %v935_v0  ;;  %v362_v4 = vld [vmem:[%s306_s26] sm:$0xf]  ;;  %352 = vst.msk [vmem:[#allocation2 + $0x18] sm:$0xff] %vm348_vm1, %v1044_v6  ;;  %v954_v18 = vld [vmem:[%s325_s7] sm:$0x10]  ;;  %s1054_s19 = smov 24   ;;  %s342_s24 = scalar_lea.vmem %s1238_s4, %s927_s23 }
  0x11   : > { %v367_v7 = vld [vmem:[%s332_s29] sm:$0x1]  ;;  %353 = vst.msk [vmem:[#allocation3] sm:$0xff] %vm348_vm1, %v1046_v16  ;;  %v463_v23 = vunpack.c.l.b16 %v362_v4 }
  0x12   : > { %v378_v3 = vsel %vm357_vm0, %v936_v2, 0  ;;  %vm394_vm2 = vcmp.eq.f32.partialorder %v367_v7, 0.0  ;;  %354 = vst.msk [vmem:[#allocation3 + $0x8] sm:$0xff] %vm348_vm1, %v1046_v16  ;;  %v940_v17 = vld [vmem:[%s325_s7] sm:$0xf] }
  0x13   : > { %387 = vmatpush.bf16.xpose.msra.mxu0 %v378_v3  ;;  %v395_v8 = vsel %vm394_vm2, 1, %v1043_v5  ;;  %355 = vst.msk [vmem:[#allocation3 + $0x10] sm:$0xff] %vm348_vm1, %v1046_v16  ;;  %v1143_v19 = vor.u32 %v954_v18, %v940_v17  ;;  %v464_v25 = vpack.c.b16 %v463_v23, %v463_v23 }
  0x14   : > { %v396_v9 = vperm.slane %v395_v8, 0  ;;  %356 = vst.msk [vmem:[#allocation3 + $0x18] sm:$0xff] %vm348_vm1, %v1046_v16  ;;  %v1145_v20 = vld [vmem:[#allocation2] sm:$0xff] }
  0x15   : > { %358 = vst.msk [vmem:[#allocation4] sm:$0xff] %vm357_vm0, %v1046_v16  ;;  %437 = vrot.lane.b32.xlu2 %v1143_v19, %s1047_s8  ;;  %v491_v60 = vld [vmem:[#allocation2 + $0x8] sm:$0xff] }
  0x16   : > { %vm1123_vm3 = vcmp.eq.s32.totalorder %v396_v9, 1  ;;  %359 = vst.msk [vmem:[#allocation4 + $0x8] sm:$0xff] %vm357_vm0, %v1046_v16 }
  0x17   : > { %360 = vst.msk [vmem:[#allocation4 + $0x10] sm:$0xff] %vm357_vm0, %v1046_v16  ;;  %v1182_v0 = vld [vmem:[#allocation2 + $0x18] sm:$0xff] }
  0x18   : > { %361 = vst.msk [vmem:[#allocation4 + $0x18] sm:$0xff] %vm357_vm0, %v1046_v16 }
  0x1a   : > { %937 = vmatmul.msk.bf16.vlgmr.msra.gmra.mxu0 %vm357_vm0, %v362_v4  ;;  %v574_v4 = vld [vmem:[#allocation2 + $0x10] sm:$0xff] }
  0x1d   : > { %550 = vrot.lane.b32.xlu2 %v936_v2, %s1048_s9 }
  0x25   : > { %548 = vrot.lane.b32.xlu2 %v464_v25, %s1048_s9 }
  0x6f   : > { %v438_v28 = vpop.permute.xlu2 %437 }
  0x70   : > { %v444_v29 = vsel %vm442_vm5, %v438_v28, 0 }
  0x71   : > { %453 = vmatpush.bf16.msra.mxu1 %v444_v29 }
  0x77   : > { %v551_v30 = vpop.permute.xlu2 %550 }
  0x78   : > { %v556_v31 = vsel %vm357_vm0, %v551_v30, 0 }
  0x79   : > { %565 = vmatpush.bf16.xpose.msrb.mxu1 %v556_v31 }
  0x7f   : > { %v549_v41 = vpop.permute.xlu2 %548 }
  0x97   : > { %v389_v10 = vpop.f32.mrf.mxu0 }
  0x98   : > { %v393_v12 = vmul.f32 0.35355338, %v389_v10 }
  0x9a   : > { %v398_v13 = vsel %vm1123_vm3, -1e+09, %v393_v12 }
  0x9b   : > { %v401_v14 = vsel %vm400_vm4, %v398_v13, -inf }
  0x9c   : > { %402 = vmax.xlane.f32.xlu0 %v401_v14 }
  0x9f   : > { %v391_v15 = vpop.f32.mrf.mxu0 }
  0xb0   : > { %467 = vrot.lane.b32.xlu0 %v936_v2, %s1045_s30 }
 0x10f   : > { %v403_v21 = vpop.xlane.xlu0 %402 }
 0x110   : > { %v1149_v22 = vmax.f32 %v1145_v20, %v403_v21 }
 0x112   : > { %v405_v24 = vsub.f32 %v1145_v20, %v1149_v22  ;;  %461 = vst.msk [vmem:[#allocation2] sm:$0xff] %vm348_vm1, %v1149_v22  ;;  %410 = vperm.xlu1 %992, %v1149_v22  }
 0x114   : > { %v406_v5 = vmul.f32 1.442695, %v405_v24 }
 0x11a   : > { %465 = vrot.lane.b32.xlu1 %v464_v25, %s1045_s30 }
 0x122   : > { %633 = vrot.lane.b32.xlu1 %v936_v2, %s1049_s10  ;;  %v468_v26 = vpop.permute.xlu0 %467 }
 0x123   : > { %v473_v27 = vsel %vm357_vm0, %v468_v26, 0 }
 0x124   : > { %482 = vmatpush.bf16.xpose.msra.mxu2 %v473_v27 }
 0x12a   : > { %631 = vrot.lane.b32.xlu1 %v464_v25, %s1049_s10 }
 0x184   : > { %v411_v32 = vpop.permute.xlu1 %410 }
 0x185   : > { %v413_v33 = vsub.f32 %v398_v13, %v411_v32  ;;  %v416_v13 = vld [vmem:[#allocation3] sm:$0xff] }
 0x187   : > { %v414_v34 = vmul.f32 1.442695, %v413_v33 }
 0x189   : > { %995 = vpow2.f32 %v414_v34 }
 0x18a   : > { %997 = vpow2.f32 %v406_v5 }
 0x18c   : > { %v466_v35 = vpop.permute.xlu1 %465 }
 0x18d   : > { %943 = vmatmul.msk.bf16.vlgmr.msra.gmra.mxu2 %vm357_vm0, %v466_v35 }
 0x18f   : > { %v996_v36 = vpop.eup %995 }
 0x190   : > { %v431_v37 = vpack.c.bf16 %v996_v36, %v996_v36  ;;  %v418_v59 = vsel %vm400_vm4, %v996_v36, 0.0  ;;  %v998_v9 = vpop.eup %997 }
 0x191   : > { %v417_v14 = vmul.f32 %v998_v9, %v416_v13 }
 0x192   : > { %942 = vmatmul.msk.bf16.vlgmr.msra.gmra.mxu1 %vm400_vm4, %v431_v37 }
 0x194   : > { %v634_v38 = vpop.permute.xlu1 %633 }
 0x195   : > { %v639_v39 = vsel %vm357_vm0, %v634_v38, 0 }
 0x196   : > { %648 = vmatpush.bf16.xpose.msrb.mxu0 %v639_v39 }
 0x19c   : > { %v632_v40 = vpop.permute.xlu1 %631 }
 0x19d   : > { %947 = vmatmul.msk.bf16.vlgmr.msrb.gmra.mxu0 %vm357_vm0, %v632_v40 }
 0x1a2   : > { %945 = vmatmul.msk.bf16.vlgmr.msrb.gmra.mxu1 %vm357_vm0, %v549_v41  ;;  %v424_v41 = vld [vmem:[#allocation4] sm:$0xff] }
 0x20f   : > { %v1164_v42 = vpop.f32.mrf.mxu1 }
 0x210   : > { %v484_v43 = vpop.f32.mrf.mxu2 }
 0x211   : > { %v488_v44 = vmul.f32 0.35355338, %v484_v43 }
 0x213   : > { %v489_v45 = vsel %vm1123_vm3, -1e+09, %v488_v44 }
 0x214   : > { %v492_v46 = vsel %vm400_vm4, %v489_v45, -inf }
 0x215   : > { %493 = vmax.xlane.f32.xlu2 %v492_v46 }
 0x217   : > { %v457_v47 = vpop.f32.mrf.mxu1 }
 0x218   : > { %v486_v48 = vpop.f32.mrf.mxu2 }
 0x21a   : > { %v650_v49 = vpop.f32.mrf.mxu0 }
 0x21b   : > { %v654_v50 = vmul.f32 0.35355338, %v650_v49 }
 0x21d   : > { %v655_v51 = vsel %vm1123_vm3, -1e+09, %v654_v50 }
 0x21e   : > { %v658_v52 = vsel %vm400_vm4, %v655_v51, -inf }
 0x21f   : > { %v567_v53 = vpop.f32.mrf.mxu1  ;;  %659 = vmax.xlane.f32.xlu1 %v658_v52 }
 0x220   : > { %v571_v54 = vmul.f32 0.35355338, %v567_v53 }
 0x222   : > { %v652_v55 = vpop.f32.mrf.mxu0  ;;  %v1174_v56 = vsel %vm1123_vm3, -1e+09, %v571_v54 }
 0x223   : > { %v575_v57 = vsel %vm400_vm4, %v1174_v56, -inf }
 0x224   : > { %576 = vmax.xlane.f32.xlu0 %v575_v57 }
 0x227   : > { %v569_v58 = vpop.f32.mrf.mxu1 }
 0x238   : > { %524 = vrot.lane.b32.xlu0 %v1143_v19, %s1050_s11 }
 0x240   : > { %607 = vrot.lane.b32.xlu0 %v1143_v19, %s1051_s12 }
 0x26a   : > { %419 = vadd.xlane.f32.xlu0 %v418_v59  ;;  %v516_v59 = vld [vmem:[#allocation4 + $0x8] sm:$0xff] }
 0x288   : > { %v494_v61 = vpop.xlane.xlu2 %493 }
 0x289   : > { %v495_v62 = vmax.f32 %v491_v60, %v494_v61 }
 0x28b   : > { %v496_v63 = vsub.f32 %v491_v60, %v495_v62  ;;  %547 = vst.msk [vmem:[#allocation2 + $0x8] sm:$0xff] %vm348_vm1, %v495_v62  ;;  %501 = vperm.xlu2 %993, %v495_v62  }
 0x28d   : > { %v497_v32 = vmul.f32 1.442695, %v496_v63 }
 0x292   : > { %v660_v1 = vpop.xlane.xlu1 %659 }
 0x293   : > { %v1185_v2 = vmax.f32 %v1182_v0, %v660_v1 }
 0x295   : > { %v662_v3 = vsub.f32 %v1182_v0, %v1185_v2  ;;  %713 = vst.msk [vmem:[#allocation2 + $0x18] sm:$0xff] %vm348_vm1, %v1185_v2  ;;  %667 = vperm.xlu2 %993, %v1185_v2  }
 0x297   : > { %v577_v6 = vpop.xlane.xlu0 %576  ;;  %v663_v49 = vmul.f32 1.442695, %v662_v3 }
 0x298   : > { %v578_v7 = vmax.f32 %v574_v4, %v577_v6  ;;  %v591_v6 = vld [vmem:[#allocation3 + $0x10] sm:$0xff] }
 0x29a   : > { %v579_v8 = vsub.f32 %v574_v4, %v578_v7  ;;  %630 = vst.msk [vmem:[#allocation2 + $0x10] sm:$0xff] %vm348_vm1, %v578_v7  ;;  %584 = vperm.xlu1 %992, %v578_v7  }
 0x29c   : > { %v580_v33 = vmul.f32 1.442695, %v579_v8 }
 0x29d   : > { %690 = vrot.lane.b32.xlu2 %v1143_v19, %s1052_s13 }
 0x2a2   : > { %427 = vperm.xlu1 %992, %v998_v9  }
 0x2aa   : > { %v525_v10 = vpop.permute.xlu0 %524 }
 0x2ab   : > { %v530_v11 = vsel %vm442_vm5, %v525_v10, 0 }
 0x2ac   : > { %539 = vmatpush.bf16.msra.mxu3 %v530_v11  ;;  %v599_v11 = vld [vmem:[#allocation4 + $0x10] sm:$0xff] }
 0x2b2   : > { %v608_v12 = vpop.permute.xlu0 %607 }
 0x2b3   : > { %v613_v26 = vsel %vm442_vm5, %v608_v12, 0 }
 0x2b4   : > { %622 = vmatpush.bf16.msrb.mxu3 %v613_v26 }
 0x2dd   : > { %v420_v15 = vpop.xlane.xlu0 %419 }
 0x2de   : > { %v421_v16 = vadd.f32 %v420_v15, %v417_v14 }
 0x2e0   : > { %423 = vst.msk [vmem:[#allocation3] sm:$0xff] %vm348_vm1, %v421_v16 }
 0x2e5   : > { %v502_v17 = vpop.permute.xlu2 %501 }
 0x2e6   : > { %v504_v18 = vsub.f32 %v489_v45, %v502_v17  ;;  %v682_v17 = vld [vmem:[#allocation4 + $0x18] sm:$0xff] }
 0x2e7   : > { %v718_v34 = vld [vmem:[#allocation3] sm:$0xff] }
 0x2e8   : > { %v505_v20 = vmul.f32 1.442695, %v504_v18 }
 0x2ea   : > { %999 = vpow2.f32 %v505_v20 }
 0x2ef   : > { %v668_v21 = vpop.permute.xlu2 %667 }
 0x2f0   : > { %v1000_v22 = vpop.eup %999  ;;  %v670_v19 = vsub.f32 %v655_v51, %v668_v21  ;;  %v508_v51 = vld [vmem:[#allocation3 + $0x8] sm:$0xff] }
 0x2f1   : > { %v510_v23 = vsel %vm400_vm4, %v1000_v22, 0.0  ;;  %v523_v24 = vpack.c.bf16 %v1000_v22, %v1000_v22 }
 0x2f2   : > { %v671_v25 = vmul.f32 1.442695, %v670_v19  ;;  %511 = vadd.xlane.f32.xlu2 %v510_v23 }
 0x2f3   : > { %944 = vmatmul.msk.bf16.vlgmr.msra.gmra.mxu3 %vm400_vm4, %v523_v24 }
 0x2f4   : > { %1001 = vpow2.f32 %v671_v25 }
 0x2f5   : > { %1003 = vpow2.f32 %v497_v32 }
 0x2f6   : > { %1005 = vpow2.f32 %v580_v33 }
 0x2f7   : > { %v691_v27 = vpop.permute.xlu2 %690  ;;  %1007 = vrcp.f32 %v718_v34 }
 0x2f8   : > { %v696_v28 = vsel %vm442_vm5, %v691_v27, 0 }
 0x2f9   : > { %705 = vmatpush.bf16.msrb.mxu2 %v696_v28 }
 0x2fa   : > { %v1002_v29 = vpop.eup %1001 }
 0x2fb   : > { %v676_v30 = vsel %vm400_vm4, %v1002_v29, 0.0  ;;  %v689_v31 = vpack.c.bf16 %v1002_v29, %v1002_v29  ;;  %v1004_v35 = vpop.eup %1003 }
 0x2fc   : > { %677 = vadd.xlane.f32.xlu0 %v676_v30  ;;  %v1006_v38 = vpop.eup %1005  ;;  %v509_v52 = vmul.f32 %v1004_v35, %v508_v51 }
 0x2fd   : > { %948 = vmatmul.msk.bf16.vlgmr.msrb.gmra.mxu2 %vm400_vm4, %v689_v31  ;;  %v1008_v40 = vpop.eup %1007  ;;  %v592_v7 = vmul.f32 %v1006_v38, %v591_v6 }
 0x30a   : > { %519 = vperm.xlu2 %993, %v1004_v35  }
 0x30c   : > { %v585_v36 = vpop.permute.xlu1 %584 }
 0x30d   : > { %v587_v37 = vsub.f32 %v1174_v56, %v585_v36 }
 0x30f   : > { %v588_v39 = vmul.f32 1.442695, %v587_v37 }
 0x310   : > { %602 = vperm.xlu0 %994, %v1006_v38  }
 0x311   : > { %1009 = vpow2.f32 %v588_v39 }
 0x312   : > { %722 = vperm.xlu2 %993, %v1008_v40   ;;  %1011 = vpow2.f32 %v663_v49 }
 0x314   : > { %v428_v43 = vpop.permute.xlu1 %427 }
 0x315   : > { %v430_v44 = vmul.f32 %v428_v43, %v424_v41 }
 0x317   : > { %v1010_v45 = vpop.eup %1009  ;;  %v459_v46 = vadd.f32 %v1164_v42, %v430_v44  ;;  %v674_v42 = vld [vmem:[#allocation3 + $0x18] sm:$0xff] }
 0x318   : > { %v593_v47 = vsel %vm400_vm4, %v1010_v45, 0.0  ;;  %v606_v48 = vpack.c.bf16 %v1010_v45, %v1010_v45  ;;  %v1012_v50 = vpop.eup %1011 }
 0x319   : > { %460 = vst.msk [vmem:[#allocation4] sm:$0xff] %vm357_vm0, %v459_v46  ;;  %594 = vadd.xlane.f32.xlu1 %v593_v47  ;;  %v675_v55 = vmul.f32 %v1012_v50, %v674_v42 }
 0x31a   : > { %946 = vmatmul.msk.bf16.vlgmr.msrb.gmra.mxu3 %vm400_vm4, %v606_v48 }
 0x320   : > { %v717_v41 = vld [vmem:[#allocation4] sm:$0xff] }
 0x332   : > { %685 = vperm.xlu1 %992, %v1012_v50  }
 0x365   : > { %v512_v53 = vpop.xlane.xlu2 %511 }
 0x366   : > { %v513_v54 = vadd.f32 %v512_v53, %v509_v52 }
 0x368   : > { %514 = vst.msk [vmem:[#allocation3 + $0x8] sm:$0xff] %vm348_vm1, %v513_v54 }
 0x36d   : > { %v520_v60 = vpop.permute.xlu2 %519 }
 0x36e   : > { %v522_v61 = vmul.f32 %v520_v60, %v516_v59 }
 0x36f   : > { %v678_v56 = vpop.xlane.xlu0 %677  ;;  %v728_v57 = vld [vmem:[#allocation3 + $0x8] sm:$0xff] }
 0x370   : > { %v679_v58 = vadd.f32 %v678_v56, %v675_v55  ;;  %1013 = vrcp.f32 %v728_v57 }
 0x372   : > { %680 = vst.msk [vmem:[#allocation3 + $0x18] sm:$0xff] %vm348_vm1, %v679_v58 }
 0x375   : > { %v723_v27 = vpop.permute.xlu2 %722 }
 0x376   : > { %v1014_v62 = vpop.eup %1013  ;;  %v541_v63 = vpop.f32.mrf.mxu3  ;;  %v725_v43 = vmul.f32 %v723_v27, %v717_v41 }
 0x377   : > { %v545_v0 = vadd.f32 %v541_v63, %v522_v61  ;;  %732 = vperm.xlu1 %992, %v1014_v62  }
 0x378   : > { %v726_v45 = vpack.c.bf16 %v725_v43, %v725_v43 }
 0x379   : > { %546 = vst.msk [vmem:[#allocation4 + $0x8] sm:$0xff] %vm357_vm0, %v545_v0  ;;  %v748_v1 = vld [vmem:[#allocation3 + $0x18] sm:$0xff] }
 0x37a   : > { %1015 = vrcp.f32 %v748_v1 }
 0x37e   : > { %v543_v2 = vpop.f32.mrf.mxu3 }
 0x380   : > { %v1016_v3 = vpop.eup %1015  ;;  %v707_v4 = vpop.f32.mrf.mxu2  ;;  %v727_v19 = vld [vmem:[#allocation4 + $0x8] sm:$0xff] }
 0x381   : > { %752 = vperm.xlu1 %992, %v1016_v3  }
 0x382   : > { %v603_v12 = vpop.permute.xlu0 %602 }
 0x383   : > { %v605_v13 = vmul.f32 %v603_v12, %v599_v11 }
 0x388   : > { %v709_v5 = vpop.f32.mrf.mxu2 }
 0x38c   : > { %v595_v8 = vpop.xlane.xlu1 %594 }
 0x38d   : > { %v596_v9 = vadd.f32 %v595_v8, %v592_v7 }
 0x38f   : > { %597 = vst.msk [vmem:[#allocation3 + $0x10] sm:$0xff] %vm348_vm1, %v596_v9 }
 0x396   : > { %v738_v10 = vld [vmem:[#allocation3 + $0x10] sm:$0xff] }
 0x397   : > { %1017 = vrcp.f32 %v738_v10 }
 0x39d   : > { %v1018_v14 = vpop.eup %1017  ;;  %v624_v15 = vpop.f32.mrf.mxu3 }
 0x39e   : > { %v628_v16 = vadd.f32 %v624_v15, %v605_v13  ;;  %742 = vperm.xlu2 %993, %v1018_v14  }
 0x3a0   : > { %629 = vst.msk [vmem:[#allocation4 + $0x10] sm:$0xff] %vm357_vm0, %v628_v16 }
 0x3a4   : > { %v686_v18 = vpop.permute.xlu1 %685 }
 0x3a5   : > { %v688_v20 = vmul.f32 %v686_v18, %v682_v17  ;;  %v626_v21 = vpop.f32.mrf.mxu3 }
 0x3a7   : > { %v711_v22 = vadd.f32 %v707_v4, %v688_v20  ;;  %v737_v34 = vld [vmem:[#allocation4 + $0x10] sm:$0xff] }
 0x3a9   : > { %712 = vst.msk [vmem:[#allocation4 + $0x18] sm:$0xff] %vm357_vm0, %v711_v22 }
 0x3b0   : > { %v747_v29 = vld [vmem:[#allocation4 + $0x18] sm:$0xff] }
 0x3e9   : > { %v733_v23 = vpop.permute.xlu1 %732 }
 0x3ea   : > { %v735_v24 = vmul.f32 %v733_v23, %v727_v19 }
 0x3ec   : > { %v736_v25 = vpack.c.bf16 %v735_v24, %v735_v24 }
 0x3ee   : > { %v758_v26 = vunpack.c.l.b16 %v736_v25 }
 0x3f0   : > { %v759_v28 = vpack.c.b16 %v758_v26, %v758_v26 }
 0x3f2   : > { %760 = vrot.lane.b32.xlu2 %v759_v28, %s1053_s14 }
 0x3f3   : > { %v753_v30 = vpop.permute.xlu1 %752 }
 0x3f4   : > { %v755_v31 = vmul.f32 %v753_v30, %v747_v29 }
 0x3f6   : > { %v756_v32 = vpack.c.bf16 %v755_v31, %v755_v31 }
 0x3f8   : > { %v768_v33 = vunpack.c.l.b16 %v756_v32  ;;  %v743_v35 = vpop.permute.xlu2 %742 }
 0x3f9   : > { %v745_v36 = vmul.f32 %v743_v35, %v737_v34 }
 0x3fa   : > { %v769_v37 = vpack.c.b16 %v768_v33, %v768_v33 }
 0x3fb   : > { %v746_v38 = vpack.c.bf16 %v745_v36, %v745_v36 }
 0x3fc   : > { %770 = vrot.lane.b32.xlu1 %v769_v37, %s1054_s19 }
 0x3fd   : > { %v763_v39 = vunpack.c.l.b16 %v746_v38 }
 0x3ff   : > { %v764_v40 = vpack.c.b16 %v763_v39, %v763_v39 }
 0x401   : > { %765 = vrot.lane.b32.xlu0 %v764_v40, %s1055_s20 }
 0x44c   : > { %v761_v44 = vpop.permute.xlu2 %760 }
 0x44d   : > { %v774_v46 = vsel %vm357_vm0, %v726_v45, %v761_v44 }
 0x46e   : > { %v771_v48 = vpop.permute.xlu1 %770 }
 0x473   : > { %v766_v47 = vpop.permute.xlu0 %765 }
 0x474   : > { %v777_v49 = vsel %vm775_vm6, %v774_v46, %v766_v47 }
 0x475   : > { %v780_v50 = vsel %vm778_vm7, %v777_v49, %v771_v48 }
 0x476   : > { %783 = vst.msk [vmem:[%s342_s24] sm:$0xf] %vm782_vm8, %v780_v50 }
 0x477 PF: > { %s14_s17 = sadd.s32 1, %s1041_s17   ;;  %s1241_s15 = smov %s1037_s16 }
 0x478   : > { %p11_p5 = scmp.ge.s32.totalorder %s14_s17, 4   ;;  %s1242_s16 = smov %s1244_s18 }
 0x47a   :  { %13 = sbr.rel (!%p11_p5) target bundleno = 2 (0x2), region = 92 }

// kernel: single_decoder_layer.15
= control target key start
LH: loop header
LB: loop body
LE: loop exit
PB: predicated region body
PF: predicated region fallthrough
CT: control target
= control target key end

     0   :  { %13 = vsyncpa [#allocation5], 0  ;;  %s1512_s27 = smov 0   ;;  %s1514_s28 = smov 0   ;;  %s1676_s0 = inlined_call_operand.vmem [shape: bf16[16,32], index: 0, kind: input, shape index: {}, may-alias: {0,5}]   ;;  %s1677_s1 = inlined_call_operand.vmem [shape: bf16[32,2048], index: 1, kind: input, shape index: {}]   ;;  %s1678_s2 = inlined_call_operand.vmem [shape: f32[1,2048], index: 2, kind: input, shape index: {}]   ;;  %s1679_s3 = inlined_call_operand.vmem [shape: bf16[2048,32], index: 3, kind: input, shape index: {}]   ;;  %s1680_s4 = inlined_call_operand.vmem [shape: f32[1,32], index: 4, kind: input, shape index: {}]   ;;  %s1681_s5 = inlined_call_operand.vmem [shape: bf16[16,32], index: 5, kind: input, shape index: {}, may-alias: {0,5}]   ;;  %s1682_s6 = inlined_call_operand.vmem [shape: f32[1,32], index: 6, kind: input, shape index: {}]   ;;  %s1683_s7 = inlined_call_operand.vmem [shape: f32[1,32], index: 7, kind: input, shape index: {}]   ;;  %s1684_s8 = inlined_call_operand.hbm [shape: f32[16,32], index: 8, kind: output, shape index: {}]  }
   0x1   :  { %s1516_s29 = smov 0   ;;  %s1518_s30 = smov 0  }
   0x2   :  { %s1520_s9 = smov 0  }
   0x3 LB: > { %s1097_s10 = sadd.s32 4294967295, %s1460_s9   ;;  %s28_s11 = sadd.s32 1, %s1456_s30  ;;  %s1460_s9 = sphi %s1520_s9, %s19_s9   ;;  %s1456_s30 = sphi %s1518_s30, %s1688_s30   ;;  %s1452_s29 = sphi %s1516_s29, %s1687_s29   ;;  %s1448_s28 = sphi %s1514_s28, %s1686_s28   ;;  %s1444_s27 = sphi %s1512_s27, %s1685_s27  }
   0x4   : > { %p29_p0 = scmp.ge.s32.totalorder %s28_s11, 4  ;;  %p71_p1 = scmp.ne.s32.totalorder %s1448_s28, %s1444_s27 }
   0x5   : > { %p72_p2 = scmp.eq.s32.totalorder %s1460_s9, 0  ;;  %s64_s13 = sadd.s32 1, %s1448_s28 }
   0x6   : > { %s1690_s11 = smov (%p29_p0, %s28_s11), 0  ;;  %p1101_p5 = scmp.ge.s32.totalorder %s1460_s9, 4 }
   0x7   : > { %p73_p3 = por %p72_p2, %p71_p1  ;;  %s61_s12 = ssub.s32 %s1456_s30, %s1690_s11 }
   0x8   : > { %p62_p4 = scmp.eq.s32.totalorder %s61_s12, 0  ;;  %291 = sbr.rel (%p1101_p5) target bundleno = 25 (0x19), region = 36 }
   0xa   : > { %s1548_s14 = scalar_select %p62_p4, %s1448_s28, %s64_s13  }
   0xd   : > { %294 = sbr.rel (!%p73_p3) target bundleno = 25 (0x19), region = 40  ;;  %s296_s15 = sand.u32 (%p73_p3), 1, %s1448_s28  }
   0xe   : > { %s1284_s16 = sshll.u32 (%p73_p3), %s1456_s30, 4  ;;  %s1102_s17 = sshll.u32 (%p73_p3), %s296_s15, 6 }
   0xf   : > { %s301_s20 = scalar_lea.vmem (%p73_p3), %s1677_s1, %s1284_s16  ;;  %s298_s21 = scalar_lea.vmem (%p73_p3), [#allocation3], %s1102_s17 }
  0x10   : > { %v314_v0 = vld [vmem:[%s301_s20] sm:$0xff] (%p73_p3)  ;;  %v316_v1 = vld [vmem:[%s301_s20 + $0x8] sm:$0xff] (%p73_p3) }
  0x11   : > { %v318_v2 = vld [vmem:[%s301_s20 + $0x40] sm:$0xff] (%p73_p3)  ;;  %315 = vst [vmem:[%s298_s21] sm:$0xff] (%p73_p3), %v314_v0  ;;  %v320_v3 = vld [vmem:[%s301_s20 + $0x48] sm:$0xff] (%p73_p3) }
  0x12   : > { %317 = vst [vmem:[%s298_s21 + $0x8] sm:$0xff] %v316_v1  ;;  %v322_v4 = vld [vmem:[%s301_s20 + $0x80] sm:$0xff]  ;;  %v324_v5 = vld [vmem:[%s301_s20 + $0x88] sm:$0xff] }
  0x13   : > { %319 = vst [vmem:[%s298_s21 + $0x10] sm:$0xff] %v318_v2  ;;  %v326_v6 = vld [vmem:[%s301_s20 + $0xc0] sm:$0xff]  ;;  %v328_v7 = vld [vmem:[%s301_s20 + $0xc8] sm:$0xff] }
  0x14   : > { %321 = vst [vmem:[%s298_s21 + $0x18] sm:$0xff] %v320_v3 }
  0x15   : > { %323 = vst [vmem:[%s298_s21 + $0x20] sm:$0xff] %v322_v4 }
  0x16   : > { %325 = vst [vmem:[%s298_s21 + $0x28] sm:$0xff] %v324_v5 }
  0x17   : > { %327 = vst [vmem:[%s298_s21 + $0x30] sm:$0xff] %v326_v6 }
  0x18   : > { %329 = vst [vmem:[%s298_s21 + $0x38] sm:$0xff] %v328_v7 }
  0x19 PF: > { %p1105_p6 = scmp.ge.s32.totalorder %s1460_s9, 1  ;;  %p351_p7 = scmp.lt.s32.totalorder %s1460_s9, 5 }
  0x1b   : > { %p352_p8 = pnand %p1105_p6, %p351_p7 }
  0x1c   : > { %s358_s22 = sand.u32 (!%p352_p8), 1, %s1444_s27   ;;  %s1107_s23 = sshll.u32 (!%p352_p8), %s1452_s29, 2 }
  0x1d   : > { %355 = sbr.rel (%p352_p8) target bundleno = 639 (0x27f), region = 71  ;;  %s1106_s24 = sshll.u32 (!%p352_p8), %s358_s22, 6 }
  0x1e   : > { %p413_p9 = scmp.lt.s32.totalorder (!%p352_p8), %s1107_s23, 15  ;;  %s1108_s25 = sshll.u32 (!%p352_p8), %s1452_s29, 6 }
  0x1f   : > { %p418_p10 = scmp.lt.s32.totalorder (!%p352_p8), %s1108_s25, 255  ;;  %s1572_s27 = scalar_lea.vmem (!%p352_p8), [#allocation3], %s1106_s24 }
  0x20   : > { %p1110_p11 = scmp.ne.s32.totalorder (!%p352_p8), %s1452_s29, 0 }
  0x22   : > { %s1692_s23 = smov (!%p413_p9, %s1107_s23), 15  ;;  %s1694_s25 = smov (!%p418_p10, %s1108_s25), 255 }
  0x23   : > { %s415_s13 = scalar_lea.vmem %s1678_s2, %s1692_s23  ;;  %s1109_s15 = sshll.u32 %s1694_s25, 2 }
  0x24   : > { %s1570_s18 = scalar_lea.vmem %s1679_s3, %s1109_s15  ;;  %434 = sbr.rel (%p1110_p11) target bundleno = 44 (0x2c), region = 79 }
  0x29   : > { %vm435_vm0 = vcmask 261120   ;;  %v1462_v8 = vmov 0.0  }
  0x2a   : > { %436 = vst.msk [vmem:[#allocation2] sm:$0xff] %vm435_vm0, %v1462_v8 }
  0x2b   : > { %437 = vst.msk [vmem:[#allocation2 + $0x8] sm:$0xff] %vm435_vm0, %v1462_v8 }
  0x2c PF: > { %v1133_v9 = vld [vmem:[%s1572_s27 + $0x20] sm:$0xf]  ;;  %v1292_v10 = vld [vmem:[%s1572_s27 + $0x2c] sm:$0xf0]  ;;  %v1290_v11 = vld [vmem:[%s1572_s27 + $0x24] sm:$0xf] }
  0x2d   : > { %v1134_v12 = vor.u32 %v1292_v10, %v1133_v9  ;;  %v1135_v13 = vld [vmem:[%s1572_s27 + $0x30] sm:$0xf0]  ;;  %v1141_v14 = vld [vmem:[%s1572_s27 + $0x28] sm:$0xf]  ;;  %v1293_v15 = vld [vmem:[%s1572_s27 + $0x34] sm:$0xf0] }
  0x2e   : > { %v1138_v16 = vor.u32 %v1290_v11, %v1135_v13  ;;  %v1142_v17 = vor.u32 %v1293_v15, %v1141_v14  ;;  %v1291_v18 = vld [vmem:[%s1572_s27 + $0x2c] sm:$0xf]  ;;  %v1143_v19 = vld [vmem:[%s1572_s27 + $0x38] sm:$0xf0]  ;;  %v1117_v20 = vld [vmem:[%s1572_s27] sm:$0xf] }
  0x2f   : > { %513 = vmatpush.bf16.msra.mxu0 %v1134_v12  ;;  %v1146_v21 = vor.u32 %v1291_v18, %v1143_v19  ;;  %v1288_v22 = vld [vmem:[%s1572_s27 + $0xc] sm:$0xf0]  ;;  %v1286_v23 = vld [vmem:[%s1572_s27 + $0x4] sm:$0xf]  ;;  %v1119_v24 = vld [vmem:[%s1572_s27 + $0x10] sm:$0xf0] }
  0x30   : > { %527 = vmatpush.bf16.msra.mxu1 %v1138_v16  ;;  %541 = vmatpush.bf16.msra.mxu2 %v1142_v17  ;;  %v1118_v25 = vor.u32 %v1288_v22, %v1117_v20  ;;  %v1122_v26 = vor.u32 %v1286_v23, %v1119_v24  ;;  %v1125_v27 = vld [vmem:[%s1572_s27 + $0x8] sm:$0xf]  ;;  %v1289_v28 = vld [vmem:[%s1572_s27 + $0x14] sm:$0xf0]  ;;  %v1287_v29 = vld [vmem:[%s1572_s27 + $0xc] sm:$0xf] }
  0x31   : > { %555 = vmatpush.bf16.msra.mxu3 %v1146_v21  ;;  %v1126_v30 = vor.u32 %v1289_v28, %v1125_v27  ;;  %v1127_v31 = vld [vmem:[%s1572_s27 + $0x18] sm:$0xf0]  ;;  %v1301_v32 = vld [vmem:[%s1570_s18 + $0x38] sm:$0xff]  ;;  %v1285_v34 = vld [vmem:[%s1676_s0] sm:$0xff]  ;;  %vm503_vm1 = vcmask 261120   ;;  %p1279_p12 = scmp.ne.s32.totalorder %s1452_s29, 3 }
  0x32   : > { %v1130_v33 = vor.u32 %v1287_v29, %v1127_v31  ;;  %v1309_v35 = vld [vmem:[%s1570_s18 + $0x78] sm:$0xff]  ;;  %v1300_v37 = vld [vmem:[%s1570_s18 + $0x30] sm:$0xff]  ;;  %v1299_v41 = vld [vmem:[%s1570_s18 + $0x28] sm:$0xff] }
  0x33   : > { %514 = vmatpush.bf16.msra.mxu0 %v1118_v25  ;;  %v1317_v36 = vld [vmem:[%s1570_s18 + $0xb8] sm:$0xff]  ;;  %v1308_v39 = vld [vmem:[%s1570_s18 + $0x70] sm:$0xff]  ;;  %v1307_v43 = vld [vmem:[%s1570_s18 + $0x68] sm:$0xff] }
  0x34   : > { %528 = vmatpush.bf16.msra.mxu1 %v1122_v26  ;;  %542 = vmatpush.bf16.msra.mxu2 %v1126_v30  ;;  %v1325_v38 = vld [vmem:[%s1570_s18 + $0xf8] sm:$0xff]  ;;  %v1316_v40 = vld [vmem:[%s1570_s18 + $0xb0] sm:$0xff]  ;;  %v1315_v44 = vld [vmem:[%s1570_s18 + $0xa8] sm:$0xff] }
  0x35   : > { %556 = vmatpush.bf16.msra.mxu3 %v1130_v33  ;;  %v1324_v42 = vld [vmem:[%s1570_s18 + $0xf0] sm:$0xff]  ;;  %v1298_v45 = vld [vmem:[%s1570_s18 + $0x20] sm:$0xff]  ;;  %v1323_v46 = vld [vmem:[%s1570_s18 + $0xe8] sm:$0xff] }
  0x36   : > { %1147 = vmatmul.msk.bf16.vlgmr.msra.gmra.mxu0 %vm503_vm1, %v1285_v34  ;;  %v1306_v47 = vld [vmem:[%s1570_s18 + $0x60] sm:$0xff]  ;;  %v1297_v48 = vld [vmem:[%s1570_s18 + $0x18] sm:$0xff]  ;;  %v1296_v52 = vld [vmem:[%s1570_s18 + $0x10] sm:$0xff] }
  0x37   : > { %833 = vmatpush.bf16.msrb.mxu0 %v1301_v32  ;;  %1148 = vmatmul.msk.bf16.vlgmr.msra.gmra.mxu1 %vm503_vm1, %v1285_v34  ;;  %v1305_v49 = vld [vmem:[%s1570_s18 + $0x58] sm:$0xff]  ;;  %v1314_v50 = vld [vmem:[%s1570_s18 + $0xa0] sm:$0xff]  ;;  %v1304_v53 = vld [vmem:[%s1570_s18 + $0x50] sm:$0xff] }
  0x38   : > { %847 = vmatpush.bf16.msrb.mxu1 %v1309_v35  ;;  %1149 = vmatmul.msk.bf16.vlgmr.msra.gmra.mxu2 %vm503_vm1, %v1285_v34  ;;  %v1322_v51 = vld [vmem:[%s1570_s18 + $0xe0] sm:$0xff]  ;;  %v1313_v54 = vld [vmem:[%s1570_s18 + $0x98] sm:$0xff]  ;;  %v1295_v56 = vld [vmem:[%s1570_s18 + $0x8] sm:$0xff] }
  0x39   : > { %1150 = vmatmul.msk.bf16.vlgmr.msra.gmra.mxu3 %vm503_vm1, %v1285_v34  ;;  %861 = vmatpush.bf16.msrb.mxu2 %v1317_v36  ;;  %v1321_v55 = vld [vmem:[%s1570_s18 + $0xd8] sm:$0xff]  ;;  %v1303_v57 = vld [vmem:[%s1570_s18 + $0x48] sm:$0xff]  ;;  %v1312_v58 = vld [vmem:[%s1570_s18 + $0x90] sm:$0xff] }
  0x3a   : > { %875 = vmatpush.bf16.msrb.mxu3 %v1325_v38  ;;  %v1320_v59 = vld [vmem:[%s1570_s18 + $0xd0] sm:$0xff]  ;;  %v1294_v60 = vld [vmem:[%s1570_s18] sm:$0xff]  ;;  %v1311_v62 = vld [vmem:[%s1570_s18 + $0x88] sm:$0xff] }
  0x3b   : > { %834 = vmatpush.bf16.msrb.mxu0 %v1300_v37  ;;  %v1302_v61 = vld [vmem:[%s1570_s18 + $0x40] sm:$0xff]  ;;  %v1319_v63 = vld [vmem:[%s1570_s18 + $0xc8] sm:$0xff] }
  0x3c   : > { %848 = vmatpush.bf16.msrb.mxu1 %v1308_v39  ;;  %v1310_v0 = vld [vmem:[%s1570_s18 + $0x80] sm:$0xff] }
  0x3d   : > { %862 = vmatpush.bf16.msrb.mxu2 %v1316_v40  ;;  %v1318_v1 = vld [vmem:[%s1570_s18 + $0xc0] sm:$0xff] }
  0x3e   : > { %876 = vmatpush.bf16.msrb.mxu3 %v1324_v42  ;;  %v448_v2 = vld [vmem:[%s415_s13] sm:$0xf] }
  0x3f   : > { %835 = vmatpush.bf16.msrb.mxu0 %v1299_v41  ;;  %v450_v4 = vperm.slane %v448_v2, 0  ;;  %v451_v6 = vperm.slane %v448_v2, 1  ;;  %v452_v16 = vperm.slane %v448_v2, 2  ;;  %v453_v18 = vperm.slane %v448_v2, 3  ;;  %v571_v41 = vld [vmem:[#allocation2] sm:$0xff] }
  0x40   : > { %849 = vmatpush.bf16.msrb.mxu1 %v1307_v43 }
  0x41   : > { %863 = vmatpush.bf16.msrb.mxu2 %v1315_v44 }
  0x42   : > { %877 = vmatpush.bf16.msrb.mxu3 %v1323_v46 }
  0x43   : > { %836 = vmatpush.bf16.msrb.mxu0 %v1298_v45 }
  0x44   : > { %850 = vmatpush.bf16.msrb.mxu1 %v1306_v47 }
  0x45   : > { %864 = vmatpush.bf16.msrb.mxu2 %v1314_v50 }
  0x46   : > { %878 = vmatpush.bf16.msrb.mxu3 %v1322_v51 }
  0x47   : > { %837 = vmatpush.bf16.msrb.mxu0 %v1297_v48 }
  0x48   : > { %851 = vmatpush.bf16.msrb.mxu1 %v1305_v49  ;;  %v572_v49 = vld [vmem:[#allocation2 + $0x8] sm:$0xff] }
  0x49   : > { %865 = vmatpush.bf16.msrb.mxu2 %v1313_v54 }
  0x4a   : > { %879 = vmatpush.bf16.msrb.mxu3 %v1321_v55 }
  0x4b   : > { %838 = vmatpush.bf16.msrb.mxu0 %v1296_v52 }
  0x4c   : > { %852 = vmatpush.bf16.msrb.mxu1 %v1304_v53 }
  0x4d   : > { %866 = vmatpush.bf16.msrb.mxu2 %v1312_v58 }
  0x4e   : > { %880 = vmatpush.bf16.msrb.mxu3 %v1320_v59 }
  0x4f   : > { %839 = vmatpush.bf16.msrb.mxu0 %v1295_v56 }
  0x50   : > { %853 = vmatpush.bf16.msrb.mxu1 %v1303_v57 }
  0x51   : > { %867 = vmatpush.bf16.msrb.mxu2 %v1311_v62 }
  0x52   : > { %881 = vmatpush.bf16.msrb.mxu3 %v1319_v63 }
  0x53   : > { %840 = vmatpush.bf16.msrb.mxu0 %v1294_v60 }
  0x54   : > { %854 = vmatpush.bf16.msrb.mxu1 %v1302_v61 }
  0x55   : > { %868 = vmatpush.bf16.msrb.mxu2 %v1310_v0 }
  0x56   : > { %882 = vmatpush.bf16.msrb.mxu3 %v1318_v1 }
  0xb3   : > { %v516_v3 = vpop.f32.mrf.mxu0 }
  0xb4   : > { %v530_v5 = vpop.f32.mrf.mxu1  ;;  %v517_v7 = vadd.f32 %v516_v3, %v450_v4 }
  0xb5   : > { %v531_v8 = vadd.f32 %v530_v5, %v451_v6 }
  0xb6   : > { %v563_v12 = vmax.f32 %v517_v7, 0.0 }
  0xb7   : > { %v564_v15 = vmax.f32 %v531_v8, 0.0 }
  0xbb   : > { %v544_v9 = vpop.f32.mrf.mxu2  ;;  %v518_v11 = vpop.f32.mrf.mxu0 }
  0xbc   : > { %v558_v10 = vpop.f32.mrf.mxu3  ;;  %v519_v13 = vadd.f32 %v518_v11, %v450_v4  ;;  %v532_v14 = vpop.f32.mrf.mxu1  ;;  %v545_v22 = vadd.f32 %v544_v9, %v452_v16 }
  0xbd   : > { %v533_v17 = vadd.f32 %v532_v14, %v451_v6  ;;  %v559_v24 = vadd.f32 %v558_v10, %v453_v18 }
  0xbe   : > { %v567_v19 = vmax.f32 %v519_v13, 0.0  ;;  %v565_v29 = vmax.f32 %v545_v22, 0.0 }
  0xbf   : > { %v568_v20 = vmax.f32 %v533_v17, 0.0  ;;  %v566_v31 = vmax.f32 %v559_v24, 0.0 }
  0xc0   : > { %v573_v21 = vpack.c.bf16 %v567_v19, %v563_v12 }
  0xc1   : > { %v574_v23 = vpack.c.bf16 %v568_v20, %v564_v15 }
  0xc2   : > { %841 = vmatmul.bf16.vlgmr.msrb.gmra.mxu0 %v573_v21 }
  0xc3   : > { %v546_v25 = vpop.f32.mrf.mxu2  ;;  %855 = vmatmul.bf16.vlgmr.msrb.gmra.mxu1 %v574_v23 }
  0xc4   : > { %v547_v26 = vadd.f32 %v546_v25, %v452_v16  ;;  %v560_v27 = vpop.f32.mrf.mxu3 }
  0xc5   : > { %v561_v28 = vadd.f32 %v560_v27, %v453_v18 }
  0xc6   : > { %v569_v30 = vmax.f32 %v547_v26, 0.0 }
  0xc7   : > { %v570_v32 = vmax.f32 %v561_v28, 0.0 }
  0xc8   : > { %v575_v33 = vpack.c.bf16 %v569_v30, %v565_v29 }
  0xc9   : > { %v576_v34 = vpack.c.bf16 %v570_v32, %v566_v31 }
  0xca   : > { %869 = vmatmul.bf16.vlgmr.msrb.gmra.mxu2 %v575_v33 }
  0xcb   : > { %883 = vmatmul.bf16.vlgmr.msrb.gmra.mxu3 %v576_v34 }
 0x13f   : > { %v842_v35 = vpop.f32.mrf.mxu0 }
 0x140   : > { %v856_v36 = vpop.f32.mrf.mxu1 }
 0x141   : > { %v857_v37 = vadd.f32 %v856_v36, %v842_v35 }
 0x147   : > { %v844_v43 = vpop.f32.mrf.mxu0 }
 0x148   : > { %v858_v44 = vpop.f32.mrf.mxu1 }
 0x149   : > { %v859_v46 = vadd.f32 %v858_v44, %v844_v43 }
 0x14d   : > { %v870_v38 = vpop.f32.mrf.mxu2 }
 0x14e   : > { %v871_v39 = vadd.f32 %v870_v38, %v857_v37  ;;  %v884_v40 = vpop.f32.mrf.mxu3 }
 0x150   : > { %v885_v42 = vadd.f32 %v884_v40, %v871_v39 }
 0x152   : > { %v889_v45 = vadd.f32 %v885_v42, %v571_v41 }
 0x154   : > { %891 = vst.msk [vmem:[#allocation2] sm:$0xff] %vm503_vm1, %v889_v45 }
 0x155   : > { %v872_v47 = vpop.f32.mrf.mxu2 }
 0x156   : > { %v873_v48 = vadd.f32 %v872_v47, %v859_v46  ;;  %v886_v50 = vpop.f32.mrf.mxu3 }
 0x158   : > { %v887_v51 = vadd.f32 %v886_v50, %v873_v48  ;;  %896 = sbr.rel (%p1279_p12) target bundleno = 633 (0x279), region = 83 }
 0x15a   : > { %v890_v52 = vadd.f32 %v887_v51, %v572_v49 }
 0x15c   : > { %892 = vst.msk [vmem:[#allocation2 + $0x8] sm:$0xff] %vm503_vm1, %v890_v52 }
 0x15d   : > { %v1327_v53 = vld [vmem:[%s1681_s5] sm:$0xff]   ;;  %v1463_v1 = vmov 32.0  }
 0x15e   : > { %v901_v54 = vld [vmem:[#allocation2] sm:$0xff]  ;;  %v1328_v55 = vunpack.c.l.bf16 %v1327_v53  ;;  %v1329_v57 = vunpack.c.h.bf16 %v1327_v53  ;;  %1384 = vrcp.f32 %v1463_v1 }
 0x15f   : > { %v1381_v56 = vld [vmem:[%s1680_s4] ss:$0 sm:$0xff] }
 0x160   : > { %v903_v59 = vadd.f32 %v1328_v55, %v901_v54  ;;  %v1382_v32 = vld [vmem:[%s1682_s6] ss:$0 sm:$0xff] }
 0x161   : > { %v1383_v35 = vld [vmem:[%s1683_s7] ss:$0 sm:$0xff] }
 0x162   : > { %v909_v60 = vadd.f32 %v1381_v56, %v903_v59 }
 0x163   : > { %v902_v58 = vld [vmem:[#allocation2 + $0x8] sm:$0xff] }
 0x164   : > { %v904_v61 = vadd.f32 %v1329_v57, %v902_v58  ;;  %v911_v62 = vsel %vm503_vm1, %v909_v60, 0.0  ;;  %v1385_v2 = vpop.eup %1384 }
 0x165   : > { %912 = vadd.xlane.f32.xlu0 %v911_v62  ;;  %v918_v3 = vmul.f32 32.0, %v1385_v2  ;;  %vm922_vm2 = vweird.f32 %v1385_v2 }
 0x166   : > { %v910_v63 = vadd.f32 %v1381_v56, %v904_v61 }
 0x167   : > { %v919_v4 = vsub.f32 1.0, %v918_v3 }
 0x168   : > { %v914_v0 = vsel %vm503_vm1, %v910_v63, 0.0 }
 0x169   : > { %v920_v5 = vmul.f32 %v1385_v2, %v919_v4 }
 0x16b   : > { %v921_v6 = vadd.f32 %v1385_v2, %v920_v5 }
 0x16d   : > { %915 = vadd.xlane.f32.xlu0 %v914_v0  ;;  %v923_v7 = vsel %vm922_vm2, %v1385_v2, %v921_v6 }
 0x1d8   : > { %v913_v8 = vpop.xlane.xlu0 %912 }
 0x1d9   : > { %v924_v9 = vmul.f32 %v923_v7, %v913_v8 }
 0x1db   : > { %v926_v10 = vsub.f32 %v909_v60, %v924_v9 }
 0x1dd   : > { %v928_v11 = vmul.f32 %v926_v10, %v926_v10 }
 0x1df   : > { %v930_v12 = vsel %vm503_vm1, %v928_v11, 0.0 }
 0x1e0   : > { %931 = vadd.xlane.f32.xlu1 %v930_v12  ;;  %v916_v13 = vpop.xlane.xlu0 %915 }
 0x1e1   : > { %v925_v14 = vmul.f32 %v923_v7, %v916_v13 }
 0x1e3   : > { %v927_v15 = vsub.f32 %v910_v63, %v925_v14 }
 0x1e5   : > { %v929_v16 = vmul.f32 %v927_v15, %v927_v15 }
 0x1e7   : > { %v933_v17 = vsel %vm503_vm1, %v929_v16, 0.0 }
 0x1e8   : > { %934 = vadd.xlane.f32.xlu1 %v933_v17 }
 0x253   : > { %v932_v18 = vpop.xlane.xlu1 %931 }
 0x254   : > { %v936_v19 = vmul.f32 %v932_v18, %v923_v7 }
 0x256   : > { %v938_v20 = vadd.f32 1e-06, %v936_v19 }
 0x258   : > { %1386 = vrsqrt.f32 %v938_v20  ;;  %vm946_vm4 = vweird.f32 %v938_v20 }
 0x25b   : > { %v935_v21 = vpop.xlane.xlu1 %934 }
 0x25c   : > { %v937_v22 = vmul.f32 %v935_v21, %v923_v7 }
 0x25e   : > { %v1387_v23 = vpop.eup %1386  ;;  %v939_v24 = vadd.f32 1e-06, %v937_v22 }
 0x25f   : > { %v941_v25 = vmul.f32 %v1387_v23, %v938_v20  ;;  %vm947_vm3 = vweird.f32 %v1387_v23 }
 0x260   : > { %1388 = vrsqrt.f32 %v939_v24  ;;  %vm948_vm5 = vmor %vm946_vm4, %vm947_vm3  ;;  %vm956_vm7 = vweird.f32 %v939_v24 }
 0x261   : > { %v942_v26 = vmul.f32 %v1387_v23, %v941_v25 }
 0x263   : > { %v943_v27 = vmul.f32 0.5, %v942_v26 }
 0x265   : > { %v944_v28 = vsub.f32 1.5, %v943_v27 }
 0x266   : > { %v1389_v29 = vpop.eup %1388 }
 0x267   : > { %v945_v30 = vmul.f32 %v1387_v23, %v944_v28  ;;  %v951_v31 = vmul.f32 %v1389_v29, %v939_v24  ;;  %vm957_vm6 = vweird.f32 %v1389_v29 }
 0x268   : > { %vm958_vm8 = vmor %vm956_vm7, %vm957_vm6 }
 0x269   : > { %v949_v33 = vsel %vm948_vm5, %v1387_v23, %v945_v30  ;;  %v952_v34 = vmul.f32 %v1389_v29, %v951_v31 }
 0x26a   : > { %v960_v36 = vmul.f32 %v949_v33, %v926_v10 }
 0x26b   : > { %v953_v37 = vmul.f32 0.5, %v952_v34 }
 0x26c   : > { %v966_v38 = vmul.f32 %v1382_v32, %v960_v36 }
 0x26d   : > { %v954_v39 = vsub.f32 1.5, %v953_v37 }
 0x26e   : > { %v972_v40 = vadd.f32 %v1383_v35, %v966_v38 }
 0x26f   : > { %v955_v41 = vmul.f32 %v1389_v29, %v954_v39 }
 0x270   : > { %974 = vst.msk [vmem:[#allocation4] sm:$0xff] %vm503_vm1, %v972_v40 }
 0x271   : > { %v959_v42 = vsel %vm958_vm8, %v1389_v29, %v955_v41 }
 0x272   : > { %v961_v43 = vmul.f32 %v959_v42, %v927_v15 }
 0x274   : > { %v967_v44 = vmul.f32 %v1382_v32, %v961_v43 }
 0x276   : > { %v973_v45 = vadd.f32 %v1383_v35, %v967_v44 }
 0x278   : > { %975 = vst.msk [vmem:[#allocation4 + $0x8] sm:$0xff] %vm503_vm1, %v973_v45 }
 0x279 PF: > { %p1334_p13 = scmp.eq.s32.totalorder %s1097_s10, 3  ;;  %s986_s18 = sshll.u32 %s1684_s8, 4  ;;  %s987_s18 = int_to_ptr.hbm [resolvable:$true] %s986_s18 }
 0x27a   : > { %s1464_s27 = smov [#allocation4]   ;;  %s1465_s20 = smov 128  }
 0x27b   : > { %s984_s19 = sshll.u32 %s1464_s27, 4  ;;  %s1466_s21 = smov 8   ;;  %s985_s19 = int_to_ptr.vmem [resolvable:$true] %s984_s19 }
 0x27c   : > { %1331 = dma.vmem_to_hbm [thread:$0]  (%p1334_p13), %s985_s19, 256, %s987_s18, [#allocation5], %s1465_s20, %s1465_s20, %s1466_s21  }
 0x27d   : > { %1439 = dma.done.wait (%p1334_p13), [#allocation5], 256  }
 0x27e   : > { %1441 = vsyncadd (%p1334_p13), [#allocation5], 4294967040 }
 0x27f PF: > { %s19_s9 = sadd.s32 1, %s1460_s9   ;;  %s1685_s27 = smov %s1448_s28 }
 0x280   : > { %p16_p0 = scmp.ge.s32.totalorder %s19_s9, 6   ;;  %s1686_s28 = smov %s1548_s14 }
 0x281   : > { %s1687_s29 = smov %s1456_s30  ;;  %s1688_s30 = smov %s1690_s11 }
 0x282   :  { %18 = sbr.rel (!%p16_p0) target bundleno = 3 (0x3), region = 128 }
 0x287   :  { %1003 = vsyncpa [#allocation5], 1 }
 0x288   :  { %1005 = vsyncpa [#allocation5 + $0x1], 1 }

</bundles_post_ra>
